<compile_context>
chip_gen: v7x
topology: tpu7x:2x2x1
jax: 0.10.0
libtpu: 0.0.40
codegen_flags: <defaults>
</compile_context>

<pallas_src>
import functools

import jax
import jax.numpy as jnp
from jax.experimental import pallas as pl
from jax.experimental.pallas import tpu as pltpu

LANE = 128


def _round_up(n, m):
    return ((n + m - 1) // m) * m


def _multi_tensorcore():
    """Heuristic: True on chips whose TensorCores share the parallel grid axis (v7x / v4-style
    megacore).  v5e/v6e are single-TC; missing a generation here is only a mild perf miss."""
    try:
        kind = jax.devices()[0].device_kind.lower()
    except Exception:
        return False
    return any(tag in kind for tag in ("v7", "7x", "v4"))


def _temporal_attn_kernel(x_ref, wbig_ref, ab_ref, bias_ref, o_ref, *, alpha, K, F, E):
    BT = x_ref.shape[-1]
    x2d = x_ref[...]                                        # (K*F, BT), batch on lanes

    # All K time-steps' GATv2 projections in ONE MXU matmul (block-diagonal weight):
    #   pq[k*2E + r, b] = sum_f W12[r, f] * x[b, k, f]
    pq = jnp.dot(wbig_ref[...], x2d, preferred_element_type=jnp.float32)   # (K*2E, BT)
    pq = pq.reshape(K, 2 * E, BT)

    blin = ab_ref[:, 0:1]                                   # (E, 1)  linear bias
    a_col = ab_ref[:, 1:2]                                   # (E, 1)  attention vector a
    p = pq[:, :E, :] + blin[None, :, :]                      # (K, E, BT)  x_i @ W1 + b_lin
    q = pq[:, E:, :]                                         # (K, E, BT)  x_j @ W2

    # GATv2 pre-activation over all (i, j) pairs; lanes = batch -> fully dense VPU work.
    pre = p[:, None, :, :] + q[None, :, :, :]                # (K, K, E, BT)
    act = jnp.maximum(pre, alpha * pre)                      # LeakyReLU (0 < alpha < 1)

    # e = act @ a  (+ bias): E sits on the sublane axis -> vreg adds + cheap sublane reduce.
    e = jnp.sum(act * a_col[None, None, :, :], axis=2)       # (K, K, BT)
    e = e + bias_ref[...]                                     # bias (K, K, 1) broadcast over lanes

    # softmax over j (torch dim=2) == axis 1 here; exact divide (lane-dense, cheap).
    e = e - jnp.max(e, axis=1, keepdims=True)
    ex = jnp.exp(e)
    attn = ex / jnp.sum(ex, axis=1, keepdims=True)            # (K, K, BT)

    # TODO(synk): dropout omitted — module is evaluated with train=False (identity).
    # h = attn @ x, kept on the VPU as lane-dense FMAs; reduction axis j is a major axis
    # (plain vreg adds), so no tiny per-batch MXU matmuls and no cross-lane reductions.
    x3 = x2d.reshape(K, F, BT)                                # (K, F, BT)
    h = jnp.sum(attn[:, :, None, :] * x3[None, :, :, :], axis=1)   # (K, F, BT)

    # Lane-dense store (BT multiple of 128 -> unmasked vst).
    o_ref[...] = jax.nn.sigmoid(h).reshape(K * F, BT).astype(o_ref.dtype)


def temporal_attention_layer(x, w_lin, b_lin, a, bias, *, alpha, block_b=None):
    """x: (B, K, F); w_lin: (E, 2F) torch nn.Linear weight; b_lin: (E,); a: (E, 1); bias: (K, K)."""
    B, K, F = x.shape
    E = w_lin.shape[0]

    # ---- constants (built once by XLA outside the kernel) ----
    # torch Linear layout (E, 2F): first F columns act on x_i, last F on x_j.
    w12 = jnp.concatenate([w_lin[:, :F], w_lin[:, F:]], axis=0).astype(jnp.float32)   # (2E, F)
    w_big = jnp.kron(jnp.eye(K, dtype=jnp.float32), w12)       # (K*2E, K*F) block-diagonal
    ab = jnp.stack([b_lin.astype(jnp.float32).reshape(E),
                    a.astype(jnp.float32).reshape(E)], axis=1)  # (E, 2): [b_lin | a]
    bias3 = bias.astype(jnp.float32).reshape(K, K, 1)

    # ---- batch tile: batch is the lane axis, so the tile must be a multiple of 128 ----
    if block_b is None:
        block_b = 512            # ~14 MiB live intermediates: fits comfortably on every generation
    block_b = _round_up(max(1, min(block_b, _round_up(B, LANE))), LANE)
    n_blocks = pl.cdiv(B, block_b)
    # v7x shards the "parallel" grid axis across 2 TensorCores: keep the step count even so the
    # tail step does not leave one core idle.  Single-TC chips skip the extra padded step.
    if n_blocks > 1 and n_blocks % 2 == 1 and _multi_tensorcore():
        n_blocks += 1
    Bp = n_blocks * block_b

    # lane-dense input slab: xt[k*F + f, b] = x[b, k, f]  (layout plumbing done by XLA)
    xt = jnp.transpose(x.astype(jnp.float32), (1, 2, 0)).reshape(K * F, B)
    if Bp != B:
        xt = jnp.pad(xt, ((0, 0), (0, Bp - B)))

    kernel = functools.partial(_temporal_attn_kernel, alpha=alpha, K=K, F=F, E=E)
    out_t = pl.pallas_call(
        kernel,
        out_shape=jax.ShapeDtypeStruct((K * F, Bp), x.dtype),
        grid_spec=pltpu.PrefetchScalarGridSpec(
            num_scalar_prefetch=0,
            grid=(n_blocks,),
            in_specs=[
                pl.BlockSpec((K * F, block_b), lambda b: (0, b)),      # x slab, lane-dense
                pl.BlockSpec((K * 2 * E, K * F), lambda b: (0, 0)),    # block-diag [W1^T; W2^T]
                pl.BlockSpec((E, 2), lambda b: (0, 0)),                # merged [b_lin | a]
                pl.BlockSpec((K, K, 1), lambda b: (0, 0, 0)),          # attention bias
            ],
            out_specs=pl.BlockSpec((K * F, block_b), lambda b: (0, b)),
        ),
        compiler_params=pltpu.CompilerParams(
            dimension_semantics=("parallel",),
            vmem_limit_bytes=32 * 1024 * 1024,   # ~2x actual need; half of v7x's 64 MiB physical
        ),
    )(xt, w_big, ab, bias3)

    out = out_t[:, :B].reshape(K, F, B)
    return jnp.transpose(out, (2, 0, 1))


def reference_forward(x, w_lin, b_lin, a, bias, *, alpha):
    """Pure-JAX replica of the PyTorch forward (use_gatv2=True, use_bias=True, eval)."""
    B, K, F = x.shape
    rep = jnp.repeat(x, K, axis=1)                 # repeat_interleave along dim=1
    alt = jnp.tile(x, (1, K, 1))                   # repeat(1, K, 1)
    comb = jnp.concatenate([rep, alt], axis=2).reshape(B, K, K, 2 * F)
    a_in = comb @ w_lin.T + b_lin                  # nn.Linear
    a_in = jnp.where(a_in >= 0, a_in, alpha * a_in)
    e = (a_in @ a)[..., 0] + bias
    attn = jax.nn.softmax(e, axis=2)
    return jax.nn.sigmoid(attn @ x)


if __name__ == "__main__":
    # Module hyper-params (small, consistent with the forward pass).
    n_features = 16        # F
    window_size = 8        # K (= num_nodes in the attention graph); K*F = 128
    alpha = 0.2
    batch = 16
    embed_dim = n_features * 2       # use_gatv2 doubles embed_dim (default embed_dim=n_features)

    key = jax.random.PRNGKey(0)
    kx, kw, kb, ka, kbias = jax.random.split(key, 5)

    x = jax.random.normal(kx, (batch, window_size, n_features), jnp.float32)
    # nn.Linear(2*n_features, embed_dim): weight (E, 2F), bias (E,)
    w_lin = 0.1 * jax.random.normal(kw, (embed_dim, 2 * n_features), jnp.float32)
    b_lin = 0.05 * jax.random.normal(kb, (embed_dim,), jnp.float32)
    # a: xavier_uniform-like deterministic init, shape (E, 1)
    limit = 1.414 * (6.0 / (embed_dim + 1)) ** 0.5
    a_param = jax.random.uniform(ka, (embed_dim, 1), jnp.float32, -limit, limit)
    # bias is zero-initialized in the module; use small random values so the add is exercised.
    attn_bias = 0.1 * jax.random.normal(kbias, (window_size, window_size), jnp.float32)

    out = temporal_attention_layer(x, w_lin, b_lin, a_param, attn_bias, alpha=alpha)
    out = jax.block_until_ready(out)

    ref = reference_forward(x, w_lin, b_lin, a_param, attn_bias, alpha=alpha)
    assert out.shape == (batch, window_size, n_features)
    # Exact softmax divide now; remaining diff is matmul default-precision noise on both sides.
    assert jnp.allclose(out, ref, rtol=3e-3, atol=3e-3), float(jnp.max(jnp.abs(out - ref)))
    print("KERNEL_OK")
</pallas_src>

<mosaic_0001>
module attributes {stable_mosaic.version = 11 : i64} {
  func.func @_temporal_attn_kernel(%arg0: i32, %arg1: memref<128x128xf32, #tpu.memory_space<vmem>>, %arg2: memref<512x128xf32, #tpu.memory_space<vmem>>, %arg3: memref<32x2xf32, #tpu.memory_space<vmem>>, %arg4: memref<8x8x1xf32, #tpu.memory_space<vmem>>, %arg5: memref<128x128xf32, #tpu.memory_space<vmem>>) attributes {dimension_semantics = [#tpu.dimension_semantics<parallel>], iteration_bounds = array<i64: 1>, scalar_prefetch = 0 : i64, scratch_operands = 0 : i64, tpu.core_type = #tpu.core_type<tc>, window_params = [{transform_indices = @transform_0, window_bounds = array<i64: 128, 128>}, {pipeline_mode = #tpu.pipeline_mode<synchronous>, transform_indices = @transform_1, window_bounds = array<i64: 512, 128>}, {pipeline_mode = #tpu.pipeline_mode<synchronous>, transform_indices = @transform_2, window_bounds = array<i64: 32, 2>}, {pipeline_mode = #tpu.pipeline_mode<synchronous>, transform_indices = @transform_3, window_bounds = array<i64: 8, 8, 1>}, {transform_indices = @transform_4, window_bounds = array<i64: 128, 128>}]} {
    %c0 = arith.constant 0 : index
    %c0_0 = arith.constant 0 : index
    %0 = vector.load %arg1[%c0, %c0_0] : memref<128x128xf32, #tpu.memory_space<vmem>>, vector<128x128xf32>
    %c0_1 = arith.constant 0 : index
    %c0_2 = arith.constant 0 : index
    %1 = vector.load %arg2[%c0_1, %c0_2] : memref<512x128xf32, #tpu.memory_space<vmem>>, vector<512x128xf32>
    %cst = arith.constant dense<0.000000e+00> : vector<512x128xf32>
    %2 = tpu.matmul %1, %0, %cst {dimension_numbers = #tpu.dot_dimension_numbers<[1], [0], [0], [1], [0, 0, 1, 1], [], []>} : vector<512x128xf32>, vector<128x128xf32>, vector<512x128xf32> -> vector<512x128xf32>
    %3 = vector.shape_cast %2 : vector<512x128xf32> to vector<8x64x128xf32>
    %c0_3 = arith.constant 0 : index
    %c0_4 = arith.constant 0 : index
    %4 = vector.load %arg3[%c0_3, %c0_4] : memref<32x2xf32, #tpu.memory_space<vmem>>, vector<32x1xf32>
    %c0_5 = arith.constant 0 : index
    %c1 = arith.constant 1 : index
    %5 = vector.load %arg3[%c0_5, %c1] : memref<32x2xf32, #tpu.memory_space<vmem>>, vector<32x1xf32>
    %6 = vector.extract_strided_slice %3 {offsets = [0, 0, 0], sizes = [8, 32, 128], strides = [1, 1, 1]} : vector<8x64x128xf32> to vector<8x32x128xf32>
    %7 = vector.shape_cast %4 : vector<32x1xf32> to vector<1x32x1xf32>
    %8 = vector.broadcast %7 : vector<1x32x1xf32> to vector<8x32x128xf32>
    %9 = arith.addf %6, %8 : vector<8x32x128xf32>
    %10 = vector.extract_strided_slice %3 {offsets = [0, 32, 0], sizes = [8, 32, 128], strides = [1, 1, 1]} : vector<8x64x128xf32> to vector<8x32x128xf32>
    %11 = vector.shape_cast %9 : vector<8x32x128xf32> to vector<8x1x32x128xf32>
    %12 = vector.shape_cast %10 : vector<8x32x128xf32> to vector<1x8x32x128xf32>
    %13 = vector.broadcast %11 : vector<8x1x32x128xf32> to vector<8x8x32x128xf32>
    %14 = vector.broadcast %12 : vector<1x8x32x128xf32> to vector<8x8x32x128xf32>
    %15 = arith.addf %13, %14 : vector<8x8x32x128xf32>
    %cst_6 = arith.constant 2.000000e-01 : f32
    %16 = vector.broadcast %cst_6 : f32 to vector<8x8x32x128xf32>
    %17 = arith.mulf %16, %15 : vector<8x8x32x128xf32>
    %18 = arith.maximumf %15, %17 : vector<8x8x32x128xf32>
    %19 = vector.shape_cast %5 : vector<32x1xf32> to vector<1x1x32x1xf32>
    %20 = vector.broadcast %19 : vector<1x1x32x1xf32> to vector<8x8x32x128xf32>
    %21 = arith.mulf %18, %20 : vector<8x8x32x128xf32>
    %cst_7 = arith.constant dense<0.000000e+00> : vector<8x8x128xf32>
    %22 = vector.multi_reduction <add>, %21, %cst_7 [2] : vector<8x8x32x128xf32> to vector<8x8x128xf32>
    %c0_8 = arith.constant 0 : index
    %c0_9 = arith.constant 0 : index
    %c0_10 = arith.constant 0 : index
    %23 = vector.load %arg4[%c0_8, %c0_9, %c0_10] : memref<8x8x1xf32, #tpu.memory_space<vmem>>, vector<8x8x1xf32>
    %24 = vector.broadcast %23 : vector<8x8x1xf32> to vector<8x8x128xf32>
    %25 = arith.addf %22, %24 : vector<8x8x128xf32>
    %cst_11 = arith.constant dense<0xFF800000> : vector<8x128xf32>
    %26 = vector.multi_reduction <maximumf>, %25, %cst_11 [1] : vector<8x8x128xf32> to vector<8x128xf32>
    %27 = vector.shape_cast %26 : vector<8x128xf32> to vector<8x1x128xf32>
    %28 = vector.broadcast %27 : vector<8x1x128xf32> to vector<8x8x128xf32>
    %29 = arith.subf %25, %28 : vector<8x8x128xf32>
    %30 = math.exp %29 : vector<8x8x128xf32>
    %cst_12 = arith.constant dense<0.000000e+00> : vector<8x128xf32>
    %31 = vector.multi_reduction <add>, %30, %cst_12 [1] : vector<8x8x128xf32> to vector<8x128xf32>
    %32 = vector.shape_cast %31 : vector<8x128xf32> to vector<8x1x128xf32>
    %33 = vector.broadcast %32 : vector<8x1x128xf32> to vector<8x8x128xf32>
    %34 = arith.divf %30, %33 : vector<8x8x128xf32>
    %35 = vector.shape_cast %0 : vector<128x128xf32> to vector<8x16x128xf32>
    %36 = vector.shape_cast %34 : vector<8x8x128xf32> to vector<8x8x1x128xf32>
    %37 = vector.shape_cast %35 : vector<8x16x128xf32> to vector<1x8x16x128xf32>
    %38 = vector.broadcast %36 : vector<8x8x1x128xf32> to vector<8x8x16x128xf32>
    %39 = vector.broadcast %37 : vector<1x8x16x128xf32> to vector<8x8x16x128xf32>
    %40 = arith.mulf %38, %39 : vector<8x8x16x128xf32>
    %cst_13 = arith.constant dense<0.000000e+00> : vector<8x16x128xf32>
    %41 = vector.multi_reduction <add>, %40, %cst_13 [1] : vector<8x8x16x128xf32> to vector<8x16x128xf32>
    %42 = arith.negf %41 : vector<8x16x128xf32>
    %43 = math.exp %42 : vector<8x16x128xf32>
    %cst_14 = arith.constant 1.000000e+00 : f32
    %44 = vector.broadcast %cst_14 : f32 to vector<8x16x128xf32>
    %45 = arith.addf %44, %43 : vector<8x16x128xf32>
    %46 = arith.divf %44, %45 : vector<8x16x128xf32>
    %47 = vector.shape_cast %46 : vector<8x16x128xf32> to vector<128x128xf32>
    %c0_15 = arith.constant 0 : index
    %c0_16 = arith.constant 0 : index
    %48 = vector.load %arg5[%c0_15, %c0_16] : memref<128x128xf32, #tpu.memory_space<vmem>>, vector<128x128xf32>
    tpu.vector_store %arg5[%c0_15, %c0_16], %47 {strides = array<i32>} : memref<128x128xf32, #tpu.memory_space<vmem>>, vector<128x128xf32>,
    return
  }
  func.func @transform_0(%arg0: i32) -> (i32, i32) {
    %c0_i32 = arith.constant 0 : i32
    %c0_i32_0 = arith.constant 0 : i32
    return %c0_i32, %arg0 : i32, i32
  }
  func.func @transform_1(%arg0: i32) -> (i32, i32) {
    %c0_i32 = arith.constant 0 : i32
    %c0_i32_0 = arith.constant 0 : i32
    %c0_i32_1 = arith.constant 0 : i32
    return %c0_i32, %c0_i32_0 : i32, i32
  }
  func.func @transform_2(%arg0: i32) -> (i32, i32) {
    %c0_i32 = arith.constant 0 : i32
    %c0_i32_0 = arith.constant 0 : i32
    %c0_i32_1 = arith.constant 0 : i32
    return %c0_i32, %c0_i32_0 : i32, i32
  }
  func.func @transform_3(%arg0: i32) -> (i32, i32, i32) {
    %c0_i32 = arith.constant 0 : i32
    %c0_i32_0 = arith.constant 0 : i32
    %c0_i32_1 = arith.constant 0 : i32
    %c0_i32_2 = arith.constant 0 : i32
    return %c0_i32, %c0_i32_0, %c0_i32_1 : i32, i32, i32
  }
  func.func @transform_4(%arg0: i32) -> (i32, i32) {
    %c0_i32 = arith.constant 0 : i32
    %c0_i32_0 = arith.constant 0 : i32
    return %c0_i32, %arg0 : i32, i32
  }
}

</mosaic_0001>

<bundles_post_ra>
// kernel: tpu_custom_call.1
= control target key start
LH: loop header
LB: loop body
LE: loop exit
PB: predicated region body
PF: predicated region fallthrough
CT: control target
= control target key end

     0   :  { %9 = vsyncpa [#allocation3], 0  ;;  %s8327_s0 = inlined_call_operand.hbm [shape: f32[128,128], index: 0, kind: input, shape index: {}]   ;;  %s8328_s1 = inlined_call_operand.hbm [shape: f32[512,128], index: 1, kind: input, shape index: {}]   ;;  %s8329_s2 = inlined_call_operand.vmem [shape: f32[32,2], index: 2, kind: input, shape index: {}]   ;;  %s8330_s3 = inlined_call_operand.vmem [shape: f32[8,8,1], index: 3, kind: input, shape index: {}]   ;;  %s8331_s4 = inlined_call_operand.hbm [shape: f32[128,128], index: 4, kind: output, shape index: {}]  }
   0x1   :  { %10 = vsyncpa [#allocation6], 0 }
   0x2   :  { %11 = vsyncpa [#allocation4], 0  ;;  %s4314_s15 = smov [#allocation2]   ;;  %s4242_s19 = scalar_lea.hbm %s8327_s0, 2048 }
   0x3   :  { %s17_s16 = sshll.u32 %s4314_s15, 4  ;;  %p4243_p0 = scmp.ne.s32.totalorder %s8327_s0, %s4242_s19  ;;  %s18_s16 = int_to_ptr.vmem [resolvable:$true] %s17_s16 }
   0x4   :  { %p4246_p1 = scmp.lt.u32.totalorder %s4242_s19, %s8327_s0 }
   0x6   :  { %p4248_p2 = pnand %p4246_p1, %p4243_p0 }
   0x8   :  { %4251 = shalt.err (!%p4248_p2)
}
   0x9   :  { %s4252_s24 = scalar_lea.vmem %s18_s16, 2048  ;;  %p4257_p4 = scmp.lt.s32.totalorder %s18_s16, %s18_s16 }
   0xa   :  { %p4253_p3 = scmp.ne.s32.totalorder %s18_s16, %s4252_s24  ;;  %p4258_p5 = scmp.lt.s32.totalorder %s4252_s24, %s4252_s24 }
   0xc   :  { %p4259_p6 = por %p4258_p5, %p4257_p4 }
   0xe   :  { %p4260_p7 = pnand %p4259_p6, %p4253_p3 }
  0x10   :  { %4263 = shalt.err (!%p4260_p7)
}
  0x11   :  { %s4315_s25 = smov 128   ;;  %s4316_s26 = smov 8  }
  0x12   :  { %23 = dma.hbm_to_vmem [thread:$0]  %s8327_s0, 2048, %s18_s16, [#allocation3], %s4315_s25, %s4315_s25, %s4316_s26  }
  0x13   :  { %s4317_s29 = smov [#allocation5]   ;;  %s4264_s7 = scalar_lea.hbm %s8328_s1, 8192 }
  0x14   :  { %s29_s30 = sshll.u32 %s4317_s29, 4  ;;  %p4265_p8 = scmp.ne.s32.totalorder %s8328_s1, %s4264_s7  ;;  %s30_s30 = int_to_ptr.vmem [resolvable:$true] %s29_s30 }
  0x15   :  { %p4268_p9 = scmp.lt.u32.totalorder %s4264_s7, %s8328_s1 }
  0x17   :  { %p4270_p10 = pnand %p4268_p9, %p4265_p8 }
  0x19   :  { %4273 = shalt.err (!%p4270_p10)
}
  0x1a   :  { %s4274_s12 = scalar_lea.vmem %s30_s30, 8192  ;;  %p4279_p12 = scmp.lt.s32.totalorder %s30_s30, %s30_s30 }
  0x1b   :  { %p4275_p11 = scmp.ne.s32.totalorder %s30_s30, %s4274_s12  ;;  %p4280_p13 = scmp.lt.s32.totalorder %s4274_s12, %s4274_s12 }
  0x1d   :  { %p4281_p0 = por %p4280_p13, %p4279_p12 }
  0x1f   :  { %p4282_p1 = pnand %p4281_p0, %p4275_p11 }
  0x21   :  { %4285 = shalt.err (!%p4282_p1)
}
  0x22   :  { %35 = dma.hbm_to_vmem [thread:$0]  %s8328_s1, 8192, %s30_s30, [#allocation6], %s4315_s25, %s4315_s25, %s4316_s26  }
  0x23   :  { %4308 = dma.done.wait [#allocation3], 2048  }
  0x24   :  { %4309 = vsyncadd [#allocation3], 4294965248 }
  0x25   :  { %4310 = dma.done.wait [#allocation6], 8192  }
  0x26   :  { %4311 = vsyncadd [#allocation6], 4294959104  ;;  %v4318_v0 = vmov 0   ;;  %v46_v1 = vld [vmem:[#allocation2] sm:$0xff]  ;;  %v47_v2 = vld [vmem:[#allocation2 + $0x8] sm:$0xff]  ;;  %v4319_v39 = vmov 1  }
  0x27   :  { %4000 = vset.pattern.permute.xlu0 %v4318_v0  ;;  %4001 = vset.pattern.permute.xlu1 %v4318_v0  ;;  %v48_v3 = vld [vmem:[#allocation2 + $0x10] sm:$0xff]  ;;  %v3945_v4 = vpack.c.bf16 %v47_v2, %v46_v1  ;;  %v49_v5 = vld [vmem:[#allocation2 + $0x18] sm:$0xff]  ;;  %v50_v7 = vld [vmem:[#allocation2 + $0x20] sm:$0xff]  ;;  %vm2407_vm0 = vcmask 1040384   ;;  %vm2817_vm1 = vcmask 1041409   ;;  %vm2820_vm2 = vcmask 1042434  }
  0x28   :  { %v3949_v6 = vpack.c.bf16 %v49_v5, %v48_v3  ;;  %v51_v8 = vld [vmem:[#allocation2 + $0x28] sm:$0xff]  ;;  %v62_v10 = vld [vmem:[#allocation5] sm:$0xff]  ;;  %v52_v12 = vld [vmem:[#allocation2 + $0x30] sm:$0xff]  ;;  %vm2823_vm3 = vcmask 1043459   ;;  %vm2826_vm4 = vcmask 1044484   ;;  %vm2829_vm5 = vcmask 1045509  }
  0x29   :  { %3946 = vmatprep.subr.bf16.mxu0 %v3945_v4  ;;  %3977 = vmatprep.subr.bf16.mxu1 %v3945_v4  ;;  %v3953_v9 = vpack.c.bf16 %v51_v8, %v50_v7  ;;  %v94_v11 = vld [vmem:[#allocation5 + $0x100] sm:$0xff]  ;;  %v53_v13 = vld [vmem:[#allocation2 + $0x38] sm:$0xff]  ;;  %v55_v16 = vld [vmem:[#allocation2 + $0x48] sm:$0xff]  ;;  %vm2832_vm6 = vcmask 1046534   ;;  %vm2835_vm7 = vcmask 1047559  }
  0x2a   :  { %3948 = vmatpush3.bf16.msra.mxu0 %v3945_v4  ;;  %3985 = vmatpush3.bf16.msra.mxu1 %v3945_v4  ;;  %v3957_v14 = vpack.c.bf16 %v53_v13, %v52_v12  ;;  %v54_v15 = vld [vmem:[#allocation2 + $0x40] sm:$0xff]  ;;  %v56_v18 = vld [vmem:[#allocation2 + $0x50] sm:$0xff]  ;;  %v57_v19 = vld [vmem:[#allocation2 + $0x58] sm:$0xff] }
  0x2b   :  { %3950 = vmatprep.subr.bf16.mxu0 %v3949_v6  ;;  %3978 = vmatprep.subr.bf16.mxu1 %v3949_v6  ;;  %v3961_v17 = vpack.c.bf16 %v55_v16, %v54_v15  ;;  %v3965_v20 = vpack.c.bf16 %v57_v19, %v56_v18  ;;  %v58_v21 = vld [vmem:[#allocation2 + $0x60] sm:$0xff]  ;;  %v59_v22 = vld [vmem:[#allocation2 + $0x68] sm:$0xff]  ;;  %v60_v24 = vld [vmem:[#allocation2 + $0x70] sm:$0xff] }
  0x2c   :  { %3849 = vmatprep.mubr.f32.mxu0 %v62_v10  ;;  %3897 = vmatprep.mubr.f32.mxu1 %v94_v11  ;;  %v3969_v23 = vpack.c.bf16 %v59_v22, %v58_v21  ;;  %v61_v25 = vld [vmem:[#allocation2 + $0x78] sm:$0xff]  ;;  %v511_v27 = vld [vmem:[%s8329_s2] sm:$0xff]  ;;  %v513_v28 = vld [vmem:[%s8329_s2 + $0x10] sm:$0xff] }
  0x2d   :  { %v3973_v26 = vpack.c.bf16 %v61_v25, %v60_v24  ;;  %517 = vperm.xlu0 %4000, %v511_v27   ;;  %v512_v29 = vld [vmem:[%s8329_s2 + $0x8] sm:$0xff]  ;;  %527 = vperm.xlu1 %4001, %v513_v28   ;;  %v514_v30 = vld [vmem:[%s8329_s2 + $0x18] sm:$0xff]  ;;  %v64_v33 = vld [vmem:[#allocation5 + $0x10] sm:$0xff] }
  0x2e   :  { %3952 = vmatpush3.bf16.msra.mxu0 %v3949_v6  ;;  %3986 = vmatpush3.bf16.msra.mxu1 %v3949_v6  ;;  %v63_v31 = vld [vmem:[#allocation5 + $0x8] sm:$0xff]  ;;  %v96_v34 = vld [vmem:[#allocation5 + $0x110] sm:$0xff]  ;;  %v65_v35 = vld [vmem:[#allocation5 + $0x18] sm:$0xff] }
  0x2f   :  { %3954 = vmatprep.subr.bf16.mxu0 %v3953_v9  ;;  %3979 = vmatprep.subr.bf16.mxu1 %v3953_v9  ;;  %v95_v32 = vld [vmem:[#allocation5 + $0x108] sm:$0xff]  ;;  %v97_v36 = vld [vmem:[#allocation5 + $0x118] sm:$0xff]  ;;  %v66_v37 = vld [vmem:[#allocation5 + $0x20] sm:$0xff] }
  0x30   :  { %v98_v38 = vld [vmem:[#allocation5 + $0x120] sm:$0xff]  ;;  %v67_v40 = vld [vmem:[#allocation5 + $0x28] sm:$0xff]  ;;  %v68_v42 = vld [vmem:[#allocation5 + $0x30] sm:$0xff] }
  0x31   :  { %522 = vperm.xlu0 %4000, %v512_v29   ;;  %532 = vperm.xlu1 %4001, %v514_v30   ;;  %v99_v41 = vld [vmem:[#allocation5 + $0x128] sm:$0xff]  ;;  %v100_v43 = vld [vmem:[#allocation5 + $0x130] sm:$0xff]  ;;  %v69_v44 = vld [vmem:[#allocation5 + $0x38] sm:$0xff] }
  0x32   :  { %3956 = vmatpush3.bf16.msra.mxu0 %v3953_v9  ;;  %3987 = vmatpush3.bf16.msra.mxu1 %v3953_v9  ;;  %v101_v45 = vld [vmem:[#allocation5 + $0x138] sm:$0xff]  ;;  %v70_v46 = vld [vmem:[#allocation5 + $0x40] sm:$0xff]  ;;  %v2184_v48 = vld [vmem:[%s8330_s3 + $0x8] sm:$0xff] }
  0x33   :  { %3958 = vmatprep.subr.bf16.mxu0 %v3957_v14  ;;  %3980 = vmatprep.subr.bf16.mxu1 %v3957_v14  ;;  %v102_v47 = vld [vmem:[#allocation5 + $0x140] sm:$0xff]  ;;  %v71_v50 = vld [vmem:[#allocation5 + $0x48] sm:$0xff]  ;;  %v72_v52 = vld [vmem:[#allocation5 + $0x50] sm:$0xff] }
  0x34   :  { %v2183_v49 = vld [vmem:[%s8330_s3] sm:$0xff]  ;;  %v103_v51 = vld [vmem:[#allocation5 + $0x148] sm:$0xff]  ;;  %v104_v53 = vld [vmem:[#allocation5 + $0x150] sm:$0xff] }
  0x35   :  { %4002 = vset.pattern.permute.xlu0 %v4319_v39  ;;  %4003 = vset.pattern.permute.xlu1 %v4319_v39  ;;  %v2187_v54 = vld [vmem:[%s8330_s3 + $0x20] sm:$0xff]  ;;  %v2185_v55 = vld [vmem:[%s8330_s3 + $0x10] sm:$0xff]  ;;  %v73_v56 = vld [vmem:[#allocation5 + $0x58] sm:$0xff] }
  0x36   :  { %3960 = vmatpush3.bf16.msra.mxu0 %v3957_v14  ;;  %3988 = vmatpush3.bf16.msra.mxu1 %v3957_v14  ;;  %v105_v57 = vld [vmem:[#allocation5 + $0x158] sm:$0xff]  ;;  %v74_v58 = vld [vmem:[#allocation5 + $0x60] sm:$0xff]  ;;  %v2189_v60 = vld [vmem:[%s8330_s3 + $0x30] sm:$0xff] }
  0x37   :  { %3962 = vmatprep.subr.bf16.mxu0 %v3961_v17  ;;  %3981 = vmatprep.subr.bf16.mxu1 %v3961_v17  ;;  %v106_v59 = vld [vmem:[#allocation5 + $0x160] sm:$0xff]  ;;  %v2186_v61 = vld [vmem:[%s8330_s3 + $0x18] sm:$0xff]  ;;  %v75_v62 = vld [vmem:[#allocation5 + $0x68] sm:$0xff] }
  0x38   :  { %1336 = vperm.xlu0 %4002, %v511_v27   ;;  %1340 = vperm.xlu1 %4003, %v512_v29   ;;  %v107_v63 = vld [vmem:[#allocation5 + $0x168] sm:$0xff]  ;;  %v108_v1 = vld [vmem:[#allocation5 + $0x170] sm:$0xff]  ;;  %v77_v3 = vld [vmem:[#allocation5 + $0x78] sm:$0xff] }
  0x39   :  { %v2188_v2 = vld [vmem:[%s8330_s3 + $0x28] sm:$0xff]  ;;  %v109_v4 = vld [vmem:[#allocation5 + $0x178] sm:$0xff]  ;;  %v78_v5 = vld [vmem:[#allocation5 + $0x80] sm:$0xff] }
  0x3a   :  { %3964 = vmatpush3.bf16.msra.mxu0 %v3961_v17  ;;  %3989 = vmatpush3.bf16.msra.mxu1 %v3961_v17  ;;  %v110_v6 = vld [vmem:[#allocation5 + $0x180] sm:$0xff]  ;;  %v2190_v7 = vld [vmem:[%s8330_s3 + $0x38] sm:$0xff]  ;;  %v79_v8 = vld [vmem:[#allocation5 + $0x88] sm:$0xff]  ;;  %s4320_s3 = smov [#allocation7]  }
  0x3b   :  { %3966 = vmatprep.subr.bf16.mxu0 %v3965_v20  ;;  %3982 = vmatprep.subr.bf16.mxu1 %v3965_v20  ;;  %v111_v9 = vld [vmem:[#allocation5 + $0x188] sm:$0xff]  ;;  %v80_v10 = vld [vmem:[#allocation5 + $0x90] sm:$0xff]  ;;  %v81_v12 = vld [vmem:[#allocation5 + $0x98] sm:$0xff]  ;;  %s3708_s12 = sshll.u32 %s4320_s3, 4  ;;  %s3709_s12 = int_to_ptr.vmem [resolvable:$true] %s3708_s12 }
  0x3c   :  { %1348 = vperm.xlu0 %4002, %v514_v30   ;;  %1344 = vperm.xlu1 %4003, %v513_v28   ;;  %v112_v11 = vld [vmem:[#allocation5 + $0x190] sm:$0xff]  ;;  %v113_v13 = vld [vmem:[#allocation5 + $0x198] sm:$0xff]  ;;  %v82_v14 = vld [vmem:[#allocation5 + $0xa0] sm:$0xff]  ;;  %s4286_s0 = scalar_lea.vmem %s3709_s12, 2048  ;;  %p4291_p3 = scmp.lt.s32.totalorder %s3709_s12, %s3709_s12 }
  0x3d   :  { %v114_v15 = vld [vmem:[#allocation5 + $0x1a0] sm:$0xff]  ;;  %v83_v16 = vld [vmem:[#allocation5 + $0xa8] sm:$0xff]  ;;  %v84_v18 = vld [vmem:[#allocation5 + $0xb0] sm:$0xff]  ;;  %p4287_p2 = scmp.ne.s32.totalorder %s3709_s12, %s4286_s0  ;;  %p4292_p4 = scmp.lt.s32.totalorder %s4286_s0, %s4286_s0 }
  0x3e   :  { %3968 = vmatpush3.bf16.msra.mxu0 %v3965_v20  ;;  %3990 = vmatpush3.bf16.msra.mxu1 %v3965_v20  ;;  %v115_v17 = vld [vmem:[#allocation5 + $0x1a8] sm:$0xff]  ;;  %v116_v19 = vld [vmem:[#allocation5 + $0x1b0] sm:$0xff]  ;;  %v85_v20 = vld [vmem:[#allocation5 + $0xb8] sm:$0xff] }
  0x3f   :  { %3970 = vmatprep.subr.bf16.mxu0 %v3969_v23  ;;  %3983 = vmatprep.subr.bf16.mxu1 %v3969_v23  ;;  %v117_v21 = vld [vmem:[#allocation5 + $0x1b8] sm:$0xff]  ;;  %v86_v22 = vld [vmem:[#allocation5 + $0xc0] sm:$0xff]  ;;  %v87_v24 = vld [vmem:[#allocation5 + $0xc8] sm:$0xff]  ;;  %p4293_p5 = por %p4292_p4, %p4291_p3 }
  0x40   :  { %4005 = vset.pattern.permute.xlu0 %v4318_v0  ;;  %4004 = vset.pattern.permute.xlu1 %v4318_v0  ;;  %v76_v0 = vld [vmem:[#allocation5 + $0x70] sm:$0xff]  ;;  %v119_v25 = vld [vmem:[#allocation5 + $0x1c8] sm:$0xff]  ;;  %v89_v28 = vld [vmem:[#allocation5 + $0xd8] sm:$0xff] }
  0x41   :  { %2197 = vperm.xlu0 %4005, %v2184_v48   ;;  %2193 = vperm.xlu1 %4004, %v2183_v49   ;;  %v120_v27 = vld [vmem:[#allocation5 + $0x1d0] sm:$0xff]  ;;  %v121_v29 = vld [vmem:[#allocation5 + $0x1d8] sm:$0xff]  ;;  %v90_v30 = vld [vmem:[#allocation5 + $0xe0] sm:$0xff]  ;;  %p4294_p6 = pnand %p4293_p5, %p4287_p2 }
  0x42   :  { %3972 = vmatpush3.bf16.msra.mxu0 %v3969_v23  ;;  %3991 = vmatpush3.bf16.msra.mxu1 %v3969_v23  ;;  %v118_v23 = vld [vmem:[#allocation5 + $0x1c0] sm:$0xff] }
  0x43   :  { %3974 = vmatprep.subr.bf16.mxu0 %v3973_v26  ;;  %3984 = vmatprep.subr.bf16.mxu1 %v3973_v26 }
  0x45   :  { %2209 = vperm.xlu0 %4005, %v2187_v54   ;;  %2201 = vperm.xlu1 %4004, %v2185_v55  }
  0x46   :  { %3976 = vmatpush3.bf16.msra.mxu0 %v3973_v26  ;;  %3992 = vmatpush3.bf16.msra.mxu1 %v3973_v26  ;;  %v88_v26 = vld [vmem:[#allocation5 + $0xd0] sm:$0xff] }
  0x49   :  { %3850 = vmatmul.mubr.f32.vlgmr.msra.gmra.mrb[0].mxu0 %v63_v31  ;;  %3898 = vmatmul.mubr.f32.vlgmr.msra.gmra.mrb[0].mxu1 %v95_v32  ;;  %v122_v31 = vld [vmem:[#allocation5 + $0x1e0] sm:$0xff]  ;;  %v91_v32 = vld [vmem:[#allocation5 + $0xe8] sm:$0xff] }
  0x4a   :  { %3852 = vmatprep.mubr.f32.mxu0 %v64_v33  ;;  %3900 = vmatprep.mubr.f32.mxu1 %v96_v34  ;;  %v123_v33 = vld [vmem:[#allocation5 + $0x1e8] sm:$0xff]  ;;  %v92_v34 = vld [vmem:[#allocation5 + $0xf0] sm:$0xff] }
  0x4b   :  { %2217 = vperm.xlu0 %4005, %v2189_v60   ;;  %2205 = vperm.xlu1 %4004, %v2186_v61  }
  0x4d   :  { %3853 = vmatmul.mubr.f32.gmra.mrb[2].mxu0 %v65_v35  ;;  %3901 = vmatmul.mubr.f32.gmra.mrb[2].mxu1 %v97_v36  ;;  %v124_v35 = vld [vmem:[#allocation5 + $0x1f0] sm:$0xff]  ;;  %v93_v36 = vld [vmem:[#allocation5 + $0xf8] sm:$0xff] }
  0x4e   :  { %3855 = vmatprep.mubr.f32.mxu0 %v66_v37  ;;  %3903 = vmatprep.mubr.f32.mxu1 %v98_v38  ;;  %v125_v37 = vld [vmem:[#allocation5 + $0x1f8] sm:$0xff] }
  0x4f   :  { %2213 = vperm.xlu1 %4004, %v2188_v2  }
  0x51   :  { %3856 = vmatmul.mubr.f32.gmra.mrb[4].mxu0 %v67_v40  ;;  %3904 = vmatmul.mubr.f32.gmra.mrb[4].mxu1 %v99_v41 }
  0x52   :  { %3858 = vmatprep.mubr.f32.mxu0 %v68_v42  ;;  %3906 = vmatprep.mubr.f32.mxu1 %v100_v43 }
  0x53   :  { %2221 = vperm.xlu1 %4004, %v2190_v7  }
  0x55   :  { %3859 = vmatmul.mubr.f32.gmra.mrb[6].mxu0 %v69_v44  ;;  %3907 = vmatmul.mubr.f32.gmra.mrb[6].mxu1 %v101_v45 }
  0x56   :  { %3861 = vmatprep.mubr.f32.mxu0 %v70_v46  ;;  %3909 = vmatprep.mubr.f32.mxu1 %v102_v47 }
  0x59   :  { %3862 = vmatmul.mubr.f32.gmra.mrb[8].mxu0 %v71_v50  ;;  %3910 = vmatmul.mubr.f32.gmra.mrb[8].mxu1 %v103_v51 }
  0x5a   :  { %3864 = vmatprep.mubr.f32.mxu0 %v72_v52  ;;  %3912 = vmatprep.mubr.f32.mxu1 %v104_v53 }
  0x5d   :  { %3865 = vmatmul.mubr.f32.gmra.mrb[10].mxu0 %v73_v56  ;;  %3913 = vmatmul.mubr.f32.gmra.mrb[10].mxu1 %v105_v57 }
  0x5e   :  { %3867 = vmatprep.mubr.f32.mxu0 %v74_v58  ;;  %3915 = vmatprep.mubr.f32.mxu1 %v106_v59 }
  0x61   :  { %3868 = vmatmul.mubr.f32.gmra.mrb[12].mxu0 %v75_v62  ;;  %3916 = vmatmul.mubr.f32.gmra.mrb[12].mxu1 %v107_v63 }
  0x62   :  { %3870 = vmatprep.mubr.f32.mxu0 %v76_v0  ;;  %3918 = vmatprep.mubr.f32.mxu1 %v108_v1 }
  0x65   :  { %3871 = vmatmul.mubr.f32.gmra.mrb[14].mxu0 %v77_v3  ;;  %3919 = vmatmul.mubr.f32.gmra.mrb[14].mxu1 %v109_v4 }
  0x66   :  { %3873 = vmatprep.mubr.f32.mxu0 %v78_v5  ;;  %3921 = vmatprep.mubr.f32.mxu1 %v110_v6 }
  0x69   :  { %3874 = vmatmul.mubr.f32.gmra.mrb[16].mxu0 %v79_v8  ;;  %3922 = vmatmul.mubr.f32.gmra.mrb[16].mxu1 %v111_v9 }
  0x6a   :  { %3876 = vmatprep.mubr.f32.mxu0 %v80_v10  ;;  %3924 = vmatprep.mubr.f32.mxu1 %v112_v11 }
  0x6d   :  { %3877 = vmatmul.mubr.f32.gmra.mrb[18].mxu0 %v81_v12  ;;  %3925 = vmatmul.mubr.f32.gmra.mrb[18].mxu1 %v113_v13 }
  0x6e   :  { %3879 = vmatprep.mubr.f32.mxu0 %v82_v14  ;;  %3927 = vmatprep.mubr.f32.mxu1 %v114_v15 }
  0x71   :  { %3880 = vmatmul.mubr.f32.gmra.mrb[20].mxu0 %v83_v16  ;;  %3928 = vmatmul.mubr.f32.gmra.mrb[20].mxu1 %v115_v17 }
  0x72   :  { %3882 = vmatprep.mubr.f32.mxu0 %v84_v18  ;;  %3930 = vmatprep.mubr.f32.mxu1 %v116_v19 }
  0x75   :  { %3883 = vmatmul.mubr.f32.gmra.mrb[22].mxu0 %v85_v20  ;;  %3931 = vmatmul.mubr.f32.gmra.mrb[22].mxu1 %v117_v21 }
  0x76   :  { %3885 = vmatprep.mubr.f32.mxu0 %v86_v22  ;;  %3933 = vmatprep.mubr.f32.mxu1 %v118_v23 }
  0x79   :  { %3886 = vmatmul.mubr.f32.gmra.mrb[24].mxu0 %v87_v24  ;;  %3934 = vmatmul.mubr.f32.gmra.mrb[24].mxu1 %v119_v25 }
  0x7a   :  { %3888 = vmatprep.mubr.f32.mxu0 %v88_v26  ;;  %3936 = vmatprep.mubr.f32.mxu1 %v120_v27 }
  0x7d   :  { %3889 = vmatmul.mubr.f32.gmra.mrb[26].mxu0 %v89_v28  ;;  %3937 = vmatmul.mubr.f32.gmra.mrb[26].mxu1 %v121_v29 }
  0x7e   :  { %3891 = vmatprep.mubr.f32.mxu0 %v90_v30  ;;  %3939 = vmatprep.mubr.f32.mxu1 %v122_v31 }
  0x81   :  { %3892 = vmatmul.mubr.f32.gmra.mrb[28].mxu0 %v91_v32  ;;  %3940 = vmatmul.mubr.f32.gmra.mrb[28].mxu1 %v123_v33 }
  0x82   :  { %3894 = vmatprep.mubr.f32.mxu0 %v92_v34  ;;  %3942 = vmatprep.mubr.f32.mxu1 %v124_v35 }
  0x85   :  { %3895 = vmatmul.mubr.f32.gmra.mrb[30].mxu0 %v93_v36  ;;  %3943 = vmatmul.mubr.f32.gmra.mrb[30].mxu1 %v125_v37 }
  0xac   :  { %v4416_v38 = vpop.permute.xlu0 %517  ;;  %v4418_v39 = vpop.permute.xlu1 %527 }
  0xad   :  { %8738 = vst [vmem:[#allocation11_spill] sm:$0xff] %v4416_v38  ;;  %8739 = vst [vmem:[#allocation12_spill] sm:$0xff] %v4418_v39 }
  0xb0   :  { %v4420_v40 = vpop.permute.xlu0 %522  ;;  %v4422_v41 = vpop.permute.xlu1 %532 }
  0xb1   :  { %8740 = vst [vmem:[#allocation13_spill] sm:$0xff] %v4420_v40  ;;  %8741 = vst [vmem:[#allocation14_spill] sm:$0xff] %v4422_v41 }
  0xb7   :  { %v4424_v42 = vpop.permute.xlu0 %1336  ;;  %v4426_v43 = vpop.permute.xlu1 %1340 }
  0xb8   :  { %8742 = vst [vmem:[#allocation15_spill] sm:$0xff] %v4424_v42  ;;  %8743 = vst [vmem:[#allocation16_spill] sm:$0xff] %v4426_v43 }
  0xbb   :  { %v4428_v44 = vpop.permute.xlu0 %1348  ;;  %v4430_v45 = vpop.permute.xlu1 %1344 }
  0xbc   :  { %8744 = vst [vmem:[#allocation17_spill] sm:$0xff] %v4428_v44  ;;  %8745 = vst [vmem:[#allocation18_spill] sm:$0xff] %v4430_v45 }
  0xc0   :  { %v4432_v46 = vpop.permute.xlu0 %2197  ;;  %v4434_v47 = vpop.permute.xlu1 %2193 }
  0xc1   :  { %8746 = vst [vmem:[#allocation19_spill] sm:$0xff] %v4432_v46  ;;  %8747 = vst [vmem:[#allocation20_spill] sm:$0xff] %v4434_v47 }
  0xc4   :  { %v4443_v59 = vpop.permute.xlu0 %2209  ;;  %v4465_v16 = vpop.permute.xlu1 %2201 }
  0xc5   :  { %8748 = vst [vmem:[#allocation21_spill] sm:$0xff] %v4443_v59  ;;  %8751 = vst [vmem:[#allocation24_spill] sm:$0xff] %v4465_v16 }
 0x11c   :  { %v3851_v48 = vpop.f32.mrb[0].mxu0  ;;  %v3899_v49 = vpop.f32.mrb[0].mxu1 }
 0x11d   :  { %v192_v50 = vpop.f32.mrb[1].mxu0  ;;  %v352_v51 = vpop.f32.mrb[1].mxu1  ;;  %v4458_v12 = vadd.f32 %v3851_v48, %v4420_v40  ;;  %v4461_v13 = vadd.f32 %v3899_v49, %v4420_v40 }
 0x11e   :  { %v4468_v17 = vadd.f32 %v4416_v38, %v192_v50  ;;  %v4471_v18 = vadd.f32 %v4416_v38, %v352_v51 }
 0x11f   :  { %8749 = vst [vmem:[#allocation22_spill] sm:$0xff] %v4458_v12  ;;  %8750 = vst [vmem:[#allocation23_spill] sm:$0xff] %v4461_v13 }
 0x120   :  { %v3854_v60 = vpop.f32.mrb[2].mxu0  ;;  %v3902_v61 = vpop.f32.mrb[2].mxu1  ;;  %8752 = vst [vmem:[#allocation25_spill] sm:$0xff] %v4468_v17  ;;  %8753 = vst [vmem:[#allocation26_spill] sm:$0xff] %v4471_v18 }
 0x121   :  { %v202_v2 = vpop.f32.mrb[3].mxu0  ;;  %v362_v3 = vpop.f32.mrb[3].mxu1  ;;  %v4516_v33 = vadd.f32 %v3854_v60, %v4422_v41  ;;  %v4533_v60 = vadd.f32 %v3902_v61, %v4422_v41 }
 0x122   :  { %v4530_v51 = vadd.f32 %v4418_v39, %v202_v2  ;;  %v4546_v48 = vadd.f32 %v4418_v39, %v362_v3 }
 0x123   :  { %8766 = vst [vmem:[#allocation39_spill] sm:$0xff] %v4516_v33  ;;  %8770 = vst [vmem:[#allocation43_spill] sm:$0xff] %v4533_v60 }
 0x124   :  { %v4473_v19 = vpop.f32.mrb[4].mxu0  ;;  %v4475_v20 = vpop.f32.mrb[4].mxu1  ;;  %8769 = vst [vmem:[#allocation42_spill] sm:$0xff] %v4530_v51  ;;  %8775 = vst [vmem:[#allocation48_spill] sm:$0xff] %v4546_v48 }
 0x125   :  { %8754 = vst [vmem:[#allocation27_spill] sm:$0xff] %v4473_v19  ;;  %8755 = vst [vmem:[#allocation28_spill] sm:$0xff] %v4475_v20  ;;  %v4481_v23 = vadd.f32 %v4473_v19, %v4458_v12  ;;  %v4485_v24 = vadd.f32 %v4473_v19, %v4461_v13  ;;  %v4489_v25 = vadd.f32 %v4475_v20, %v4458_v12  ;;  %v4495_v27 = vpop.f32.mrb[5].mxu0  ;;  %v4497_v28 = vpop.f32.mrb[5].mxu1 }
 0x126   :  { %v4493_v26 = vadd.f32 %v4475_v20, %v4461_v13  ;;  %8760 = vst [vmem:[#allocation33_spill] sm:$0xff] %v4495_v27  ;;  %8761 = vst [vmem:[#allocation34_spill] sm:$0xff] %v4497_v28  ;;  %v4501_v29 = vadd.f32 %v4468_v17, %v4495_v27  ;;  %v4505_v30 = vadd.f32 %v4471_v18, %v4495_v27 }
 0x127   :  { %8756 = vst [vmem:[#allocation29_spill] sm:$0xff] %v4481_v23  ;;  %8757 = vst [vmem:[#allocation30_spill] sm:$0xff] %v4485_v24  ;;  %v4509_v31 = vadd.f32 %v4468_v17, %v4497_v28  ;;  %v4513_v32 = vadd.f32 %v4471_v18, %v4497_v28  ;;  %v4519_v34 = vmul.f32 0.2, %v4481_v23  ;;  %v4524_v37 = vmul.f32 0.2, %v4485_v24 }
 0x128   :  { %8758 = vst [vmem:[#allocation31_spill] sm:$0xff] %v4489_v25  ;;  %8759 = vst [vmem:[#allocation32_spill] sm:$0xff] %v4493_v26  ;;  %v4536_v15 = vmul.f32 0.2, %v4489_v25  ;;  %v4539_v58 = vmul.f32 0.2, %v4493_v26 }
 0x129   :  { %8762 = vst [vmem:[#allocation35_spill] sm:$0xff] %v4501_v29  ;;  %8763 = vst [vmem:[#allocation36_spill] sm:$0xff] %v4505_v30  ;;  %v4541_v6 = vpop.f32.mrb[6].mxu0  ;;  %v4543_v9 = vpop.f32.mrb[6].mxu1  ;;  %v4551_v50 = vmul.f32 0.2, %v4501_v29 }
 0x12a   :  { %8764 = vst [vmem:[#allocation37_spill] sm:$0xff] %v4509_v31  ;;  %8765 = vst [vmem:[#allocation38_spill] sm:$0xff] %v4513_v32  ;;  %v4554_v61 = vmul.f32 0.2, %v4505_v30  ;;  %v4556_v36 = vpop.f32.mrb[7].mxu0  ;;  %v4558_v35 = vpop.f32.mrb[7].mxu1  ;;  %v4565_v3 = vadd.f32 %v4541_v6, %v4516_v33  ;;  %v4569_v54 = vadd.f32 %v4541_v6, %v4533_v60  ;;  %v4573_v0 = vadd.f32 %v4543_v9, %v4516_v33 }
 0x12b   :  { %8767 = vst [vmem:[#allocation40_spill] sm:$0xff] %v4519_v34  ;;  %8768 = vst [vmem:[#allocation41_spill] sm:$0xff] %v4524_v37  ;;  %v4561_v21 = vmul.f32 0.2, %v4509_v31  ;;  %v4576_v14 = vmul.f32 0.2, %v4513_v32  ;;  %v4580_v49 = vadd.f32 %v4543_v9, %v4533_v60  ;;  %v4584_v57 = vadd.f32 %v4530_v51, %v4556_v36 }
 0x12c   :  { %8771 = vst [vmem:[#allocation44_spill] sm:$0xff] %v4536_v15  ;;  %8772 = vst [vmem:[#allocation45_spill] sm:$0xff] %v4539_v58  ;;  %v4588_v5 = vadd.f32 %v4546_v48, %v4556_v36  ;;  %v3863_v8 = vpop.f32.mrb[8].mxu0  ;;  %v3911_v22 = vpop.f32.mrb[8].mxu1  ;;  %v4595_v11 = vmul.f32 0.2, %v4565_v3  ;;  %v4599_v10 = vadd.f32 %v4530_v51, %v4558_v35  ;;  %v4610_v53 = vadd.f32 %v4546_v48, %v4558_v35 }
 0x12d   :  { %8773 = vst [vmem:[#allocation46_spill] sm:$0xff] %v4541_v6  ;;  %8774 = vst [vmem:[#allocation47_spill] sm:$0xff] %v4543_v9  ;;  %v4606_v4 = vmul.f32 0.2, %v4569_v54  ;;  %v4617_v56 = vmul.f32 0.2, %v4573_v0  ;;  %v4636_v26 = vadd.f32 %v3863_v8, %v4420_v40  ;;  %v4639_v37 = vadd.f32 %v3911_v22, %v4420_v40 }
 0x12e   :  { %8776 = vst [vmem:[#allocation49_spill] sm:$0xff] %v4551_v50  ;;  %8777 = vst [vmem:[#allocation50_spill] sm:$0xff] %v4554_v61  ;;  %v4620_v7 = vmul.f32 0.2, %v4580_v49  ;;  %v232_v63 = vpop.f32.mrb[9].mxu0  ;;  %v392_v2 = vpop.f32.mrb[9].mxu1 }
 0x12f   :  { %8778 = vst [vmem:[#allocation51_spill] sm:$0xff] %v4556_v36  ;;  %8779 = vst [vmem:[#allocation52_spill] sm:$0xff] %v4558_v35  ;;  %v4627_v16 = vmul.f32 0.2, %v4584_v57  ;;  %v4630_v62 = vmul.f32 0.2, %v4588_v5  ;;  %v4642_v1 = vadd.f32 %v4416_v38, %v232_v63  ;;  %v4648_v24 = vadd.f32 %v4416_v38, %v392_v2 }
 0x130   :  { %8780 = vst [vmem:[#allocation53_spill] sm:$0xff] %v4561_v21  ;;  %8781 = vst [vmem:[#allocation54_spill] sm:$0xff] %v4565_v3  ;;  %v3866_v55 = vpop.f32.mrb[10].mxu0  ;;  %v3914_v59 = vpop.f32.mrb[10].mxu1  ;;  %v4633_v58 = vmul.f32 0.2, %v4599_v10  ;;  %v4658_v22 = vadd.f32 %v4473_v19, %v4636_v26  ;;  %v4662_v63 = vadd.f32 %v4475_v20, %v4636_v26  ;;  %v4666_v30 = vadd.f32 %v4473_v19, %v4639_v37 }
 0x131   :  { %8782 = vst [vmem:[#allocation55_spill] sm:$0xff] %v4569_v54  ;;  %8783 = vst [vmem:[#allocation56_spill] sm:$0xff] %v4573_v0  ;;  %v242_v52 = vpop.f32.mrb[11].mxu0  ;;  %v4645_v32 = vmul.f32 0.2, %v4610_v53  ;;  %v4651_v61 = vadd.f32 %v3866_v55, %v4422_v41  ;;  %v4654_v8 = vadd.f32 %v3914_v59, %v4422_v41  ;;  %v4670_v2 = vadd.f32 %v4475_v20, %v4639_v37 }
 0x132   :  { %8784 = vst [vmem:[#allocation57_spill] sm:$0xff] %v4576_v14  ;;  %8785 = vst [vmem:[#allocation58_spill] sm:$0xff] %v4580_v49  ;;  %v402_v14 = vpop.f32.mrb[11].mxu1  ;;  %v4674_v55 = vadd.f32 %v4642_v1, %v4495_v27  ;;  %v4678_v59 = vadd.f32 %v4642_v1, %v4497_v28  ;;  %v4682_v41 = vadd.f32 %v4648_v24, %v4495_v27  ;;  %v4693_v3 = vmul.f32 0.2, %v4658_v22 }
 0x133   :  { %8786 = vst [vmem:[#allocation59_spill] sm:$0xff] %v4584_v57  ;;  %8787 = vst [vmem:[#allocation60_spill] sm:$0xff] %v4588_v5  ;;  %v4686_v47 = vadd.f32 %v4648_v24, %v4497_v28  ;;  %v4696_v15 = vmul.f32 0.2, %v4662_v63  ;;  %v4699_v25 = vmul.f32 0.2, %v4666_v30  ;;  %v4703_v27 = vadd.f32 %v4541_v6, %v4651_v61 }
 0x134   :  { %8788 = vst [vmem:[#allocation61_spill] sm:$0xff] %v4595_v11  ;;  %8789 = vst [vmem:[#allocation62_spill] sm:$0xff] %v4599_v10  ;;  %v4688_v38 = vpop.f32.mrb[12].mxu0  ;;  %v4690_v11 = vpop.f32.mrb[12].mxu1  ;;  %v4713_v34 = vadd.f32 %v4543_v9, %v4651_v61  ;;  %v4722_v28 = vmul.f32 0.2, %v4670_v2  ;;  %v4748_v31 = vadd.f32 %v4541_v6, %v4654_v8  ;;  %v4762_v54 = vadd.f32 %v4418_v39, %v242_v52 }
 0x135   :  { %8790 = vst [vmem:[#allocation63_spill] sm:$0xff] %v4606_v4  ;;  %8791 = vst [vmem:[#allocation64_spill] sm:$0xff] %v4610_v53  ;;  %v4724_v21 = vpop.f32.mrb[13].mxu0  ;;  %v4726_v4 = vpop.f32.mrb[13].mxu1  ;;  %v4733_v23 = vmul.f32 0.2, %v4674_v55  ;;  %v732_v6 = vadd.f32 %v4688_v38, %v4639_v37  ;;  %v588_v10 = vadd.f32 %v4690_v11, %v4458_v12 }
 0x136   :  { %8792 = vst [vmem:[#allocation65_spill] sm:$0xff] %v4617_v56  ;;  %8793 = vst [vmem:[#allocation66_spill] sm:$0xff] %v4620_v7  ;;  %v4736_v50 = vmul.f32 0.2, %v4678_v59  ;;  %v4752_v7 = vadd.f32 %v4543_v9, %v4654_v8  ;;  %v4759_v5 = vmul.f32 0.2, %v4682_v41  ;;  %v700_v9 = vadd.f32 %v4688_v38, %v4461_v13 }
 0x137   :  { %8794 = vst [vmem:[#allocation67_spill] sm:$0xff] %v4627_v16  ;;  %8795 = vst [vmem:[#allocation68_spill] sm:$0xff] %v4630_v62  ;;  %v4765_v62 = vadd.f32 %v4418_v39, %v402_v14  ;;  %v4779_v52 = vadd.f32 %v4762_v54, %v4556_v36  ;;  %v4783_v14 = vadd.f32 %v4762_v54, %v4558_v35  ;;  %v4809_v46 = vmul.f32 0.2, %v4713_v34 }
 0x138   :  { %8796 = vst [vmem:[#allocation69_spill] sm:$0xff] %v4633_v58  ;;  %8797 = vst [vmem:[#allocation70_spill] sm:$0xff] %v4636_v26  ;;  %v4738_v29 = vpop.f32.mrb[14].mxu0  ;;  %v4740_v49 = vpop.f32.mrb[14].mxu1  ;;  %v956_v58 = vmul.f32 0.2, %v700_v9 }
 0x139   :  { %8798 = vst [vmem:[#allocation71_spill] sm:$0xff] %v4639_v37  ;;  %8799 = vst [vmem:[#allocation72_spill] sm:$0xff] %v4642_v1  ;;  %v4756_v53 = vpop.f32.mrb[15].mxu1  ;;  %v4804_v57 = vmul.f32 0.2, %v4783_v14 }
 0x13a   :  { %8800 = vst [vmem:[#allocation73_spill] sm:$0xff] %v4645_v32  ;;  %8801 = vst [vmem:[#allocation74_spill] sm:$0xff] %v4648_v24  ;;  %v4754_v32 = vpop.f32.mrb[15].mxu0  ;;  %v4816_v16 = vmul.f32 0.2, %v4779_v52 }
 0x13b   :  { %8802 = vst [vmem:[#allocation75_spill] sm:$0xff] %v4651_v61  ;;  %8803 = vst [vmem:[#allocation76_spill] sm:$0xff] %v4654_v8 }
 0x13c   :  { %8804 = vst [vmem:[#allocation77_spill] sm:$0xff] %v4666_v30  ;;  %8805 = vst [vmem:[#allocation78_spill] sm:$0xff] %v4670_v2  ;;  %v4787_v30 = vadd.f32 %v4765_v62, %v4556_v36  ;;  %v4793_v2 = vpop.f32.mrb[16].mxu0  ;;  %v4795_v39 = vpop.f32.mrb[16].mxu1  ;;  %v1212_v36 = vmax.f32 %v700_v9, %v956_v58 }
 0x13d   :  { %8806 = vst [vmem:[#allocation79_spill] sm:$0xff] %v4688_v38  ;;  %8807 = vst [vmem:[#allocation80_spill] sm:$0xff] %v4690_v11  ;;  %v4811_v20 = vpop.f32.mrb[17].mxu0 }
 0x13e   :  { %8808 = vst [vmem:[#allocation81_spill] sm:$0xff] %v4699_v25  ;;  %8809 = vst [vmem:[#allocation82_spill] sm:$0xff] %v4722_v28  ;;  %v572_v25 = vadd.f32 %v4688_v38, %v4458_v12  ;;  %v4791_v28 = vadd.f32 %v4765_v62, %v4558_v35  ;;  %v620_v35 = vadd.f32 %v4690_v11, %v4636_v26  ;;  %v4813_v12 = vpop.f32.mrb[17].mxu1 }
 0x13f   :  { %8810 = vst [vmem:[#allocation83_spill] sm:$0xff] %v4724_v21  ;;  %8811 = vst [vmem:[#allocation84_spill] sm:$0xff] %v4726_v4  ;;  %v1484_v9 = vmul.f32 %v4426_v43, %v1212_v36 }
 0x140   :  { %8812 = vst [vmem:[#allocation85_spill] sm:$0xff] %v4738_v29  ;;  %8813 = vst [vmem:[#allocation86_spill] sm:$0xff] %v4740_v49  ;;  %v828_v56 = vmul.f32 0.2, %v572_v25  ;;  %v4822_v19 = vpop.f32.mrb[18].mxu0 }
 0x141   :  { %8814 = vst [vmem:[#allocation87_spill] sm:$0xff] %v4748_v31  ;;  %8815 = vst [vmem:[#allocation88_spill] sm:$0xff] %v4752_v7  ;;  %v604_v31 = vadd.f32 %v4688_v38, %v4636_v26  ;;  %v716_v38 = vadd.f32 %v4690_v11, %v4461_v13  ;;  %v748_v26 = vadd.f32 %v4690_v11, %v4639_v37  ;;  %v844_v13 = vmul.f32 0.2, %v588_v10 }
 0x142   :  { %8816 = vst [vmem:[#allocation89_spill] sm:$0xff] %v4754_v32  ;;  %8817 = vst [vmem:[#allocation90_spill] sm:$0xff] %v4756_v53  ;;  %v1084_v7 = vmax.f32 %v572_v25, %v828_v56  ;;  %v876_v37 = vmul.f32 0.2, %v620_v35  ;;  %v571_v56 = vadd.f32 %v4468_v17, %v4724_v21 }
 0x143   :  { %8818 = vst [vmem:[#allocation91_spill] sm:$0xff] %v4762_v54  ;;  %8819 = vst [vmem:[#allocation92_spill] sm:$0xff] %v4765_v62  ;;  %v860_v0 = vmul.f32 0.2, %v604_v31 }
 0x144   :  { %8820 = vst [vmem:[#allocation93_spill] sm:$0xff] %v4783_v14  ;;  %8821 = vst [vmem:[#allocation94_spill] sm:$0xff] %v4787_v30  ;;  %v988_v30 = vmul.f32 0.2, %v732_v6  ;;  %v1356_v25 = vmul.f32 %v4426_v43, %v1084_v7  ;;  %v1100_v7 = vmax.f32 %v588_v10, %v844_v13  ;;  %v827_v40 = vmul.f32 0.2, %v571_v56 }
 0x145   :  { %8822 = vst [vmem:[#allocation95_spill] sm:$0xff] %v4791_v28  ;;  %8823 = vst [vmem:[#allocation96_spill] sm:$0xff] %v4793_v2  ;;  %v4824_v2 = vpop.f32.mrb[18].mxu1 }
 0x146   :  { %8824 = vst [vmem:[#allocation97_spill] sm:$0xff] %v4795_v39  ;;  %8825 = vst [vmem:[#allocation98_spill] sm:$0xff] %v4804_v57  ;;  %v1116_v39 = vmax.f32 %v604_v31, %v860_v0  ;;  %v1244_v0 = vmax.f32 %v732_v6, %v988_v30  ;;  %v4832_v58 = vpop.f32.mrb[19].mxu1  ;;  %v603_v6 = vadd.f32 %v4642_v1, %v4724_v21 }
 0x147   :  { %8826 = vst [vmem:[#allocation99_spill] sm:$0xff] %v4811_v20  ;;  %8827 = vst [vmem:[#allocation100_spill] sm:$0xff] %v4813_v12  ;;  %v4830_v12 = vpop.f32.mrb[19].mxu0  ;;  %v972_v20 = vmul.f32 0.2, %v716_v38  ;;  %v4844_v36 = vpop.f32.mrb[20].mxu1  ;;  %v1372_v10 = vmul.f32 %v4426_v43, %v1100_v7  ;;  %v715_v7 = vadd.f32 %v4471_v18, %v4726_v4 }
 0x148   :  { %8828 = vst [vmem:[#allocation101_spill] sm:$0xff] %v4822_v19  ;;  %8829 = vst [vmem:[#allocation102_spill] sm:$0xff] %v4824_v2  ;;  %v1388_v31 = vmul.f32 %v4426_v43, %v1116_v39  ;;  %v1516_v19 = vmul.f32 %v4426_v43, %v1244_v0  ;;  %v1004_v2 = vmul.f32 0.2, %v748_v26  ;;  %v1132_v39 = vmax.f32 %v620_v35, %v876_v37  ;;  %v4850_v14 = vpop.f32.mrb[21].mxu1 }
 0x149   :  { %8830 = vst [vmem:[#allocation103_spill] sm:$0xff] %v4830_v12  ;;  %8831 = vst [vmem:[#allocation104_spill] sm:$0xff] %v4832_v58  ;;  %v1228_v30 = vmax.f32 %v716_v38, %v972_v20  ;;  %v699_v58 = vadd.f32 %v4471_v18, %v4724_v21  ;;  %v4842_v12 = vpop.f32.mrb[20].mxu0  ;;  %v731_v0 = vadd.f32 %v4648_v24, %v4724_v21  ;;  %v859_v28 = vmul.f32 0.2, %v603_v6 }
 0x14a   :  { %8832 = vst [vmem:[#allocation105_spill] sm:$0xff] %v4842_v12  ;;  %8833 = vst [vmem:[#allocation106_spill] sm:$0xff] %v4844_v36  ;;  %v1260_v11 = vmax.f32 %v748_v26, %v1004_v2  ;;  %v4848_v57 = vpop.f32.mrb[21].mxu0  ;;  %v1404_v38 = vmul.f32 %v4426_v43, %v1132_v39  ;;  %v1083_v26 = vmax.f32 %v571_v56, %v827_v40  ;;  %v4864_v39 = vpop.f32.mrb[22].mxu1 }
 0x14b   :  { %8834 = vst [vmem:[#allocation107_spill] sm:$0xff] %v4848_v57  ;;  %8835 = vst [vmem:[#allocation108_spill] sm:$0xff] %v4850_v14  ;;  %v1500_v13 = vmul.f32 %v4426_v43, %v1228_v30  ;;  %v955_v20 = vmul.f32 0.2, %v699_v58  ;;  %v987_v37 = vmul.f32 0.2, %v731_v0  ;;  %v1115_v2 = vmax.f32 %v603_v6, %v859_v28 }
 0x14c   :  { %v1532_v35 = vmul.f32 %v4426_v43, %v1260_v11  ;;  %v587_v12 = vadd.f32 %v4468_v17, %v4726_v4  ;;  %v619_v57 = vadd.f32 %v4642_v1, %v4726_v4  ;;  %v4862_v14 = vpop.f32.mrb[22].mxu0  ;;  %8837 = vst [vmem:[#allocation110_spill] sm:$0xff] %v4864_v39  ;;  %v1355_v11 = vmul.f32 %v4424_v42, %v1083_v26 }
 0x14d   :  { %v1211_v36 = vmax.f32 %v699_v58, %v955_v20  ;;  %8836 = vst [vmem:[#allocation109_spill] sm:$0xff] %v4862_v14  ;;  %v1243_v30 = vmax.f32 %v731_v0, %v987_v37  ;;  %v1387_v40 = vmul.f32 %v4424_v42, %v1115_v2  ;;  %v747_v28 = vadd.f32 %v4648_v24, %v4726_v4 }
 0x14e   :  { %v843_v58 = vmul.f32 0.2, %v587_v12  ;;  %v875_v6 = vmul.f32 0.2, %v619_v57  ;;  %v971_v20 = vmul.f32 0.2, %v715_v7  ;;  %v4872_v18 = vadd.f32 %v1356_v25, %v1355_v11 }
 0x14f   :  { %v1483_v56 = vmul.f32 %v4424_v42, %v1211_v36  ;;  %v1515_v1 = vmul.f32 %v4424_v42, %v1243_v30  ;;  %v4874_v14 = vadd.f32 %v1388_v31, %v1387_v40  ;;  %v1003_v39 = vmul.f32 0.2, %v747_v28 }
 0x150   :  { %v1099_v37 = vmax.f32 %v587_v12, %v843_v58  ;;  %v1131_v26 = vmax.f32 %v619_v57, %v875_v6  ;;  %v1227_v2 = vmax.f32 %v715_v7, %v971_v20  ;;  %v574_v36 = vadd.f32 %v4738_v29, %v4516_v33 }
 0x151   :  { %v4876_v0 = vadd.f32 %v1484_v9, %v1483_v56  ;;  %v4878_v17 = vadd.f32 %v1516_v19, %v1515_v1  ;;  %v1259_v24 = vmax.f32 %v747_v28, %v1003_v39  ;;  %v606_v4 = vadd.f32 %v4738_v29, %v4651_v61 }
 0x152   :  { %v1371_v25 = vmul.f32 %v4424_v42, %v1099_v37  ;;  %v1403_v31 = vmul.f32 %v4424_v42, %v1131_v26  ;;  %v1499_v30 = vmul.f32 %v4424_v42, %v1227_v2  ;;  %v702_v12 = vadd.f32 %v4738_v29, %v4533_v60 }
 0x153   :  { %v1531_v57 = vmul.f32 %v4424_v42, %v1259_v24  ;;  %v734_v1 = vadd.f32 %v4738_v29, %v4654_v8  ;;  %v830_v19 = vmul.f32 0.2, %v574_v36  ;;  %v862_v9 = vmul.f32 0.2, %v606_v4 }
 0x154   :  { %v4892_v7 = vadd.f32 %v1372_v10, %v1371_v25  ;;  %v4894_v39 = vadd.f32 %v1404_v38, %v1403_v31  ;;  %v4896_v11 = vadd.f32 %v1500_v13, %v1499_v30  ;;  %v958_v40 = vmul.f32 0.2, %v702_v12 }
 0x155   :  { %v4898_v28 = vadd.f32 %v1532_v35, %v1531_v57  ;;  %v990_v56 = vmul.f32 0.2, %v734_v1  ;;  %v1086_v58 = vmax.f32 %v574_v36, %v830_v19  ;;  %v1118_v6 = vmax.f32 %v606_v4, %v862_v9 }
 0x156   :  { %v1214_v20 = vmax.f32 %v702_v12, %v958_v40  ;;  %v590_v24 = vadd.f32 %v4740_v49, %v4516_v33  ;;  %v622_v37 = vadd.f32 %v4740_v49, %v4651_v61  ;;  %v718_v10 = vadd.f32 %v4740_v49, %v4533_v60 }
 0x157   :  { %v1246_v38 = vmax.f32 %v734_v1, %v990_v56  ;;  %v1358_v13 = vmul.f32 %v4428_v44, %v1086_v58  ;;  %v1390_v26 = vmul.f32 %v4428_v44, %v1118_v6  ;;  %v750_v35 = vadd.f32 %v4740_v49, %v4654_v8 }
 0x158   :  { %v1486_v4 = vmul.f32 %v4428_v44, %v1214_v20  ;;  %v846_v2 = vmul.f32 0.2, %v590_v24  ;;  %v878_v36 = vmul.f32 0.2, %v622_v37  ;;  %v974_v25 = vmul.f32 0.2, %v718_v10 }
 0x159   :  { %v1518_v31 = vmul.f32 %v4428_v44, %v1246_v38  ;;  %v1006_v30 = vmul.f32 0.2, %v750_v35  ;;  %v573_v12 = vadd.f32 %v4530_v51, %v4754_v32  ;;  %v605_v57 = vadd.f32 %v4762_v54, %v4754_v32 }
 0x15a   :  { %v1102_v1 = vmax.f32 %v590_v24, %v846_v2  ;;  %v1134_v19 = vmax.f32 %v622_v37, %v878_v36  ;;  %v1230_v9 = vmax.f32 %v718_v10, %v974_v25  ;;  %v701_v40 = vadd.f32 %v4546_v48, %v4754_v32 }
 0x15b   :  { %v1262_v56 = vmax.f32 %v750_v35, %v1006_v30  ;;  %v733_v58 = vadd.f32 %v4765_v62, %v4754_v32  ;;  %v829_v6 = vmul.f32 0.2, %v573_v12  ;;  %v861_v20 = vmul.f32 0.2, %v605_v57 }
 0x15c   :  { %v1374_v38 = vmul.f32 %v4428_v44, %v1102_v1  ;;  %v1406_v8 = vmul.f32 %v4428_v44, %v1134_v19  ;;  %v1502_v60 = vmul.f32 %v4428_v44, %v1230_v9  ;;  %v957_v61 = vmul.f32 0.2, %v701_v40 }
 0x15d   :  { %v1534_v24 = vmul.f32 %v4428_v44, %v1262_v56  ;;  %v989_v37 = vmul.f32 0.2, %v733_v58  ;;  %v1085_v10 = vmax.f32 %v573_v12, %v829_v6  ;;  %v1117_v2 = vmax.f32 %v605_v57, %v861_v20 }
 0x15e   :  { %v1213_v36 = vmax.f32 %v701_v40, %v957_v61  ;;  %v589_v35 = vadd.f32 %v4530_v51, %v4756_v53  ;;  %v621_v25 = vadd.f32 %v4762_v54, %v4756_v53  ;;  %v717_v30 = vadd.f32 %v4546_v48, %v4756_v53 }
 0x15f   :  { %v1245_v1 = vmax.f32 %v733_v58, %v989_v37  ;;  %v1357_v19 = vmul.f32 %v4430_v45, %v1085_v10  ;;  %v1389_v9 = vmul.f32 %v4430_v45, %v1117_v2  ;;  %v749_v56 = vadd.f32 %v4765_v62, %v4756_v53 }
 0x160   :  { %v1485_v12 = vmul.f32 %v4430_v45, %v1213_v36  ;;  %v845_v61 = vmul.f32 0.2, %v589_v35  ;;  %v877_v57 = vmul.f32 0.2, %v621_v25  ;;  %v973_v40 = vmul.f32 0.2, %v717_v30 }
 0x161   :  { %v1517_v6 = vmul.f32 %v4430_v45, %v1245_v1  ;;  %v1617_v20 = vadd.f32 %v4872_v18, %v1357_v19  ;;  %v1689_v54 = vadd.f32 %v4874_v14, %v1389_v9  ;;  %v1005_v48 = vmul.f32 0.2, %v749_v56 }
 0x162   :  { %v1905_v58 = vadd.f32 %v4876_v0, %v1485_v12  ;;  %v1101_v37 = vmax.f32 %v589_v35, %v845_v61  ;;  %v1133_v10 = vmax.f32 %v621_v25, %v877_v57  ;;  %v1229_v2 = vmax.f32 %v717_v30, %v973_v40  ;;  %v8848_v30 = vld [vmem:[#allocation98_spill] sm:$0xff]  ;;  %v8850_v61 = vld [vmem:[#allocation95_spill] sm:$0xff]  ;;  %v8852_v40 = vld [vmem:[#allocation13_spill] sm:$0xff] }
 0x163   :  { %v4939_v51 = vadd.f32 %v1617_v20, %v1358_v13  ;;  %v1690_v62 = vadd.f32 %v1689_v54, %v1390_v26  ;;  %v1977_v36 = vadd.f32 %v4878_v17, %v1517_v6  ;;  %v1261_v33 = vmax.f32 %v749_v56, %v1005_v48  ;;  %v8853_v6 = vld [vmem:[#allocation96_spill] sm:$0xff] }
 0x164   :  { %v4942_v53 = vadd.f32 %v1905_v58, %v1486_v4  ;;  %v1373_v1 = vmul.f32 %v4430_v45, %v1101_v37  ;;  %v1405_v18 = vmul.f32 %v4430_v45, %v1133_v10  ;;  %v1501_v14 = vmul.f32 %v4430_v45, %v1229_v2 }
 0x165   :  { %v4947_v19 = vadd.f32 %v1977_v36, %v1518_v31  ;;  %v1533_v0 = vmul.f32 %v4430_v45, %v1261_v33  ;;  %v858_v35 = vmul.f32 0.2, %v4703_v27  ;;  %v1113_v54 = vmax.f32 %v4779_v52, %v4816_v16  ;;  %v8855_v36 = vld [vmem:[#allocation27_spill] sm:$0xff] }
 0x166   :  { %v1653_v17 = vadd.f32 %v4892_v7, %v1373_v1  ;;  %v1725_v48 = vadd.f32 %v4894_v39, %v1405_v18  ;;  %v1941_v13 = vadd.f32 %v4896_v11, %v1501_v14  ;;  %v1130_v26 = vmax.f32 %v4713_v34, %v4809_v46  ;;  %v4968_v7 = vpop.f32.mrb[23].mxu0  ;;  %v4970_v39 = vpop.f32.mrb[23].mxu1  ;;  %v8856_v18 = vld [vmem:[#allocation79_spill] sm:$0xff] }
 0x167   :  { %8838 = vst [vmem:[#allocation111_spill] sm:$0xff] %v4947_v19  ;;  %v2013_v4 = vadd.f32 %v4898_v28, %v1533_v0  ;;  %v1114_v31 = vmax.f32 %v4703_v27, %v858_v35  ;;  %v8839_v33 = vmax.f32 %v4674_v55, %v4733_v23  ;;  %v8840_v16 = vmax.f32 %v4658_v22, %v4693_v3 }
 0x168   :  { %8841 = vst [vmem:[#allocation112_spill] sm:$0xff] %v4968_v7  ;;  %8842 = vst [vmem:[#allocation113_spill] sm:$0xff] %v4970_v39  ;;  %v4972_v11 = vadd.f32 %v1653_v17, %v1374_v38  ;;  %v1726_v46 = vadd.f32 %v1725_v48, %v1406_v8  ;;  %v4974_v34 = vadd.f32 %v1941_v13, %v1502_v60  ;;  %v4978_v23 = vmul.f32 0.2, %v4686_v47  ;;  %v8847_v8 = vld [vmem:[#allocation93_spill] sm:$0xff]  ;;  %v8858_v48 = vld [vmem:[#allocation80_spill] sm:$0xff] }
 0x169   :  { %v1383_v25 = vmul.f32 %v4424_v42, %v8839_v33  ;;  %v1384_v52 = vmul.f32 %v4426_v43, %v8840_v16  ;;  %v1385_v27 = vmul.f32 %v4430_v45, %v1113_v54  ;;  %v4980_v55 = vadd.f32 %v2013_v4, %v1534_v24  ;;  %v8857_v54 = vld [vmem:[#allocation28_spill] sm:$0xff] }
 0x16a   :  { %8843 = vst [vmem:[#allocation114_spill] sm:$0xff] %v4978_v23  ;;  %v8845_v3 = vmax.f32 %v4678_v59, %v4736_v50  ;;  %v8846_v28 = vmax.f32 %v4662_v63, %v4696_v15  ;;  %v8849_v9 = vmax.f32 %v8847_v8, %v8848_v30  ;;  %v1691_v12 = vrot.slane %v1690_v62, 4  ;;  %v8862_v30 = vld [vmem:[#allocation94_spill] sm:$0xff] }
 0x16b   :  { %8844 = vst [vmem:[#allocation115_spill] sm:$0xff] %v4980_v55  ;;  %v1679_v24 = vadd.f32 %v1384_v52, %v1383_v25  ;;  %v4997_v57 = vmul.f32 0.2, %v8850_v61  ;;  %v1727_v59 = vrot.slane %v1726_v46, 4  ;;  %v5001_v15 = vadd.f32 %v8853_v6, %v8852_v40 }
 0x16c   :  { %v1399_v22 = vmul.f32 %v4424_v42, %v8845_v3  ;;  %v1400_v38 = vmul.f32 %v4426_v43, %v8846_v28  ;;  %v1401_v56 = vmul.f32 %v4430_v45, %v8849_v9  ;;  %v1386_v63 = vmul.f32 %v4428_v44, %v1114_v31 }
 0x16d   :  { %8851 = vst [vmem:[#allocation93_spill] sm:$0xff] %v4997_v57  ;;  %8854 = vst [vmem:[#allocation98_spill] sm:$0xff] %v5001_v15  ;;  %v1402_v20 = vmul.f32 %v4428_v44, %v1130_v26  ;;  %v1680_v58 = vadd.f32 %v1679_v24, %v1385_v27  ;;  %v1692_v37 = vadd.f32 %v1691_v12, %v1690_v62  ;;  %v5023_v9 = vmul.f32 0.2, %v8862_v30 }
 0x16e   :  { %v1715_v50 = vadd.f32 %v1400_v38, %v1399_v22  ;;  %v1728_v2 = vadd.f32 %v1727_v59, %v1726_v46  ;;  %v632_v1 = vadd.f32 %v8855_v36, %v5001_v15  ;;  %v636_v14 = vadd.f32 %v8856_v18, %v5001_v15  ;;  %v8859_v22 = vld [vmem:[#allocation97_spill] sm:$0xff]  ;;  %v8861_v38 = vld [vmem:[#allocation88_spill] sm:$0xff] }
 0x16f   :  { %v1681_v0 = vadd.f32 %v1680_v58, %v1386_v63  ;;  %v1693_v35 = vrot.slane %v1692_v37, 2  ;;  %v648_v17 = vadd.f32 %v8857_v54, %v5001_v15  ;;  %v652_v13 = vadd.f32 %v8858_v48, %v5001_v15  ;;  %v5027_v63 = vpop.f32.mrb[24].mxu0 }
 0x170   :  { %v1716_v10 = vadd.f32 %v1715_v50, %v1401_v56  ;;  %v1729_v26 = vrot.slane %v1728_v2, 2  ;;  %v888_v31 = vmul.f32 0.2, %v632_v1  ;;  %v892_v62 = vmul.f32 0.2, %v636_v14  ;;  %8863 = vst [vmem:[#allocation97_spill] sm:$0xff] %v5027_v63 }
 0x171   :  { %v1682_v33 = vrot.slane %v1681_v0, 4  ;;  %v1694_v25 = vadd.f32 %v1693_v35, %v1692_v37  ;;  %v904_v16 = vmul.f32 0.2, %v648_v17  ;;  %v908_v52 = vmul.f32 0.2, %v652_v13 }
 0x172   :  { %v1717_v4 = vadd.f32 %v1716_v10, %v1402_v20  ;;  %v1730_v3 = vadd.f32 %v1729_v26, %v1728_v2  ;;  %v5017_v28 = vadd.f32 %v8859_v22, %v8852_v40  ;;  %v5020_v8 = vmul.f32 0.2, %v8861_v38  ;;  %v8874_v22 = vld [vmem:[#allocation29_spill] sm:$0xff] }
 0x173   :  { %v1683_v56 = vadd.f32 %v1682_v33, %v1681_v0  ;;  %v1695_v24 = vrot.slane %v1694_v25, 1  ;;  %v1144_v59 = vmax.f32 %v632_v1, %v888_v31  ;;  %v1148_v6 = vmax.f32 %v636_v14, %v892_v62  ;;  %v8901_v40 = vld [vmem:[#allocation33_spill] sm:$0xff] }
 0x174   :  { %v1718_v27 = vrot.slane %v1717_v4, 4  ;;  %8860 = vst [vmem:[#allocation96_spill] sm:$0xff] %v5017_v28  ;;  %v1160_v37 = vmax.f32 %v648_v17, %v904_v16  ;;  %v1164_v10 = vmax.f32 %v652_v13, %v908_v52  ;;  %v1731_v35 = vrot.slane %v1730_v3, 1  ;;  %v8872_v16 = vld [vmem:[#allocation49_spill] sm:$0xff] }
 0x175   :  { %v1684_v20 = vrot.slane %v1683_v56, 2  ;;  %v1696_v58 = vadd.f32 %v1695_v24, %v1694_v25  ;;  %v5031_v26 = vadd.f32 %v8855_v36, %v5017_v28  ;;  %v5035_v0 = vadd.f32 %v8856_v18, %v5017_v28  ;;  %v8871_v25 = vld [vmem:[#allocation35_spill] sm:$0xff]  ;;  %v8891_v18 = vld [vmem:[#allocation61_spill] sm:$0xff] }
 0x176   :  { %v1719_v50 = vadd.f32 %v1718_v27, %v1717_v4  ;;  %v8866_v4 = vld [vmem:[#allocation19_spill] sm:$0xff]  ;;  %v5043_v31 = vadd.f32 %v8857_v54, %v5017_v28  ;;  %v5047_v17 = vadd.f32 %v8858_v48, %v5017_v28  ;;  %v5050_v62 = vmul.f32 %v4426_v43, %v1144_v59  ;;  %v8888_v54 = vld [vmem:[#allocation69_spill] sm:$0xff] }
 0x177   :  { %8864 = vst [vmem:[#allocation88_spill] sm:$0xff] %v5031_v26  ;;  %8865 = vst [vmem:[#allocation94_spill] sm:$0xff] %v5035_v0  ;;  %v1685_v33 = vadd.f32 %v1684_v20, %v1683_v56  ;;  %v8867_v1 = vrot.slane %v8866_v4, 1  ;;  %v8873_v52 = vmax.f32 %v8871_v25, %v8872_v16  ;;  %v8875_v56 = vld [vmem:[#allocation40_spill] sm:$0xff]  ;;  %v5064_v12 = vmul.f32 %v4426_v43, %v1160_v37  ;;  %v8877_v25 = vld [vmem:[#allocation59_spill] sm:$0xff] }
 0x178   :  { %v1720_v2 = vrot.slane %v1719_v50, 2  ;;  %8869 = vst [vmem:[#allocation117_spill] sm:$0xff] %v5043_v31  ;;  %8870 = vst [vmem:[#allocation118_spill] sm:$0xff] %v5047_v17  ;;  %v8876_v24 = vmax.f32 %v8874_v22, %v8875_v56  ;;  %v8878_v16 = vld [vmem:[#allocation67_spill] sm:$0xff]  ;;  %v8880_v22 = vld [vmem:[#allocation37_spill] sm:$0xff] }
 0x179   :  { %v5039_v14 = vadd.f32 %v8867_v1, %v1696_v58  ;;  %v1351_v27 = vmul.f32 %v4424_v42, %v8873_v52  ;;  %v1686_v58 = vrot.slane %v1685_v33, 1  ;;  %v5061_v1 = vmul.f32 %v4426_v43, %v1148_v6  ;;  %v8881_v56 = vld [vmem:[#allocation53_spill] sm:$0xff]  ;;  %v8884_v26 = vld [vmem:[#allocation31_spill] sm:$0xff] }
 0x17a   :  { %v1721_v13 = vadd.f32 %v1720_v2, %v1719_v50  ;;  %v1352_v20 = vmul.f32 %v4426_v43, %v8876_v24  ;;  %v5067_v50 = vmul.f32 %v4426_v43, %v1164_v10  ;;  %v1732_v2 = vadd.f32 %v1731_v35, %v1730_v3  ;;  %v8885_v10 = vld [vmem:[#allocation44_spill] sm:$0xff]  ;;  %v8887_v35 = vld [vmem:[#allocation62_spill] sm:$0xff]  ;;  %v8898_v36 = vld [vmem:[#allocation11_spill] sm:$0xff] }
 0x17b   :  { %8868 = vst [vmem:[#allocation116_spill] sm:$0xff] %v5039_v14  ;;  %v8879_v52 = vmax.f32 %v8877_v25, %v8878_v16  ;;  %v8882_v24 = vmax.f32 %v8880_v22, %v8881_v56  ;;  %v1687_v6 = vadd.f32 %v1686_v58, %v1685_v33  ;;  %v5079_v37 = vsel %vm2407_vm0, %v5039_v14, -inf }
 0x17c   :  { %v1722_v59 = vrot.slane %v1721_v13, 1  ;;  %8883 = vst [vmem:[#allocation35_spill] sm:$0xff] %v5079_v37  ;;  %v8886_v48 = vmax.f32 %v8884_v26, %v8885_v10  ;;  %v8889_v25 = vmax.f32 %v8887_v35, %v8888_v54  ;;  %v1607_v33 = vadd.f32 %v1352_v20, %v1351_v27  ;;  %v8894_v26 = vld [vmem:[#allocation56_spill] sm:$0xff] }
 0x17d   :  { %v1353_v46 = vmul.f32 %v4430_v45, %v8879_v52  ;;  %v1367_v60 = vmul.f32 %v4424_v42, %v8882_v24  ;;  %v8890_v52 = vld [vmem:[#allocation54_spill] sm:$0xff]  ;;  %v1619_v58 = vrot.slane %v4939_v51, 4  ;;  %v1655_v24 = vrot.slane %v4972_v11, 4 }
 0x17e   :  { %v1368_v3 = vmul.f32 %v4426_v43, %v8886_v48  ;;  %v1369_v16 = vmul.f32 %v4430_v45, %v8889_v25  ;;  %v8892_v22 = vmax.f32 %v8890_v52, %v8891_v18  ;;  %v5096_v14 = vadd.f32 %v8866_v4, %v1687_v6  ;;  %v8895_v48 = vld [vmem:[#allocation65_spill] sm:$0xff]  ;;  %v8897_v25 = vld [vmem:[#allocation99_spill] sm:$0xff] }
 0x17f   :  { %v8896_v10 = vmax.f32 %v8894_v26, %v8895_v48  ;;  %v5104_v63 = vadd.f32 %v8898_v36, %v8897_v25  ;;  %v1723_v18 = vadd.f32 %v1722_v59, %v1721_v13  ;;  %v1608_v52 = vadd.f32 %v1607_v33, %v1353_v46  ;;  %v8902_v59 = vld [vmem:[#allocation100_spill] sm:$0xff] }
 0x180   :  { %v1354_v56 = vmul.f32 %v4428_v44, %v8892_v22  ;;  %8893 = vst [vmem:[#allocation49_spill] sm:$0xff] %v5096_v14  ;;  %v1643_v35 = vadd.f32 %v1368_v3, %v1367_v60  ;;  %v1620_v27 = vadd.f32 %v1619_v58, %v4939_v51  ;;  %v1656_v20 = vadd.f32 %v1655_v24, %v4972_v11  ;;  %v8904_v58 = vld [vmem:[#allocation34_spill] sm:$0xff]  ;;  %v8905_v24 = vld [vmem:[#allocation84_spill] sm:$0xff] }
 0x181   :  { %v1370_v54 = vmul.f32 %v4428_v44, %v8896_v10  ;;  %8899 = vst [vmem:[#allocation29_spill] sm:$0xff] %v5104_v63  ;;  %v5110_v6 = vsel %vm2407_vm0, %v5096_v14, -inf  ;;  %v631_v26 = vadd.f32 %v5104_v63, %v8901_v40  ;;  %v635_v60 = vadd.f32 %v5104_v63, %v4724_v21  ;;  %v5126_v10 = vpop.f32.mrb[24].mxu1 }
 0x182   :  { %8900 = vst [vmem:[#allocation40_spill] sm:$0xff] %v5110_v6  ;;  %v1644_v22 = vadd.f32 %v1643_v35, %v1369_v16  ;;  %v1609_v13 = vadd.f32 %v1608_v52, %v1354_v56  ;;  %v1621_v46 = vrot.slane %v1620_v27, 2  ;;  %v5120_v51 = vadd.f32 %v8898_v36, %v8902_v59  ;;  %8906 = vst [vmem:[#allocation67_spill] sm:$0xff] %v5126_v10 }
 0x183   :  { %v1657_v33 = vrot.slane %v1656_v20, 2  ;;  %v647_v16 = vadd.f32 %v5104_v63, %v8904_v58  ;;  %v651_v48 = vadd.f32 %v5104_v63, %v8905_v24  ;;  %v887_v14 = vmul.f32 0.2, %v631_v26 }
 0x184   :  { %8903 = vst [vmem:[#allocation59_spill] sm:$0xff] %v5120_v51  ;;  %v1645_v11 = vadd.f32 %v1644_v22, %v1370_v54  ;;  %v1610_v35 = vrot.slane %v1609_v13, 4  ;;  %v1622_v25 = vadd.f32 %v1621_v46, %v1620_v27  ;;  %v891_v3 = vmul.f32 0.2, %v635_v60 }
 0x185   :  { %v1658_v52 = vadd.f32 %v1657_v33, %v1656_v20  ;;  %v903_v37 = vmul.f32 0.2, %v647_v16  ;;  %v907_v6 = vmul.f32 0.2, %v651_v48  ;;  %v1143_v54 = vmax.f32 %v631_v26, %v887_v14 }
 0x186   :  { %v1646_v56 = vrot.slane %v1645_v11, 4  ;;  %v1611_v59 = vadd.f32 %v1610_v35, %v1609_v13  ;;  %v1623_v36 = vrot.slane %v1622_v25, 1  ;;  %v1147_v22 = vmax.f32 %v635_v60, %v891_v3 }
 0x187   :  { %v1659_v7 = vrot.slane %v1658_v52, 1  ;;  %v1159_v55 = vmax.f32 %v647_v16, %v903_v37  ;;  %v1163_v19 = vmax.f32 %v651_v48, %v907_v6  ;;  %v1415_v10 = vmul.f32 %v4424_v42, %v1143_v54 }
 0x188   :  { %v1647_v39 = vadd.f32 %v1646_v56, %v1645_v11  ;;  %v1612_v57 = vrot.slane %v1611_v59, 2  ;;  %v1624_v61 = vadd.f32 %v1623_v36, %v1622_v25  ;;  %v1419_v27 = vmul.f32 %v4424_v42, %v1147_v22  ;;  %v5167_v11 = vpop.f32.mrb[25].mxu0  ;;  %v8923_v25 = vld [vmem:[#allocation36_spill] sm:$0xff]  ;;  %v8924_v56 = vld [vmem:[#allocation50_spill] sm:$0xff] }
 0x189   :  { %v1660_v23 = vadd.f32 %v1659_v7, %v1658_v52  ;;  %v1431_v20 = vmul.f32 %v4424_v42, %v1159_v55  ;;  %v1435_v33 = vmul.f32 %v4424_v42, %v1163_v19  ;;  %v8907_v13 = vrot.slane %v8866_v4, 5  ;;  %8917 = vst [vmem:[#allocation54_spill] sm:$0xff] %v5167_v11 }
 0x18a   :  { %v1648_v46 = vrot.slane %v1647_v39, 2  ;;  %v1613_v26 = vadd.f32 %v1612_v57, %v1611_v59  ;;  %v5137_v37 = vadd.f32 %v5050_v62, %v1415_v10  ;;  %v5140_v36 = vadd.f32 %v5061_v1, %v1419_v27  ;;  %v8926_v59 = vld [vmem:[#allocation30_spill] sm:$0xff]  ;;  %v5192_v27 = vpop.f32.mrb[25].mxu1 }
 0x18b   :  { %v5134_v14 = vadd.f32 %v8907_v13, %v1732_v2  ;;  %v8909_v6 = vrot.slane %v8866_v4, 4  ;;  %v5147_v7 = vmul.f32 0.2, %v5035_v0  ;;  %v5150_v19 = vadd.f32 %v5064_v12, %v1431_v20  ;;  %v8912_v2 = vld [vmem:[#allocation20_spill] sm:$0xff]  ;;  %8929 = vst [vmem:[#allocation100_spill] sm:$0xff] %v5192_v27 }
 0x18c   :  { %v5153_v55 = vadd.f32 %v5067_v50, %v1435_v33  ;;  %v1614_v57 = vrot.slane %v1613_v26, 1  ;;  %v8913_v62 = vrot.slane %v8912_v2, 1  ;;  %v5161_v1 = vadd.f32 %v5120_v51, %v8901_v40  ;;  %v8933_v13 = vld [vmem:[#allocation60_spill] sm:$0xff] }
 0x18d   :  { %8908 = vst [vmem:[#allocation37_spill] sm:$0xff] %v5134_v14  ;;  %v5144_v60 = vadd.f32 %v8909_v6, %v1723_v18  ;;  %8911 = vst [vmem:[#allocation31_spill] sm:$0xff] %v5147_v7  ;;  %v5165_v18 = vadd.f32 %v5120_v51, %v4724_v21  ;;  %v1649_v12 = vadd.f32 %v1648_v46, %v1647_v39  ;;  %v8918_v16 = vrot.slane %v8912_v2, 5  ;;  %v8979_v21 = vld [vmem:[#allocation22_spill] sm:$0xff] }
 0x18e   :  { %v5157_v3 = vadd.f32 %v8913_v62, %v1624_v61  ;;  %8915 = vst [vmem:[#allocation62_spill] sm:$0xff] %v5161_v1  ;;  %v5175_v48 = vadd.f32 %v5120_v51, %v8904_v58  ;;  %v5179_v61 = vadd.f32 %v5120_v51, %v8905_v24  ;;  %v5182_v10 = vmul.f32 0.2, %v5043_v31  ;;  %v8961_v1 = vld [vmem:[#allocation103_spill] sm:$0xff]  ;;  %v8978_v58 = vld [vmem:[#allocation104_spill] sm:$0xff] }
 0x18f   :  { %8910 = vst [vmem:[#allocation53_spill] sm:$0xff] %v5144_v60  ;;  %8916 = vst [vmem:[#allocation69_spill] sm:$0xff] %v5165_v18  ;;  %v5171_v50 = vadd.f32 %v8918_v16, %v1660_v23  ;;  %v1615_v35 = vadd.f32 %v1614_v57, %v1613_v26  ;;  %v8925_v52 = vmax.f32 %v8923_v25, %v8924_v56  ;;  %v8927_v23 = vld [vmem:[#allocation41_spill] sm:$0xff]  ;;  %v5196_v46 = vsel %vm2407_vm0, %v5144_v60, -inf  ;;  %v8934_v26 = vld [vmem:[#allocation68_spill] sm:$0xff] }
 0x190   :  { %8914 = vst [vmem:[#allocation44_spill] sm:$0xff] %v5157_v3  ;;  %8920 = vst [vmem:[#allocation56_spill] sm:$0xff] %v5175_v48  ;;  %v8928_v54 = vmax.f32 %v8926_v59, %v8927_v23  ;;  %v5200_v20 = vsel %vm2407_vm0, %v5134_v14, -inf  ;;  %v5203_v33 = vmul.f32 0.2, %v5047_v17  ;;  %v8935_v6 = vmax.f32 %v8933_v13, %v8934_v26  ;;  %v8938_v25 = vld [vmem:[#allocation38_spill] sm:$0xff] }
 0x191   :  { %8919 = vst [vmem:[#allocation61_spill] sm:$0xff] %v5171_v50  ;;  %8921 = vst [vmem:[#allocation65_spill] sm:$0xff] %v5179_v61  ;;  %v1479_v39 = vmul.f32 %v4424_v42, %v8925_v52  ;;  %v5210_v62 = vadd.f32 %v8912_v2, %v1615_v35  ;;  %v5214_v16 = vsel %vm2407_vm0, %v5157_v3, -inf  ;;  %v8939_v56 = vld [vmem:[#allocation57_spill] sm:$0xff]  ;;  %v8941_v23 = vld [vmem:[#allocation32_spill] sm:$0xff]  ;;  %v1650_v13 = vrot.slane %v1649_v12, 1 }
 0x192   :  { %8922 = vst [vmem:[#allocation99_spill] sm:$0xff] %v5182_v10  ;;  %v1480_v22 = vmul.f32 %v4426_v43, %v8928_v54  ;;  %8930 = vst [vmem:[#allocation36_spill] sm:$0xff] %v5196_v46  ;;  %v1481_v57 = vmul.f32 %v4430_v45, %v8935_v6  ;;  %v8940_v52 = vmax.f32 %v8938_v25, %v8939_v56  ;;  %v8942_v54 = vld [vmem:[#allocation45_spill] sm:$0xff]  ;;  %v5226_v26 = vsel %vm2407_vm0, %v5171_v50, -inf  ;;  %v8945_v35 = vld [vmem:[#allocation64_spill] sm:$0xff] }
 0x193   :  { %8931 = vst [vmem:[#allocation50_spill] sm:$0xff] %v5200_v20  ;;  %8932 = vst [vmem:[#allocation30_spill] sm:$0xff] %v5203_v33  ;;  %v8943_v14 = vmax.f32 %v8941_v23, %v8942_v54  ;;  %v8946_v6 = vld [vmem:[#allocation73_spill] sm:$0xff]  ;;  %v5234_v25 = vsel %vm2407_vm0, %v5210_v62, -inf  ;;  %v1907_v56 = vrot.slane %v4942_v53, 4  ;;  %v8949_v54 = vld [vmem:[#allocation55_spill] sm:$0xff] }
 0x194   :  { %8936 = vst [vmem:[#allocation41_spill] sm:$0xff] %v5210_v62  ;;  %8937 = vst [vmem:[#allocation60_spill] sm:$0xff] %v5214_v16  ;;  %v1495_v59 = vmul.f32 %v4424_v42, %v8940_v52  ;;  %v8947_v20 = vmax.f32 %v8945_v35, %v8946_v6  ;;  %v1895_v46 = vadd.f32 %v1480_v22, %v1479_v39  ;;  %v8950_v50 = vld [vmem:[#allocation63_spill] sm:$0xff]  ;;  %v8953_v39 = vld [vmem:[#allocation101_spill] sm:$0xff] }
 0x195   :  { %v1496_v60 = vmul.f32 %v4426_v43, %v8943_v14  ;;  %8944 = vst [vmem:[#allocation68_spill] sm:$0xff] %v5226_v26  ;;  %8948 = vst [vmem:[#allocation38_spill] sm:$0xff] %v5234_v25  ;;  %v1943_v14 = vrot.slane %v4974_v34, 4  ;;  %v8951_v26 = vmax.f32 %v8949_v54, %v8950_v50  ;;  %v8955_v62 = vld [vmem:[#allocation58_spill] sm:$0xff] }
 0x196   :  { %v1497_v3 = vmul.f32 %v4430_v45, %v8947_v20  ;;  %v1896_v6 = vadd.f32 %v1895_v46, %v1481_v57  ;;  %v8952_v20 = vld [vmem:[#allocation14_spill] sm:$0xff]  ;;  %v8959_v57 = vld [vmem:[#allocation47_spill] sm:$0xff] }
 0x197   :  { %v1931_v52 = vadd.f32 %v1496_v60, %v1495_v59  ;;  %v1482_v35 = vmul.f32 %v4428_v44, %v8951_v26  ;;  %v5246_v22 = vadd.f32 %v8953_v39, %v8952_v20  ;;  %v8956_v17 = vld [vmem:[#allocation66_spill] sm:$0xff]  ;;  %v1908_v59 = vadd.f32 %v1907_v56, %v4942_v53 }
 0x198   :  { %v8957_v33 = vmax.f32 %v8955_v62, %v8956_v17  ;;  %v1944_v23 = vadd.f32 %v1943_v14, %v4974_v34  ;;  %v8958_v50 = vld [vmem:[#allocation46_spill] sm:$0xff]  ;;  %v1651_v53 = vadd.f32 %v1650_v13, %v1649_v12  ;;  %v5271_v12 = vmul.f32 0.2, %v5165_v18 }
 0x199   :  { %8954 = vst [vmem:[#allocation57_spill] sm:$0xff] %v5246_v22  ;;  %v1932_v31 = vadd.f32 %v1931_v52, %v1497_v3  ;;  %v1897_v16 = vadd.f32 %v1896_v6, %v1482_v35  ;;  %v634_v54 = vadd.f32 %v8958_v50, %v5246_v22  ;;  %v638_v46 = vadd.f32 %v4738_v29, %v5246_v22  ;;  %v5262_v6 = vpop.f32.mrb[26].mxu0 }
 0x19a   :  { %v1498_v60 = vmul.f32 %v4428_v44, %v8957_v33  ;;  %v650_v26 = vadd.f32 %v8959_v57, %v5246_v22  ;;  %v1909_v39 = vrot.slane %v1908_v59, 2  ;;  %v1945_v17 = vrot.slane %v1944_v23, 2  ;;  %8960 = vst [vmem:[#allocation32_spill] sm:$0xff] %v5262_v6  ;;  %v8962_v57 = vld [vmem:[#allocation12_spill] sm:$0xff]  ;;  %8965 = vst [vmem:[#allocation73_spill] sm:$0xff] %v5271_v12 }
 0x19b   :  { %v654_v33 = vadd.f32 %v4740_v49, %v5246_v22  ;;  %v1898_v3 = vrot.slane %v1897_v16, 4  ;;  %v890_v62 = vmul.f32 0.2, %v634_v54  ;;  %v894_v34 = vmul.f32 0.2, %v638_v46 }
 0x19c   :  { %v1933_v25 = vadd.f32 %v1932_v31, %v1498_v60  ;;  %v1910_v56 = vadd.f32 %v1909_v39, %v1908_v59  ;;  %v1946_v14 = vadd.f32 %v1945_v17, %v1944_v23  ;;  %v906_v35 = vmul.f32 0.2, %v650_v26  ;;  %v5268_v60 = vpop.f32.mrb[26].mxu1  ;;  %v5273_v39 = vpop.f32.mrb[27].mxu0 }
 0x19d   :  { %v1899_v10 = vadd.f32 %v1898_v3, %v1897_v16  ;;  %v910_v0 = vmul.f32 0.2, %v654_v33  ;;  %v1146_v7 = vmax.f32 %v634_v54, %v890_v62  ;;  %v5266_v31 = vadd.f32 %v8962_v57, %v8961_v1  ;;  %8964 = vst [vmem:[#allocation64_spill] sm:$0xff] %v5268_v60  ;;  %8966 = vst [vmem:[#allocation55_spill] sm:$0xff] %v5273_v39 }
 0x19e   :  { %v1934_v52 = vrot.slane %v1933_v25, 4  ;;  %v1911_v13 = vrot.slane %v1910_v56, 1  ;;  %v1150_v59 = vmax.f32 %v638_v46, %v894_v34  ;;  %v8967_v23 = vrot.slane %v8912_v2, 4 }
 0x19f   :  { %8963 = vst [vmem:[#allocation45_spill] sm:$0xff] %v5266_v31  ;;  %v5280_v16 = vmul.f32 0.2, %v5175_v48  ;;  %v1900_v54 = vrot.slane %v1899_v10, 2  ;;  %v1947_v1 = vrot.slane %v1946_v14, 1  ;;  %v1162_v60 = vmax.f32 %v650_v26, %v906_v35 }
 0x1a0   :  { %v1935_v49 = vadd.f32 %v1934_v52, %v1933_v25  ;;  %v5277_v17 = vadd.f32 %v8967_v23, %v1651_v53  ;;  %v1912_v3 = vadd.f32 %v1911_v13, %v1910_v56  ;;  %v1166_v29 = vmax.f32 %v654_v33, %v910_v0  ;;  %v8970_v25 = vld [vmem:[#allocation51_spill] sm:$0xff]  ;;  %v8971_v52 = vld [vmem:[#allocation21_spill] sm:$0xff]  ;;  %v8974_v56 = vld [vmem:[#allocation52_spill] sm:$0xff]  ;;  %v5296_v13 = vpop.f32.mrb[27].mxu1 }
 0x1a1   :  { %8969 = vst [vmem:[#allocation101_spill] sm:$0xff] %v5280_v16  ;;  %v1901_v18 = vadd.f32 %v1900_v54, %v1899_v10  ;;  %v1418_v12 = vmul.f32 %v4428_v44, %v1146_v7  ;;  %v633_v46 = vadd.f32 %v5266_v31, %v8970_v25  ;;  %v637_v34 = vadd.f32 %v5266_v31, %v4754_v32  ;;  %v8975_v10 = vld [vmem:[#allocation90_spill] sm:$0xff] }
 0x1a2   :  { %8968 = vst [vmem:[#allocation63_spill] sm:$0xff] %v5277_v17  ;;  %v1936_v62 = vrot.slane %v1935_v49, 2  ;;  %v8972_v23 = vrot.slane %v8971_v52, 1  ;;  %v1422_v16 = vmul.f32 %v4428_v44, %v1150_v59  ;;  %v649_v26 = vadd.f32 %v5266_v31, %v8974_v56  ;;  %8976 = vst [vmem:[#allocation66_spill] sm:$0xff] %v5296_v13  ;;  %v8980_v13 = vld [vmem:[#allocation105_spill] sm:$0xff] }
 0x1a3   :  { %v1902_v0 = vrot.slane %v1901_v18, 1  ;;  %v653_v7 = vadd.f32 %v5266_v31, %v8975_v10  ;;  %v889_v33 = vmul.f32 0.2, %v633_v46  ;;  %v893_v35 = vmul.f32 0.2, %v637_v34 }
 0x1a4   :  { %v1937_v53 = vadd.f32 %v1936_v62, %v1935_v49  ;;  %v5289_v48 = vadd.f32 %v8972_v23, %v1912_v3  ;;  %v1948_v25 = vadd.f32 %v1947_v1, %v1946_v14  ;;  %v1434_v49 = vmul.f32 %v4428_v44, %v1162_v60 }
 0x1a5   :  { %v905_v62 = vmul.f32 0.2, %v649_v26  ;;  %v1903_v3 = vadd.f32 %v1902_v0, %v1901_v18  ;;  %v909_v23 = vmul.f32 0.2, %v653_v7  ;;  %v1145_v39 = vmax.f32 %v633_v46, %v889_v33 }
 0x1a6   :  { %8973 = vst [vmem:[#allocation58_spill] sm:$0xff] %v5289_v48  ;;  %v1938_v54 = vrot.slane %v1937_v53, 1  ;;  %v1149_v59 = vmax.f32 %v637_v34, %v893_v35  ;;  %v5301_v50 = vsel %vm2407_vm0, %v5289_v48, -inf  ;;  %v5305_v6 = vadd.f32 %v8962_v57, %v8978_v58  ;;  %v8986_v48 = vld [vmem:[#allocation70_spill] sm:$0xff] }
 0x1a7   :  { %8977 = vst [vmem:[#allocation103_spill] sm:$0xff] %v5301_v50  ;;  %v1161_v24 = vmax.f32 %v649_v26, %v905_v62  ;;  %v5309_v40 = vadd.f32 %v8980_v13, %v8979_v21  ;;  %v5312_v14 = vadd.f32 %v8971_v52, %v1903_v3  ;;  %v1165_v18 = vmax.f32 %v653_v7, %v909_v23 }
 0x1a8   :  { %v1417_v60 = vmul.f32 %v4430_v45, %v1145_v39  ;;  %v1421_v1 = vmul.f32 %v4430_v45, %v1149_v59  ;;  %v1438_v46 = vmul.f32 %v4428_v44, %v1166_v29  ;;  %v5320_v58 = vadd.f32 %v5305_v6, %v4754_v32 }
 0x1a9   :  { %8981 = vst [vmem:[#allocation104_spill] sm:$0xff] %v5312_v14  ;;  %v1433_v34 = vmul.f32 %v4430_v45, %v1161_v24  ;;  %v5324_v26 = vadd.f32 %v5305_v6, %v8974_v56  ;;  %v5328_v0 = vsel %vm2407_vm0, %v5312_v14, -inf  ;;  %v1437_v39 = vmul.f32 %v4430_v45, %v1165_v18  ;;  %v8994_v24 = vld [vmem:[#allocation106_spill] sm:$0xff] }
 0x1aa   :  { %8982 = vst [vmem:[#allocation119_spill] sm:$0xff] %v5320_v58  ;;  %8984 = vst [vmem:[#allocation121_spill] sm:$0xff] %v5328_v0  ;;  %v1752_v7 = vadd.f32 %v5137_v37, %v1417_v60  ;;  %v1761_v29 = vadd.f32 %v5140_v36, %v1421_v1  ;;  %v1939_v33 = vadd.f32 %v1938_v54, %v1937_v53  ;;  %v5343_v37 = vpop.f32.mrb[28].mxu0  ;;  %v8988_v54 = vld [vmem:[#allocation23_spill] sm:$0xff] }
 0x1ab   :  { %8983 = vst [vmem:[#allocation120_spill] sm:$0xff] %v5324_v26  ;;  %v1788_v35 = vadd.f32 %v5150_v19, %v1433_v34  ;;  %v5338_v62 = vadd.f32 %v5305_v6, %v8975_v10  ;;  %v1797_v59 = vadd.f32 %v5153_v55, %v1437_v39  ;;  %v608_v18 = vadd.f32 %v8980_v13, %v8986_v48  ;;  %v8989_v60 = vld [vmem:[#allocation71_spill] sm:$0xff] }
 0x1ac   :  { %v1753_v3 = vadd.f32 %v1752_v7, %v1418_v12  ;;  %v1762_v23 = vadd.f32 %v1761_v29, %v1422_v16  ;;  %8987 = vst [vmem:[#allocation123_spill] sm:$0xff] %v5343_v37  ;;  %v640_v53 = vadd.f32 %v8980_v13, %v5001_v15  ;;  %v704_v19 = vadd.f32 %v8980_v13, %v8988_v54 }
 0x1ad   :  { %8985 = vst [vmem:[#allocation122_spill] sm:$0xff] %v5338_v62  ;;  %v1789_v36 = vadd.f32 %v1788_v35, %v1434_v49  ;;  %v736_v1 = vadd.f32 %v8980_v13, %v8989_v60  ;;  %v1798_v16 = vadd.f32 %v1797_v59, %v1438_v46  ;;  %v768_v55 = vadd.f32 %v8980_v13, %v5017_v28 }
 0x1ae   :  { %v1754_v34 = vrot.slane %v1753_v3, 4  ;;  %v1763_v12 = vrot.slane %v1762_v23, 4  ;;  %v8990_v39 = vrot.slane %v8971_v52, 4  ;;  %v8992_v49 = vrot.slane %v8971_v52, 5 }
 0x1af   :  { %v1790_v35 = vrot.slane %v1789_v36, 4  ;;  %v592_v14 = vadd.f32 %v8994_v24, %v8979_v21  ;;  %v1799_v62 = vrot.slane %v1798_v16, 4  ;;  %v832_v46 = vmul.f32 0.2, %v5309_v40 }
 0x1b0   :  { %v5355_v7 = vadd.f32 %v8990_v39, %v1939_v33  ;;  %v5359_v29 = vadd.f32 %v8992_v49, %v1948_v25  ;;  %v1755_v50 = vadd.f32 %v1754_v34, %v1753_v3  ;;  %v1764_v0 = vadd.f32 %v1763_v12, %v1762_v23  ;;  %v8998_v3 = vld [vmem:[#allocation102_spill] sm:$0xff] }
 0x1b1   :  { %v5364_v59 = vadd.f32 %v1790_v35, %v1789_v36  ;;  %v864_v26 = vmul.f32 0.2, %v608_v18  ;;  %v896_v58 = vmul.f32 0.2, %v640_v53  ;;  %v960_v10 = vmul.f32 0.2, %v704_v19 }
 0x1b2   :  { %8991 = vst [vmem:[#allocation124_spill] sm:$0xff] %v5355_v7  ;;  %8993 = vst [vmem:[#allocation125_spill] sm:$0xff] %v5359_v29  ;;  %v1756_v33 = vrot.slane %v1755_v50, 2  ;;  %v1765_v39 = vrot.slane %v1764_v0, 2  ;;  %v1800_v56 = vadd.f32 %v1799_v62, %v1798_v16  ;;  %v992_v32 = vmul.f32 0.2, %v736_v1 }
 0x1b3   :  { %8995 = vst [vmem:[#allocation126_spill] sm:$0xff] %v5364_v59  ;;  %v5368_v25 = vsel %vm2407_vm0, %v5277_v17, -inf  ;;  %v5371_v49 = vmul.f32 0.2, %v5179_v61  ;;  %v5375_v23 = vadd.f32 %v8998_v3, %v8952_v20  ;;  %v1024_v36 = vmul.f32 0.2, %v768_v55 }
 0x1b4   :  { %8996 = vst [vmem:[#allocation127_spill] sm:$0xff] %v5368_v25  ;;  %v5379_v34 = vsel %vm2407_vm0, %v5355_v7, -inf  ;;  %v5383_v62 = vsel %vm2407_vm0, %v5359_v29, -inf  ;;  %v1088_v16 = vmax.f32 %v5309_v40, %v832_v46  ;;  %v5387_v35 = vadd.f32 %v1756_v33, %v1755_v50 }
 0x1b5   :  { %8997 = vst [vmem:[#allocation128_spill] sm:$0xff] %v5371_v49  ;;  %8999 = vst [vmem:[#allocation102_spill] sm:$0xff] %v5375_v23  ;;  %v1120_v17 = vmax.f32 %v608_v18, %v864_v26  ;;  %v1152_v25 = vmax.f32 %v640_v53, %v896_v58  ;;  %v1216_v61 = vmax.f32 %v704_v19, %v960_v10  ;;  %v1801_v49 = vrot.slane %v1800_v56, 2  ;;  %v9005_v19 = vld [vmem:[#allocation107_spill] sm:$0xff] }
 0x1b6   :  { %9000 = vst [vmem:[#allocation129_spill] sm:$0xff] %v5379_v34  ;;  %9001 = vst [vmem:[#allocation130_spill] sm:$0xff] %v5383_v62  ;;  %v5389_v3 = vadd.f32 %v1765_v39, %v1764_v0  ;;  %v1248_v37 = vmax.f32 %v736_v1, %v992_v32  ;;  %v624_v7 = vadd.f32 %v8994_v24, %v8986_v48  ;;  %v5393_v34 = vpop.f32.mrb[28].mxu1  ;;  %v848_v58 = vmul.f32 0.2, %v592_v14  ;;  %v9006_v1 = vld [vmem:[#allocation25_spill] sm:$0xff] }
 0x1b7   :  { %9002 = vst [vmem:[#allocation131_spill] sm:$0xff] %v5387_v35  ;;  %9004 = vst [vmem:[#allocation133_spill] sm:$0xff] %v5393_v34  ;;  %v1280_v29 = vmax.f32 %v768_v55, %v1024_v36  ;;  %v656_v12 = vadd.f32 %v8994_v24, %v5001_v15  ;;  %v720_v40 = vadd.f32 %v8994_v24, %v8988_v54 }
 0x1b8   :  { %9003 = vst [vmem:[#allocation132_spill] sm:$0xff] %v5389_v3  ;;  %v752_v50 = vadd.f32 %v8994_v24, %v8989_v60  ;;  %v1360_v10 = vmul.f32 %v4426_v43, %v1088_v16  ;;  %v784_v32 = vadd.f32 %v8994_v24, %v5017_v28  ;;  %v880_v26 = vmul.f32 0.2, %v624_v7 }
 0x1b9   :  { %v912_v0 = vmul.f32 0.2, %v656_v12  ;;  %v976_v18 = vmul.f32 0.2, %v720_v40  ;;  %v575_v55 = vadd.f32 %v9006_v1, %v9005_v19  ;;  %v1392_v46 = vmul.f32 %v4426_v43, %v1120_v17 }
 0x1ba   :  { %v1008_v53 = vmul.f32 0.2, %v752_v50  ;;  %v1040_v33 = vmul.f32 0.2, %v784_v32  ;;  %v1104_v39 = vmax.f32 %v592_v14, %v848_v58  ;;  %v1136_v36 = vmax.f32 %v624_v7, %v880_v26  ;;  %v9012_v58 = vld [vmem:[#allocation108_spill] sm:$0xff] }
 0x1bb   :  { %v1424_v62 = vmul.f32 %v4426_v43, %v1152_v25  ;;  %v1168_v59 = vmax.f32 %v656_v12, %v912_v0  ;;  %v1232_v16 = vmax.f32 %v720_v40, %v976_v18  ;;  %v5408_v35 = vadd.f32 %v1801_v49, %v1800_v56  ;;  %v9009_v49 = vld [vmem:[#allocation26_spill] sm:$0xff] }
 0x1bc   :  { %v1264_v3 = vmax.f32 %v752_v50, %v1008_v53  ;;  %v1488_v34 = vmul.f32 %v4426_v43, %v1216_v61  ;;  %v1520_v28 = vmul.f32 %v4426_v43, %v1248_v37  ;;  %v1296_v60 = vmax.f32 %v784_v32, %v1040_v33  ;;  %v9008_v37 = vld [vmem:[#allocation72_spill] sm:$0xff] }
 0x1bd   :  { %9007 = vst [vmem:[#allocation134_spill] sm:$0xff] %v5408_v35  ;;  %v1552_v54 = vmul.f32 %v4426_v43, %v1280_v29  ;;  %v5414_v15 = vmul.f32 %v4426_v43, %v1104_v39  ;;  %v5417_v17 = vmul.f32 %v4426_v43, %v1136_v36  ;;  %v5420_v14 = vmul.f32 %v4426_v43, %v1168_v59  ;;  %v9010_v59 = vld [vmem:[#allocation74_spill] sm:$0xff] }
 0x1be   :  { %v5423_v7 = vmul.f32 %v4426_v43, %v1232_v16  ;;  %v5426_v56 = vmul.f32 %v4426_v43, %v1264_v3  ;;  %v5429_v61 = vmul.f32 %v4426_v43, %v1296_v60  ;;  %v607_v29 = vadd.f32 %v9008_v37, %v9005_v19  ;;  %v5441_v3 = vpop.f32.mrb[29].mxu0 }
 0x1bf   :  { %v639_v25 = vadd.f32 %v5104_v63, %v9005_v19  ;;  %v703_v12 = vadd.f32 %v9009_v49, %v9005_v19  ;;  %v735_v40 = vadd.f32 %v9010_v59, %v9005_v19  ;;  %v767_v50 = vadd.f32 %v5120_v51, %v9005_v19  ;;  %9011 = vst [vmem:[#allocation135_spill] sm:$0xff] %v5441_v3 }
 0x1c0   :  { %v831_v32 = vmul.f32 0.2, %v575_v55  ;;  %v863_v60 = vmul.f32 0.2, %v607_v29  ;;  %v591_v26 = vadd.f32 %v9006_v1, %v9012_v58  ;;  %v623_v0 = vadd.f32 %v9008_v37, %v9012_v58 }
 0x1c1   :  { %v895_v18 = vmul.f32 0.2, %v639_v25  ;;  %v959_v53 = vmul.f32 0.2, %v703_v12  ;;  %v991_v33 = vmul.f32 0.2, %v735_v40  ;;  %v655_v39 = vadd.f32 %v5104_v63, %v9012_v58 }
 0x1c2   :  { %v1023_v36 = vmul.f32 0.2, %v767_v50  ;;  %v1087_v16 = vmax.f32 %v575_v55, %v831_v32  ;;  %v1119_v35 = vmax.f32 %v607_v29, %v863_v60  ;;  %v719_v3 = vadd.f32 %v9009_v49, %v9012_v58 }
 0x1c3   :  { %v1151_v48 = vmax.f32 %v639_v25, %v895_v18  ;;  %v1215_v21 = vmax.f32 %v703_v12, %v959_v53  ;;  %v1247_v57 = vmax.f32 %v735_v40, %v991_v33  ;;  %v751_v1 = vadd.f32 %v9010_v59, %v9012_v58  ;;  %v5465_v18 = vpop.f32.mrb[29].mxu1 }
 0x1c4   :  { %v1279_v20 = vmax.f32 %v767_v50, %v1023_v36  ;;  %v1359_v37 = vmul.f32 %v4424_v42, %v1087_v16  ;;  %v1391_v19 = vmul.f32 %v4424_v42, %v1119_v35  ;;  %v783_v63 = vadd.f32 %v5120_v51, %v9012_v58  ;;  %9013 = vst [vmem:[#allocation136_spill] sm:$0xff] %v5465_v18 }
 0x1c5   :  { %v1423_v55 = vmul.f32 %v4424_v42, %v1151_v48  ;;  %v1487_v29 = vmul.f32 %v4424_v42, %v1215_v21  ;;  %v1519_v32 = vmul.f32 %v4424_v42, %v1247_v57  ;;  %v847_v25 = vmul.f32 0.2, %v591_v26 }
 0x1c6   :  { %v1551_v12 = vmul.f32 %v4424_v42, %v1279_v20  ;;  %v5461_v40 = vadd.f32 %v1360_v10, %v1359_v37  ;;  %v5463_v60 = vadd.f32 %v1392_v46, %v1391_v19  ;;  %v879_v50 = vmul.f32 0.2, %v623_v0  ;;  %v9014_v19 = vld [vmem:[#allocation39_spill] sm:$0xff]  ;;  %v9015_v46 = vld [vmem:[#allocation109_spill] sm:$0xff] }
 0x1c7   :  { %v5467_v35 = vadd.f32 %v1424_v62, %v1423_v55  ;;  %v5469_v53 = vadd.f32 %v1488_v34, %v1487_v29  ;;  %v5471_v33 = vadd.f32 %v1520_v28, %v1519_v32  ;;  %v911_v48 = vmul.f32 0.2, %v655_v39  ;;  %v9016_v55 = vld [vmem:[#allocation75_spill] sm:$0xff] }
 0x1c8   :  { %v5473_v21 = vadd.f32 %v1552_v54, %v1551_v12  ;;  %v975_v57 = vmul.f32 0.2, %v719_v3  ;;  %v1007_v36 = vmul.f32 0.2, %v751_v1  ;;  %v1039_v16 = vmul.f32 0.2, %v783_v63 }
 0x1c9   :  { %v1103_v20 = vmax.f32 %v591_v26, %v847_v25  ;;  %v1135_v10 = vmax.f32 %v623_v0, %v879_v50  ;;  %v1167_v37 = vmax.f32 %v655_v39, %v911_v48  ;;  %v578_v51 = vadd.f32 %v9015_v46, %v9014_v19  ;;  %v9018_v50 = vld [vmem:[#allocation76_spill] sm:$0xff] }
 0x1ca   :  { %v1231_v59 = vmax.f32 %v719_v3, %v975_v57  ;;  %v1263_v18 = vmax.f32 %v751_v1, %v1007_v36  ;;  %v1295_v62 = vmax.f32 %v783_v63, %v1039_v16  ;;  %v610_v34 = vadd.f32 %v9015_v46, %v9016_v55  ;;  %v9017_v1 = vld [vmem:[#allocation43_spill] sm:$0xff] }
 0x1cb   :  { %v1375_v28 = vmul.f32 %v4424_v42, %v1103_v20  ;;  %v1407_v54 = vmul.f32 %v4424_v42, %v1135_v10  ;;  %v1439_v29 = vmul.f32 %v4424_v42, %v1167_v37  ;;  %v642_v26 = vadd.f32 %v9015_v46, %v5246_v22  ;;  %v9020_v20 = vld [vmem:[#allocation110_spill] sm:$0xff] }
 0x1cc   :  { %v1503_v0 = vmul.f32 %v4424_v42, %v1231_v59  ;;  %v1535_v39 = vmul.f32 %v4424_v42, %v1263_v18  ;;  %v1567_v3 = vmul.f32 %v4424_v42, %v1295_v62  ;;  %v706_v63 = vadd.f32 %v9015_v46, %v9017_v1 }
 0x1cd   :  { %v5490_v32 = vadd.f32 %v5414_v15, %v1375_v28  ;;  %v5493_v25 = vadd.f32 %v5417_v17, %v1407_v54  ;;  %v5496_v12 = vadd.f32 %v5420_v14, %v1439_v29  ;;  %v738_v48 = vadd.f32 %v9015_v46, %v9018_v50  ;;  %v5511_v17 = vpop.permute.xlu1 %2205 }
 0x1ce   :  { %v5501_v59 = vadd.f32 %v5423_v7, %v1503_v0  ;;  %v5504_v18 = vadd.f32 %v5426_v56, %v1535_v39  ;;  %v5507_v57 = vadd.f32 %v5429_v61, %v1567_v3  ;;  %v770_v15 = vadd.f32 %v9015_v46, %v5375_v23  ;;  %9019 = vst [vmem:[#allocation137_spill] sm:$0xff] %v5511_v17  ;;  %v5522_v0 = vpop.f32.mrb[30].mxu0 }
 0x1cf   :  { %v834_v36 = vmul.f32 0.2, %v578_v51  ;;  %v866_v14 = vmul.f32 0.2, %v610_v34  ;;  %v898_v16 = vmul.f32 0.2, %v642_v26  ;;  %v594_v10 = vadd.f32 %v9020_v20, %v9014_v19 }
 0x1d0   :  { %v962_v37 = vmul.f32 0.2, %v706_v63  ;;  %v994_v62 = vmul.f32 0.2, %v738_v48  ;;  %v626_v56 = vadd.f32 %v9020_v20, %v9016_v55  ;;  %v1026_v54 = vmul.f32 0.2, %v770_v15 }
 0x1d1   :  { %v658_v29 = vadd.f32 %v9020_v20, %v5246_v22  ;;  %9021 = vst [vmem:[#allocation138_spill] sm:$0xff] %v5522_v0  ;;  %v1090_v3 = vmax.f32 %v578_v51, %v834_v36  ;;  %v1122_v19 = vmax.f32 %v610_v34, %v866_v14  ;;  %v722_v7 = vadd.f32 %v9020_v20, %v9017_v1  ;;  %v9027_v0 = vld [vmem:[#allocation81_spill] sm:$0xff] }
 0x1d2   :  { %v1154_v61 = vmax.f32 %v642_v26, %v898_v16  ;;  %v754_v28 = vadd.f32 %v9020_v20, %v9018_v50  ;;  %v1218_v22 = vmax.f32 %v706_v63, %v962_v37  ;;  %v1250_v58 = vmax.f32 %v738_v48, %v994_v62  ;;  %v9022_v48 = vld [vmem:[#allocation87_spill] sm:$0xff]  ;;  %v5546_v62 = vpop.f32.mrb[30].mxu1 }
 0x1d3   :  { %v786_v39 = vadd.f32 %v9020_v20, %v5375_v23  ;;  %v1282_v51 = vmax.f32 %v770_v15, %v1026_v54  ;;  %v850_v34 = vmul.f32 0.2, %v594_v10  ;;  %v882_v36 = vmul.f32 0.2, %v626_v56  ;;  %9023 = vst [vmem:[#allocation87_spill] sm:$0xff] %v5546_v62 }
 0x1d4   :  { %v914_v14 = vmul.f32 0.2, %v658_v29  ;;  %v5535_v1 = vmul.f32 %v4428_v44, %v1090_v3  ;;  %v5538_v55 = vmul.f32 %v4428_v44, %v1122_v19  ;;  %v978_v26 = vmul.f32 0.2, %v722_v7 }
 0x1d5   :  { %v1010_v16 = vmul.f32 0.2, %v754_v28  ;;  %v5541_v49 = vmul.f32 %v4428_v44, %v1154_v61  ;;  %v1042_v63 = vmul.f32 0.2, %v786_v39  ;;  %v986_v37 = vmul.f32 0.2, %v9022_v48 }
 0x1d6   :  { %v1241_v15 = vmax.f32 %v8862_v30, %v5023_v9  ;;  %v5549_v54 = vmul.f32 %v4428_v44, %v1218_v22  ;;  %v5552_v3 = vmul.f32 %v4428_v44, %v1250_v58  ;;  %v1106_v19 = vmax.f32 %v594_v10, %v850_v34  ;;  %v9026_v58 = vld [vmem:[#allocation77_spill] sm:$0xff] }
 0x1d7   :  { %v9024_v46 = vmax.f32 %v4682_v41, %v4759_v5  ;;  %v5559_v17 = vmul.f32 %v4428_v44, %v1282_v51  ;;  %v1138_v23 = vmax.f32 %v626_v56, %v882_v36  ;;  %v1170_v50 = vmax.f32 %v658_v29, %v914_v14  ;;  %v9031_v29 = vld [vmem:[#allocation78_spill] sm:$0xff] }
 0x1d8   :  { %v1258_v30 = vmax.f32 %v8861_v38, %v5020_v8  ;;  %v1234_v9 = vmax.f32 %v722_v7, %v978_v26  ;;  %v1266_v22 = vmax.f32 %v754_v28, %v1010_v16  ;;  %v1242_v62 = vmax.f32 %v9022_v48, %v986_v37  ;;  %v9032_v36 = vld [vmem:[#allocation82_spill] sm:$0xff]  ;;  %v9034_v28 = vld [vmem:[#allocation95_spill] sm:$0xff] }
 0x1d9   :  { %v1511_v61 = vmul.f32 %v4424_v42, %v9024_v46  ;;  %9025 = vst [vmem:[#allocation139_spill] sm:$0xff] %v5559_v17  ;;  %v9028_v10 = vmax.f32 %v9026_v58, %v9027_v0  ;;  %v1298_v41 = vmax.f32 %v786_v39, %v1042_v63  ;;  %v1513_v5 = vmul.f32 %v4430_v45, %v1241_v15  ;;  %v9029_v46 = vld [vmem:[#allocation114_spill] sm:$0xff]  ;;  %v9035_v0 = vld [vmem:[#allocation93_spill] sm:$0xff]  ;;  %v9037_v16 = vld [vmem:[#allocation111_spill] sm:$0xff] }
 0x1da   :  { %v9030_v51 = vmax.f32 %v4686_v47, %v9029_v46  ;;  %v9033_v38 = vmax.f32 %v9031_v29, %v9032_v36  ;;  %v5578_v7 = vmul.f32 %v4428_v44, %v1106_v19  ;;  %v9036_v14 = vmax.f32 %v9034_v28, %v9035_v0  ;;  %v9038_v15 = vld [vmem:[#allocation115_spill] sm:$0xff]  ;;  %v5605_v29 = vpop.permute.xlu1 %2213 }
 0x1db   :  { %v1512_v34 = vmul.f32 %v4426_v43, %v9028_v10  ;;  %v1979_v63 = vrot.slane %v9037_v16, 4  ;;  %v5586_v47 = vmul.f32 %v4428_v44, %v1138_v23  ;;  %v5589_v48 = vmul.f32 %v4428_v44, %v1170_v50  ;;  %9041 = vst [vmem:[#allocation114_spill] sm:$0xff] %v5605_v29 }
 0x1dc   :  { %v1527_v56 = vmul.f32 %v4424_v42, %v9030_v51  ;;  %v1528_v8 = vmul.f32 %v4426_v43, %v9033_v38  ;;  %v1529_v39 = vmul.f32 %v4430_v45, %v9036_v14  ;;  %v2015_v58 = vrot.slane %v9038_v15, 4  ;;  %v9042_v38 = vld [vmem:[#allocation112_spill] sm:$0xff] }
 0x1dd   :  { %v1967_v26 = vadd.f32 %v1512_v34, %v1511_v61  ;;  %v5593_v19 = vmul.f32 %v4428_v44, %v1234_v9  ;;  %v1514_v10 = vmul.f32 %v4428_v44, %v1242_v62  ;;  %v1980_v51 = vadd.f32 %v1979_v63, %v9037_v16  ;;  %v9043_v62 = vld [vmem:[#allocation42_spill] sm:$0xff]  ;;  %v9046_v16 = vld [vmem:[#allocation92_spill] sm:$0xff] }
 0x1de   :  { %v2003_v37 = vadd.f32 %v1528_v8, %v1527_v56  ;;  %v5598_v61 = vmul.f32 %v4428_v44, %v1266_v22  ;;  %v1530_v23 = vmul.f32 %v4428_v44, %v1258_v30  ;;  %v2016_v50 = vadd.f32 %v2015_v58, %v9038_v15  ;;  %v9044_v22 = vld [vmem:[#allocation91_spill] sm:$0xff] }
 0x1df   :  { %v1968_v46 = vadd.f32 %v1967_v26, %v1513_v5  ;;  %v5603_v56 = vmul.f32 %v4428_v44, %v1298_v41  ;;  %v1981_v36 = vrot.slane %v1980_v51, 2  ;;  %v577_v5 = vadd.f32 %v9043_v62, %v9042_v38  ;;  %v9045_v41 = vld [vmem:[#allocation48_spill] sm:$0xff] }
 0x1e0   :  { %9039 = vst [vmem:[#allocation77_spill] sm:$0xff] %v5598_v61  ;;  %v2004_v34 = vadd.f32 %v2003_v37, %v1529_v39  ;;  %v2258_v28 = vrot.slane %v5605_v29, 1  ;;  %v609_v0 = vadd.f32 %v9044_v22, %v9042_v38  ;;  %v641_v30 = vadd.f32 %v5266_v31, %v9042_v38 }
 0x1e1   :  { %9040 = vst [vmem:[#allocation81_spill] sm:$0xff] %v5603_v56  ;;  %v1969_v9 = vadd.f32 %v1968_v46, %v1514_v10  ;;  %v1982_v39 = vadd.f32 %v1981_v36, %v1980_v51  ;;  %v705_v26 = vadd.f32 %v9045_v41, %v9042_v38  ;;  %v737_v63 = vadd.f32 %v9046_v16, %v9042_v38 }
 0x1e2   :  { %v2005_v8 = vadd.f32 %v2004_v34, %v1530_v23  ;;  %v2017_v15 = vrot.slane %v2016_v50, 2  ;;  %v769_v58 = vadd.f32 %v5305_v6, %v9042_v38  ;;  %v833_v10 = vmul.f32 0.2, %v577_v5 }
 0x1e3   :  { %v1970_v14 = vrot.slane %v1969_v9, 4  ;;  %v1983_v23 = vrot.slane %v1982_v39, 1  ;;  %v865_v34 = vmul.f32 0.2, %v609_v0  ;;  %v897_v56 = vmul.f32 0.2, %v641_v30 }
 0x1e4   :  { %v2006_v37 = vrot.slane %v2005_v8, 4  ;;  %v961_v51 = vmul.f32 0.2, %v705_v26  ;;  %v993_v36 = vmul.f32 0.2, %v737_v63  ;;  %v1089_v11 = vmax.f32 %v577_v5, %v833_v10 }
 0x1e5   :  { %v1971_v46 = vadd.f32 %v1970_v14, %v1969_v9  ;;  %v1984_v42 = vadd.f32 %v1983_v23, %v1982_v39  ;;  %v1025_v27 = vmul.f32 0.2, %v769_v58  ;;  %v2018_v52 = vadd.f32 %v2017_v15, %v2016_v50 }
 0x1e6   :  { %v2007_v17 = vadd.f32 %v2006_v37, %v2005_v8  ;;  %v1121_v4 = vmax.f32 %v609_v0, %v865_v34  ;;  %v1153_v2 = vmax.f32 %v641_v30, %v897_v56  ;;  %v1217_v9 = vmax.f32 %v705_v26, %v961_v51 }
 0x1e7   :  { %v1972_v20 = vrot.slane %v1971_v46, 2  ;;  %v5621_v38 = vadd.f32 %v2258_v28, %v1984_v42  ;;  %v1249_v14 = vmax.f32 %v737_v63, %v993_v36  ;;  %v2261_v8 = vrot.slane %v5605_v29, 4 }
 0x1e8   :  { %v2008_v43 = vrot.slane %v2007_v17, 2  ;;  %v1281_v37 = vmax.f32 %v769_v58, %v1025_v27  ;;  %v1361_v44 = vmul.f32 %v4430_v45, %v1089_v11  ;;  %v2262_v39 = vrot.slane %v5605_v29, 5  ;;  %v9051_v58 = vld [vmem:[#allocation113_spill] sm:$0xff] }
 0x1e9   :  { %v1973_v24 = vadd.f32 %v1972_v20, %v1971_v46  ;;  %9047 = vst [vmem:[#allocation78_spill] sm:$0xff] %v5621_v38  ;;  %v1393_v5 = vmul.f32 %v4430_v45, %v1121_v4  ;;  %v1425_v50 = vmul.f32 %v4430_v45, %v1153_v2  ;;  %v2019_v0 = vrot.slane %v2018_v52, 1 }
 0x1ea   :  { %v2009_v13 = vadd.f32 %v2008_v43, %v2007_v17  ;;  %v5630_v42 = vsel %vm2407_vm0, %v5621_v38, -inf  ;;  %v1489_v20 = vmul.f32 %v4430_v45, %v1217_v9  ;;  %v1521_v43 = vmul.f32 %v4430_v45, %v1249_v14 }
 0x1eb   :  { %v1974_v61 = vrot.slane %v1973_v24, 1  ;;  %9048 = vst [vmem:[#allocation82_spill] sm:$0xff] %v5630_v42  ;;  %v1553_v27 = vmul.f32 %v4430_v45, %v1281_v37  ;;  %v1626_v11 = vadd.f32 %v5461_v40, %v1361_v44  ;;  %v1698_v56 = vadd.f32 %v5463_v60, %v1393_v5 }
 0x1ec   :  { %v2010_v28 = vrot.slane %v2009_v13, 1  ;;  %v1770_v4 = vadd.f32 %v5467_v35, %v1425_v50  ;;  %v1914_v2 = vadd.f32 %v5469_v53, %v1489_v20  ;;  %v1986_v30 = vadd.f32 %v5471_v33, %v1521_v43 }
 0x1ed   :  { %v1975_v17 = vadd.f32 %v1974_v61, %v1973_v24  ;;  %v1627_v63 = vadd.f32 %v1626_v11, %v5535_v1  ;;  %v1699_v24 = vadd.f32 %v1698_v56, %v5538_v55  ;;  %v5646_v61 = vadd.f32 %v5473_v21, %v1553_v27 }
 0x1ee   :  { %v2020_v44 = vadd.f32 %v2019_v0, %v2018_v52  ;;  %v1771_v40 = vadd.f32 %v1770_v4, %v5541_v49  ;;  %v1915_v60 = vadd.f32 %v1914_v2, %v5549_v54  ;;  %v1987_v35 = vadd.f32 %v1986_v30, %v5552_v3 }
 0x1ef   :  { %v5641_v26 = vadd.f32 %v5605_v29, %v1975_v17  ;;  %v1628_v33 = vrot.slane %v1627_v63, 4  ;;  %v1700_v15 = vrot.slane %v1699_v24, 4  ;;  %v593_v1 = vadd.f32 %v9043_v62, %v9051_v58 }
 0x1f0   :  { %v2011_v55 = vadd.f32 %v2010_v28, %v2009_v13  ;;  %v1772_v52 = vrot.slane %v1771_v40, 4  ;;  %v1916_v10 = vrot.slane %v1915_v60, 4  ;;  %v1988_v54 = vrot.slane %v1987_v35, 4 }
 0x1f1   :  { %9049 = vst [vmem:[#allocation95_spill] sm:$0xff] %v5641_v26  ;;  %v5653_v53 = vsel %vm2407_vm0, %v5641_v26, -inf  ;;  %v1629_v49 = vadd.f32 %v1628_v33, %v1627_v63  ;;  %v1701_v46 = vadd.f32 %v1700_v15, %v1699_v24  ;;  %v625_v3 = vadd.f32 %v9044_v22, %v9051_v58 }
 0x1f2   :  { %9050 = vst [vmem:[#allocation93_spill] sm:$0xff] %v5653_v53  ;;  %v1773_v23 = vadd.f32 %v1772_v52, %v1771_v40  ;;  %v1917_v34 = vadd.f32 %v1916_v10, %v1915_v60  ;;  %v657_v51 = vadd.f32 %v5266_v31, %v9051_v58  ;;  %v721_v36 = vadd.f32 %v9045_v41, %v9051_v58 }
 0x1f3   :  { %v1630_v13 = vrot.slane %v1629_v49, 2  ;;  %v1702_v9 = vrot.slane %v1701_v46, 2  ;;  %v1989_v14 = vadd.f32 %v1988_v54, %v1987_v35  ;;  %v753_v37 = vadd.f32 %v9046_v16, %v9051_v58 }
 0x1f4   :  { %v1774_v5 = vrot.slane %v1773_v23, 2  ;;  %v1918_v50 = vrot.slane %v1917_v34, 2  ;;  %v785_v0 = vadd.f32 %v5305_v6, %v9051_v58  ;;  %v849_v20 = vmul.f32 0.2, %v593_v1 }
 0x1f5   :  { %v1631_v43 = vadd.f32 %v1630_v13, %v1629_v49  ;;  %v1703_v17 = vadd.f32 %v1702_v9, %v1701_v46  ;;  %v1990_v27 = vrot.slane %v1989_v14, 2  ;;  %v881_v11 = vmul.f32 0.2, %v625_v3 }
 0x1f6   :  { %v5669_v56 = vadd.f32 %v2262_v39, %v2020_v44  ;;  %v1775_v28 = vadd.f32 %v1774_v5, %v1773_v23  ;;  %v913_v4 = vmul.f32 0.2, %v657_v51  ;;  %v977_v2 = vmul.f32 0.2, %v721_v36 }
 0x1f7   :  { %v5671_v30 = vadd.f32 %v2261_v8, %v2011_v55  ;;  %v1632_v63 = vrot.slane %v1631_v43, 1  ;;  %v1919_v24 = vadd.f32 %v1918_v50, %v1917_v34  ;;  %v1009_v40 = vmul.f32 0.2, %v753_v37 }
 0x1f8   :  { %9052 = vst [vmem:[#allocation111_spill] sm:$0xff] %v5669_v56  ;;  %v1704_v60 = vrot.slane %v1703_v17, 1  ;;  %v1991_v35 = vadd.f32 %v1990_v27, %v1989_v14  ;;  %v1041_v33 = vmul.f32 0.2, %v785_v0  ;;  %v1105_v15 = vmax.f32 %v593_v1, %v849_v20 }
 0x1f9   :  { %9053 = vst [vmem:[#allocation115_spill] sm:$0xff] %v5671_v30  ;;  %v1776_v49 = vrot.slane %v1775_v28, 1  ;;  %v1137_v46 = vmax.f32 %v625_v3, %v881_v11  ;;  %v5678_v44 = vsel %vm2407_vm0, %v5669_v56, -inf  ;;  %v1169_v8 = vmax.f32 %v657_v51, %v913_v4 }
 0x1fa   :  { %9054 = vst [vmem:[#allocation42_spill] sm:$0xff] %v5678_v44  ;;  %v1233_v55 = vmax.f32 %v721_v36, %v977_v2  ;;  %v5682_v54 = vsel %vm2407_vm0, %v5671_v30, -inf  ;;  %v1633_v23 = vadd.f32 %v1632_v63, %v1631_v43  ;;  %v1920_v1 = vrot.slane %v1919_v24, 1 }
 0x1fb   :  { %9055 = vst [vmem:[#allocation113_spill] sm:$0xff] %v5682_v54  ;;  %v1265_v34 = vmax.f32 %v753_v37, %v1009_v40  ;;  %v1705_v13 = vadd.f32 %v1704_v60, %v1703_v17  ;;  %v1992_v9 = vrot.slane %v1991_v35, 1  ;;  %v1297_v14 = vmax.f32 %v785_v0, %v1041_v33  ;;  %v9056_v37 = vld [vmem:[#allocation13_spill] sm:$0xff] }
 0x1fc   :  { %v1377_v3 = vmul.f32 %v4430_v45, %v1105_v15  ;;  %v5685_v5 = vadd.f32 %v1776_v49, %v1775_v28  ;;  %v1409_v50 = vmul.f32 %v4430_v45, %v1137_v46  ;;  %v1441_v20 = vmul.f32 %v4430_v45, %v1169_v8  ;;  %v9057_v17 = vld [vmem:[#allocation97_spill] sm:$0xff] }
 0x1fd   :  { %v1505_v51 = vmul.f32 %v4430_v45, %v1233_v55  ;;  %v1537_v36 = vmul.f32 %v4430_v45, %v1265_v34  ;;  %v1569_v27 = vmul.f32 %v4430_v45, %v1297_v14  ;;  %v5695_v11 = vadd.f32 %v9057_v17, %v9056_v37  ;;  %v9060_v46 = vld [vmem:[#allocation77_spill] sm:$0xff] }
 0x1fe   :  { %v1662_v43 = vadd.f32 %v5490_v32, %v1377_v3  ;;  %v1921_v0 = vadd.f32 %v1920_v1, %v1919_v24  ;;  %v1734_v28 = vadd.f32 %v5493_v25, %v1409_v50  ;;  %v1806_v4 = vadd.f32 %v5496_v12, %v1441_v20  ;;  %v9058_v32 = vld [vmem:[#allocation27_spill] sm:$0xff] }
 0x1ff   :  { %v1950_v2 = vadd.f32 %v5501_v59, %v1505_v51  ;;  %v2022_v40 = vadd.f32 %v5504_v18, %v1537_v36  ;;  %v5703_v60 = vadd.f32 %v5507_v57, %v1569_v27  ;;  %v664_v33 = vadd.f32 %v9058_v32, %v5695_v11  ;;  %v9059_v12 = vld [vmem:[#allocation79_spill] sm:$0xff]  ;;  %v9061_v18 = vld [vmem:[#allocation105_spill] sm:$0xff]  ;;  %v9062_v57 = vld [vmem:[#allocation28_spill] sm:$0xff] }
 0x200   :  { %v1663_v63 = vadd.f32 %v1662_v43, %v5578_v7  ;;  %v1735_v15 = vadd.f32 %v1734_v28, %v5586_v47  ;;  %v1807_v24 = vadd.f32 %v1806_v4, %v5589_v48  ;;  %v668_v49 = vadd.f32 %v9059_v12, %v5695_v11  ;;  %v9063_v48 = vld [vmem:[#allocation80_spill] sm:$0xff]  ;;  %v9064_v51 = vld [vmem:[#allocation106_spill] sm:$0xff] }
 0x201   :  { %v1951_v25 = vadd.f32 %v1950_v2, %v5593_v19  ;;  %v2023_v7 = vadd.f32 %v2022_v40, %v9060_v46  ;;  %v672_v8 = vadd.f32 %v9061_v18, %v5695_v11  ;;  %v5717_v55 = vadd.f32 %v9062_v57, %v5695_v11  ;;  %v5723_v19 = vpop.f32.mrb[31].mxu0  ;;  %v9065_v27 = vld [vmem:[#allocation20_spill] sm:$0xff]  ;;  %v9068_v40 = vld [vmem:[#allocation19_spill] sm:$0xff] }
 0x202   :  { %v1664_v59 = vrot.slane %v1663_v63, 4  ;;  %v1736_v1 = vrot.slane %v1735_v15, 4  ;;  %v1808_v34 = vrot.slane %v1807_v24, 4  ;;  %v5721_v14 = vadd.f32 %v9063_v48, %v5695_v11 }
 0x203   :  { %v1952_v47 = vrot.slane %v1951_v25, 4  ;;  %v1993_v3 = vadd.f32 %v1992_v9, %v1991_v35  ;;  %v2024_v20 = vrot.slane %v2023_v7, 4  ;;  %v688_v36 = vadd.f32 %v9064_v51, %v5695_v11 }
 0x204   :  { %v1665_v50 = vadd.f32 %v1664_v59, %v1663_v63  ;;  %v9066_v43 = vrot.slane %v9065_v27, 2  ;;  %v1737_v28 = vadd.f32 %v1736_v1, %v1735_v15  ;;  %v1809_v4 = vadd.f32 %v1808_v34, %v1807_v24 }
 0x205   :  { %v1953_v2 = vadd.f32 %v1952_v47, %v1951_v25  ;;  %v9069_v46 = vrot.slane %v9068_v40, 2  ;;  %v2025_v52 = vadd.f32 %v2024_v20, %v2023_v7  ;;  %v920_v10 = vmul.f32 0.2, %v664_v33 }
 0x206   :  { %v5729_v17 = vadd.f32 %v9066_v43, %v1633_v23  ;;  %v1666_v21 = vrot.slane %v1665_v50, 2  ;;  %v1738_v35 = vrot.slane %v1737_v28, 2  ;;  %v1810_v9 = vrot.slane %v1809_v4, 2 }
 0x207   :  { %v5733_v39 = vadd.f32 %v9069_v46, %v1705_v13  ;;  %v1954_v63 = vrot.slane %v1953_v2, 2  ;;  %v924_v59 = vmul.f32 0.2, %v668_v49  ;;  %v2026_v30 = vrot.slane %v2025_v52, 2 }
 0x208   :  { %9067 = vst [vmem:[#allocation13_spill] sm:$0xff] %v5729_v17  ;;  %v1667_v56 = vadd.f32 %v1666_v21, %v1665_v50  ;;  %v928_v38 = vmul.f32 0.2, %v672_v8  ;;  %v936_v23 = vmul.f32 0.2, %v5717_v55  ;;  %v1739_v43 = vadd.f32 %v1738_v35, %v1737_v28  ;;  %v9071_v50 = vld [vmem:[#allocation67_spill] sm:$0xff] }
 0x209   :  { %9070 = vst [vmem:[#allocation97_spill] sm:$0xff] %v5733_v39  ;;  %v1811_v15 = vadd.f32 %v1810_v9, %v1809_v4  ;;  %v1955_v24 = vadd.f32 %v1954_v63, %v1953_v2  ;;  %v940_v25 = vmul.f32 0.2, %v5721_v14  ;;  %v2027_v13 = vadd.f32 %v2026_v30, %v2025_v52  ;;  %v9072_v28 = vld [vmem:[#allocation24_spill] sm:$0xff]  ;;  %v9075_v35 = vld [vmem:[#allocation21_spill] sm:$0xff] }
 0x20a   :  { %v1668_v1 = vrot.slane %v1667_v56, 1  ;;  %v944_v34 = vmul.f32 0.2, %v688_v36  ;;  %v1176_v47 = vmax.f32 %v664_v33, %v920_v10  ;;  %v1740_v7 = vrot.slane %v1739_v43, 1  ;;  %v9135_v17 = vld [vmem:[#allocation112_spill] sm:$0xff] }
 0x20b   :  { %v1812_v20 = vrot.slane %v1811_v15, 1  ;;  %v1956_v46 = vrot.slane %v1955_v24, 1  ;;  %v1180_v26 = vmax.f32 %v668_v49, %v924_v59  ;;  %v2028_v54 = vrot.slane %v2027_v13, 1 }
 0x20c   :  { %v1669_v44 = vadd.f32 %v1668_v1, %v1667_v56  ;;  %v1184_v21 = vmax.f32 %v672_v8, %v928_v38  ;;  %v5739_v42 = vadd.f32 %v9071_v50, %v9056_v37  ;;  %v9073_v4 = vrot.slane %v9072_v28, 2  ;;  %v9080_v8 = vld [vmem:[#allocation16_spill] sm:$0xff] }
 0x20d   :  { %v9076_v30 = vrot.slane %v9075_v35, 2  ;;  %v9078_v10 = vrot.slane %v5605_v29, 2  ;;  %v1192_v56 = vmax.f32 %v5717_v55, %v936_v23  ;;  %v1741_v38 = vadd.f32 %v1740_v7, %v1739_v43  ;;  %v9092_v43 = vld [vmem:[#allocation11_spill] sm:$0xff]  ;;  %v9098_v7 = vld [vmem:[#allocation33_spill] sm:$0xff] }
 0x20e   :  { %v5744_v2 = vadd.f32 %v9073_v4, %v5685_v5  ;;  %v1196_v49 = vmax.f32 %v5721_v14, %v940_v25  ;;  %v1200_v37 = vmax.f32 %v688_v36, %v944_v34  ;;  %v1448_v9 = vmul.f32 %v9080_v8, %v1176_v47  ;;  %v9100_v4 = vld [vmem:[#allocation107_spill] sm:$0xff] }
 0x20f   :  { %v5748_v52 = vadd.f32 %v9076_v30, %v1921_v0  ;;  %v5752_v33 = vadd.f32 %v9078_v10, %v1993_v3  ;;  %v1813_v63 = vadd.f32 %v1812_v20, %v1811_v15  ;;  %v1957_v59 = vadd.f32 %v1956_v46, %v1955_v24  ;;  %v9099_v46 = vld [vmem:[#allocation83_spill] sm:$0xff]  ;;  %v9101_v10 = vld [vmem:[#allocation14_spill] sm:$0xff] }
 0x210   :  { %9074 = vst [vmem:[#allocation27_spill] sm:$0xff] %v5744_v2  ;;  %v2029_v5 = vadd.f32 %v2028_v54, %v2027_v13  ;;  %v1452_v1 = vmul.f32 %v9080_v8, %v1180_v26  ;;  %v9081_v0 = vrot.slane %v9065_v27, 6  ;;  %v1456_v3 = vmul.f32 %v9080_v8, %v1184_v21 }
 0x211   :  { %9077 = vst [vmem:[#allocation79_spill] sm:$0xff] %v5748_v52  ;;  %9079 = vst [vmem:[#allocation77_spill] sm:$0xff] %v5752_v33  ;;  %v5765_v55 = vadd.f32 %v9058_v32, %v5739_v42  ;;  %v5769_v14 = vadd.f32 %v9059_v12, %v5739_v42  ;;  %v5773_v36 = vadd.f32 %v9061_v18, %v5739_v42  ;;  %v9089_v32 = vrot.slane %v9068_v40, 6  ;;  %v9091_v18 = vld [vmem:[#allocation54_spill] sm:$0xff] }
 0x212   :  { %v5760_v50 = vadd.f32 %v9081_v0, %v1669_v44  ;;  %v5777_v26 = vadd.f32 %v9062_v57, %v5739_v42  ;;  %v5781_v44 = vadd.f32 %v9063_v48, %v5739_v42  ;;  %v5785_v54 = vadd.f32 %v9064_v51, %v5739_v42  ;;  %v9093_v57 = vld [vmem:[#allocation100_spill] sm:$0xff] }
 0x213   :  { %9083 = vst [vmem:[#allocation28_spill] sm:$0xff] %v5765_v55  ;;  %9084 = vst [vmem:[#allocation80_spill] sm:$0xff] %v5769_v14  ;;  %v5789_v12 = vadd.f32 %v9089_v32, %v1741_v38  ;;  %v1464_v23 = vmul.f32 %v9080_v8, %v1192_v56  ;;  %v5794_v15 = vadd.f32 %v9092_v43, %v9091_v18  ;;  %v9094_v48 = vrot.slane %v9072_v28, 6  ;;  %v9102_v56 = vld [vmem:[#allocation32_spill] sm:$0xff] }
 0x214   :  { %9082 = vst [vmem:[#allocation105_spill] sm:$0xff] %v5760_v50  ;;  %9085 = vst [vmem:[#allocation106_spill] sm:$0xff] %v5773_v36  ;;  %v5798_v24 = vadd.f32 %v9092_v43, %v9093_v57  ;;  %v9096_v51 = vrot.slane %v9075_v35, 6  ;;  %v1468_v34 = vmul.f32 %v9080_v8, %v1196_v49  ;;  %v1472_v47 = vmul.f32 %v9080_v8, %v1200_v37  ;;  %v9104_v0 = vld [vmem:[#allocation84_spill] sm:$0xff] }
 0x215   :  { %9086 = vst [vmem:[#allocation67_spill] sm:$0xff] %v5777_v26  ;;  %9087 = vst [vmem:[#allocation140_spill] sm:$0xff] %v5781_v44  ;;  %v5802_v25 = vadd.f32 %v9094_v48, %v1813_v63  ;;  %v663_v20 = vadd.f32 %v5794_v15, %v9098_v7  ;;  %v667_v21 = vadd.f32 %v5794_v15, %v9099_v46  ;;  %v9103_v63 = vld [vmem:[#allocation34_spill] sm:$0xff]  ;;  %v9105_v37 = vld [vmem:[#allocation108_spill] sm:$0xff] }
 0x216   :  { %9088 = vst [vmem:[#allocation141_spill] sm:$0xff] %v5785_v54  ;;  %9090 = vst [vmem:[#allocation142_spill] sm:$0xff] %v5789_v12  ;;  %v5806_v13 = vadd.f32 %v9096_v51, %v1957_v59  ;;  %v671_v30 = vadd.f32 %v5794_v15, %v9100_v4  ;;  %v5818_v38 = vadd.f32 %v9102_v56, %v9101_v10 }
 0x217   :  { %9095 = vst [vmem:[#allocation54_spill] sm:$0xff] %v5802_v25  ;;  %v679_v59 = vadd.f32 %v5794_v15, %v9103_v63  ;;  %v683_v49 = vadd.f32 %v5794_v15, %v9104_v0  ;;  %v687_v32 = vadd.f32 %v5794_v15, %v9105_v37  ;;  %v5828_v18 = vadd.f32 %v5798_v24, %v9098_v7 }
 0x218   :  { %9097 = vst [vmem:[#allocation11_spill] sm:$0xff] %v5806_v13  ;;  %v919_v43 = vmul.f32 0.2, %v663_v20  ;;  %v923_v57 = vmul.f32 0.2, %v667_v21  ;;  %v5832_v51 = vadd.f32 %v5798_v24, %v9099_v46  ;;  %v5836_v25 = vadd.f32 %v5798_v24, %v9100_v4 }
 0x219   :  { %9106 = vst [vmem:[#allocation100_spill] sm:$0xff] %v5828_v18  ;;  %v927_v48 = vmul.f32 0.2, %v671_v30  ;;  %v935_v56 = vmul.f32 0.2, %v679_v59  ;;  %v5840_v7 = vadd.f32 %v5798_v24, %v9103_v63  ;;  %v5844_v46 = vadd.f32 %v5798_v24, %v9104_v0 }
 0x21a   :  { %9107 = vst [vmem:[#allocation33_spill] sm:$0xff] %v5832_v51  ;;  %v939_v55 = vmul.f32 0.2, %v683_v49  ;;  %v943_v13 = vmul.f32 0.2, %v687_v32  ;;  %9108 = vst [vmem:[#allocation83_spill] sm:$0xff] %v5836_v25  ;;  %v1175_v12 = vmax.f32 %v663_v20, %v919_v43  ;;  %v1179_v50 = vmax.f32 %v667_v21, %v923_v57 }
 0x21b   :  { %v1183_v53 = vmax.f32 %v671_v30, %v927_v48  ;;  %9109 = vst [vmem:[#allocation107_spill] sm:$0xff] %v5840_v7  ;;  %v1191_v18 = vmax.f32 %v679_v59, %v935_v56  ;;  %9110 = vst [vmem:[#allocation14_spill] sm:$0xff] %v5844_v46  ;;  %v9111_v51 = vld [vmem:[#allocation15_spill] sm:$0xff]  ;;  %v5851_v20 = vadd.f32 %v5798_v24, %v9105_v37  ;;  %v9113_v21 = vrot.slane %v5605_v29, 6  ;;  %v9124_v43 = vld [vmem:[#allocation110_spill] sm:$0xff] }
 0x21c   :  { %v1195_v33 = vmax.f32 %v683_v49, %v939_v55  ;;  %v1199_v52 = vmax.f32 %v687_v32, %v943_v13  ;;  %v1447_v2 = vmul.f32 %v9111_v51, %v1175_v12  ;;  %v1451_v39 = vmul.f32 %v9111_v51, %v1179_v50 }
 0x21d   :  { %v1455_v4 = vmul.f32 %v9111_v51, %v1183_v53  ;;  %9112 = vst [vmem:[#allocation32_spill] sm:$0xff] %v5851_v20  ;;  %v5855_v30 = vadd.f32 %v9113_v21, %v2029_v5  ;;  %v1463_v55 = vmul.f32 %v9111_v51, %v1191_v18  ;;  %v5861_v12 = vmul.f32 0.2, %v5769_v14  ;;  %v9126_v21 = vld [vmem:[#allocation12_spill] sm:$0xff]  ;;  %v9132_v20 = vld [vmem:[#allocation51_spill] sm:$0xff] }
 0x21e   :  { %v1467_v13 = vmul.f32 %v9111_v51, %v1195_v33  ;;  %v1471_v63 = vmul.f32 %v9111_v51, %v1199_v52  ;;  %v5863_v50 = vadd.f32 %v1448_v9, %v1447_v2  ;;  %v5865_v53 = vadd.f32 %v1452_v1, %v1451_v39  ;;  %v9119_v39 = vld [vmem:[#allocation46_spill] sm:$0xff]  ;;  %v9120_v9 = vld [vmem:[#allocation85_spill] sm:$0xff] }
 0x21f   :  { %9114 = vst [vmem:[#allocation34_spill] sm:$0xff] %v5855_v30  ;;  %9115 = vst [vmem:[#allocation84_spill] sm:$0xff] %v5861_v12  ;;  %v5867_v59 = vadd.f32 %v1456_v3, %v1455_v4  ;;  %v5870_v0 = vmul.f32 0.2, %v5773_v36  ;;  %v5872_v5 = vadd.f32 %v1464_v23, %v1463_v55  ;;  %v5879_v52 = vmul.f32 0.2, %v5777_v26 }
 0x220   :  { %v5874_v49 = vadd.f32 %v1468_v34, %v1467_v13  ;;  %v5876_v37 = vadd.f32 %v1472_v47, %v1471_v63  ;;  %v5882_v33 = vmul.f32 0.2, %v5781_v44  ;;  %v666_v2 = vadd.f32 %v9119_v39, %v5818_v38  ;;  %v9121_v3 = vld [vmem:[#allocation109_spill] sm:$0xff]  ;;  %v9122_v34 = vld [vmem:[#allocation47_spill] sm:$0xff]  ;;  %v9123_v47 = vld [vmem:[#allocation86_spill] sm:$0xff]  ;;  %v5904_v44 = vpop.f32.mrb[31].mxu1 }
 0x221   :  { %9116 = vst [vmem:[#allocation108_spill] sm:$0xff] %v5870_v0  ;;  %9117 = vst [vmem:[#allocation143_spill] sm:$0xff] %v5879_v52  ;;  %v670_v1 = vadd.f32 %v9120_v9, %v5818_v38  ;;  %v674_v23 = vadd.f32 %v9121_v3, %v5818_v38  ;;  %v682_v32 = vadd.f32 %v9122_v34, %v5818_v38  ;;  %v9125_v4 = vld [vmem:[#allocation55_spill] sm:$0xff]  ;;  %v9128_v13 = vld [vmem:[#allocation66_spill] sm:$0xff] }
 0x222   :  { %9118 = vst [vmem:[#allocation144_spill] sm:$0xff] %v5882_v33  ;;  %v686_v18 = vadd.f32 %v9123_v47, %v5818_v38  ;;  %v690_v57 = vadd.f32 %v9124_v43, %v5818_v38  ;;  %v922_v48 = vmul.f32 0.2, %v666_v2  ;;  %v5898_v55 = vadd.f32 %v9126_v21, %v9125_v4  ;;  %9129 = vst [vmem:[#allocation12_spill] sm:$0xff] %v5904_v44  ;;  %v9130_v36 = vld [vmem:[#allocation22_spill] sm:$0xff]  ;;  %v9131_v0 = vld [vmem:[#allocation123_spill] sm:$0xff] }
 0x223   :  { %v926_v56 = vmul.f32 0.2, %v670_v1  ;;  %v5902_v63 = vadd.f32 %v9126_v21, %v9128_v13  ;;  %v930_v33 = vmul.f32 0.2, %v674_v23  ;;  %v938_v26 = vmul.f32 0.2, %v682_v32 }
 0x224   :  { %9127 = vst [vmem:[#allocation55_spill] sm:$0xff] %v5898_v55  ;;  %v942_v52 = vmul.f32 0.2, %v686_v18  ;;  %v5908_v14 = vadd.f32 %v9131_v0, %v9130_v36  ;;  %v946_v12 = vmul.f32 0.2, %v690_v57  ;;  %v1178_v43 = vmax.f32 %v666_v2, %v922_v48  ;;  %v9133_v21 = vld [vmem:[#allocation89_spill] sm:$0xff] }
 0x225   :  { %v1182_v3 = vmax.f32 %v670_v1, %v926_v56  ;;  %v665_v4 = vadd.f32 %v5898_v55, %v9132_v20  ;;  %v1186_v46 = vmax.f32 %v674_v23, %v930_v33  ;;  %v1194_v7 = vmax.f32 %v682_v32, %v938_v26  ;;  %v9134_v44 = vld [vmem:[#allocation17_spill] sm:$0xff]  ;;  %v9136_v33 = vld [vmem:[#allocation52_spill] sm:$0xff]  ;;  %v9137_v23 = vld [vmem:[#allocation90_spill] sm:$0xff] }
 0x226   :  { %v1198_v25 = vmax.f32 %v686_v18, %v942_v52  ;;  %v669_v13 = vadd.f32 %v5898_v55, %v9133_v21  ;;  %v1202_v30 = vmax.f32 %v690_v57, %v946_v12  ;;  %v1450_v29 = vmul.f32 %v9134_v44, %v1178_v43 }
 0x227   :  { %v1454_v35 = vmul.f32 %v9134_v44, %v1182_v3  ;;  %v673_v40 = vadd.f32 %v5898_v55, %v9135_v17  ;;  %v1458_v2 = vmul.f32 %v9134_v44, %v1186_v46  ;;  %v1466_v1 = vmul.f32 %v9134_v44, %v1194_v7 }
 0x228   :  { %v1470_v48 = vmul.f32 %v9134_v44, %v1198_v25  ;;  %v681_v26 = vadd.f32 %v5898_v55, %v9136_v33  ;;  %v1474_v52 = vmul.f32 %v9134_v44, %v1202_v30  ;;  %v685_v12 = vadd.f32 %v5898_v55, %v9137_v23 }
 0x229   :  { %v689_v3 = vadd.f32 %v5898_v55, %v9051_v58  ;;  %v921_v32 = vmul.f32 0.2, %v665_v4  ;;  %v925_v18 = vmul.f32 0.2, %v669_v13  ;;  %v929_v43 = vmul.f32 0.2, %v673_v40 }
 0x22a   :  { %v937_v57 = vmul.f32 0.2, %v681_v26  ;;  %v5930_v7 = vadd.f32 %v5902_v63, %v9133_v21  ;;  %v941_v25 = vmul.f32 0.2, %v685_v12  ;;  %v5934_v30 = vadd.f32 %v5902_v63, %v9135_v17 }
 0x22b   :  { %v945_v46 = vmul.f32 0.2, %v689_v3  ;;  %v1177_v56 = vmax.f32 %v665_v4, %v921_v32  ;;  %v1181_v27 = vmax.f32 %v669_v13, %v925_v18  ;;  %v1185_v28 = vmax.f32 %v673_v40, %v929_v43 }
 0x22c   :  { %9138 = vst [vmem:[#allocation66_spill] sm:$0xff] %v5930_v7  ;;  %9139 = vst [vmem:[#allocation22_spill] sm:$0xff] %v5934_v30  ;;  %v1193_v16 = vmax.f32 %v681_v26, %v937_v57  ;;  %v5938_v41 = vadd.f32 %v5902_v63, %v9136_v33  ;;  %v1197_v55 = vmax.f32 %v685_v12, %v941_v25  ;;  %v9145_v25 = vld [vmem:[#allocation23_spill] sm:$0xff] }
 0x22d   :  { %v1201_v31 = vmax.f32 %v689_v3, %v945_v46  ;;  %v1449_v22 = vmul.f32 %v4430_v45, %v1177_v56  ;;  %v5943_v21 = vadd.f32 %v5902_v63, %v9137_v23  ;;  %v1453_v4 = vmul.f32 %v4430_v45, %v1181_v27  ;;  %v9143_v3 = vld [vmem:[#allocation70_spill] sm:$0xff]  ;;  %v9146_v56 = vld [vmem:[#allocation71_spill] sm:$0xff] }
 0x22e   :  { %9140 = vst [vmem:[#allocation123_spill] sm:$0xff] %v5938_v41  ;;  %v1457_v17 = vmul.f32 %v4430_v45, %v1185_v28  ;;  %v1465_v13 = vmul.f32 %v4430_v45, %v1193_v16  ;;  %v5950_v40 = vadd.f32 %v5902_v63, %v9051_v58  ;;  %v1469_v33 = vmul.f32 %v4430_v45, %v1197_v55  ;;  %v9144_v16 = vld [vmem:[#allocation98_spill] sm:$0xff] }
 0x22f   :  { %9141 = vst [vmem:[#allocation89_spill] sm:$0xff] %v5943_v21  ;;  %v1473_v26 = vmul.f32 %v4430_v45, %v1201_v31  ;;  %v1824_v12 = vadd.f32 %v5863_v50, %v1449_v22  ;;  %v612_v23 = vadd.f32 %v9131_v0, %v9143_v3  ;;  %v1833_v32 = vadd.f32 %v5865_v53, %v1453_v4 }
 0x230   :  { %9142 = vst [vmem:[#allocation112_spill] sm:$0xff] %v5950_v40  ;;  %v1842_v27 = vadd.f32 %v5867_v59, %v1457_v17  ;;  %v1860_v28 = vadd.f32 %v5872_v5, %v1465_v13  ;;  %v644_v18 = vadd.f32 %v9131_v0, %v9144_v16  ;;  %v1869_v43 = vadd.f32 %v5874_v49, %v1469_v33  ;;  %v9147_v13 = vld [vmem:[#allocation96_spill] sm:$0xff] }
 0x231   :  { %v1825_v58 = vadd.f32 %v1824_v12, %v1450_v29  ;;  %v1878_v55 = vadd.f32 %v5876_v37, %v1473_v26  ;;  %v676_v31 = vadd.f32 %v9131_v0, %v5695_v11  ;;  %v1834_v22 = vadd.f32 %v1833_v32, %v1454_v35 }
 0x232   :  { %v1843_v50 = vadd.f32 %v1842_v27, %v1458_v2  ;;  %v1861_v57 = vadd.f32 %v1860_v28, %v1466_v1  ;;  %v708_v53 = vadd.f32 %v9131_v0, %v9145_v25  ;;  %v1870_v46 = vadd.f32 %v1869_v43, %v1470_v48 }
 0x233   :  { %v1826_v59 = vrot.slane %v1825_v58, 4  ;;  %v1879_v5 = vadd.f32 %v1878_v55, %v1474_v52  ;;  %v740_v4 = vadd.f32 %v9131_v0, %v9146_v56  ;;  %v1835_v29 = vrot.slane %v1834_v22, 4  ;;  %v9151_v55 = vld [vmem:[#allocation64_spill] sm:$0xff] }
 0x234   :  { %v1844_v17 = vrot.slane %v1843_v50, 4  ;;  %v1862_v49 = vrot.slane %v1861_v57, 4  ;;  %v5972_v37 = vadd.f32 %v9131_v0, %v9147_v13  ;;  %v1871_v35 = vrot.slane %v1870_v46, 4 }
 0x235   :  { %v1827_v33 = vadd.f32 %v1826_v59, %v1825_v58  ;;  %v1880_v2 = vrot.slane %v1879_v5, 4  ;;  %v5976_v1 = vadd.f32 %v9131_v0, %v5739_v42  ;;  %v1836_v26 = vadd.f32 %v1835_v29, %v1834_v22 }
 0x236   :  { %v5978_v48 = vadd.f32 %v1844_v17, %v1843_v50  ;;  %v5980_v52 = vadd.f32 %v1862_v49, %v1861_v57  ;;  %v836_v12 = vmul.f32 0.2, %v5908_v14  ;;  %v1872_v27 = vadd.f32 %v1871_v35, %v1870_v46 }
 0x237   :  { %v1828_v32 = vrot.slane %v1827_v33, 2  ;;  %v5983_v28 = vadd.f32 %v1880_v2, %v1879_v5  ;;  %v868_v43 = vmul.f32 0.2, %v612_v23  ;;  %v5986_v58 = vmul.f32 0.2, %v5785_v54 }
 0x238   :  { %9148 = vst [vmem:[#allocation52_spill] sm:$0xff] %v5980_v52  ;;  %v5990_v59 = vadd.f32 %v9151_v55, %v9101_v10  ;;  %v1837_v0 = vrot.slane %v1836_v26, 2  ;;  %v900_v22 = vmul.f32 0.2, %v644_v18  ;;  %v1873_v29 = vrot.slane %v1872_v27, 2 }
 0x239   :  { %9149 = vst [vmem:[#allocation90_spill] sm:$0xff] %v5983_v28  ;;  %9150 = vst [vmem:[#allocation70_spill] sm:$0xff] %v5986_v58  ;;  %v932_v17 = vmul.f32 0.2, %v676_v31  ;;  %v5994_v49 = vadd.f32 %v1828_v32, %v1827_v33  ;;  %v964_v46 = vmul.f32 0.2, %v708_v53  ;;  %v1092_v10 = vmax.f32 %v5908_v14, %v836_v12 }
 0x23a   :  { %9152 = vst [vmem:[#allocation98_spill] sm:$0xff] %v5990_v59  ;;  %v996_v5 = vmul.f32 0.2, %v740_v4  ;;  %v1028_v35 = vmul.f32 0.2, %v5972_v37  ;;  %v1124_v55 = vmax.f32 %v612_v23, %v868_v43  ;;  %v1156_v58 = vmax.f32 %v644_v18, %v900_v22 }
 0x23b   :  { %v1060_v54 = vmul.f32 0.2, %v5976_v1  ;;  %v1188_v40 = vmax.f32 %v676_v31, %v932_v17  ;;  %v1220_v50 = vmax.f32 %v708_v53, %v964_v46  ;;  %v6000_v57 = vadd.f32 %v1837_v0, %v1836_v26  ;;  %v9159_v0 = vld [vmem:[#allocation25_spill] sm:$0xff] }
 0x23c   :  { %v1252_v21 = vmax.f32 %v740_v4, %v996_v5  ;;  %v6002_v41 = vadd.f32 %v1873_v29, %v1872_v27  ;;  %v1284_v33 = vmax.f32 %v5972_v37, %v1028_v35  ;;  %v6007_v30 = vmul.f32 %v9080_v8, %v1092_v10 }
 0x23d   :  { %v1316_v32 = vmax.f32 %v5976_v1, %v1060_v54  ;;  %v6010_v2 = vmul.f32 %v9080_v8, %v1124_v55  ;;  %v6013_v14 = vmul.f32 %v9080_v8, %v1156_v58  ;;  %v6016_v23 = vmul.f32 %v9080_v8, %v1188_v40  ;;  %v9157_v54 = vld [vmem:[#allocation133_spill] sm:$0xff]  ;;  %v9158_v58 = vld [vmem:[#allocation135_spill] sm:$0xff] }
 0x23e   :  { %9153 = vst [vmem:[#allocation23_spill] sm:$0xff] %v6002_v41  ;;  %v6019_v18 = vmul.f32 %v9080_v8, %v1220_v50  ;;  %v6022_v31 = vmul.f32 %v9080_v8, %v1252_v21  ;;  %v596_v53 = vadd.f32 %v9157_v54, %v9130_v36  ;;  %v628_v4 = vadd.f32 %v9157_v54, %v9143_v3 }
 0x23f   :  { %9154 = vst [vmem:[#allocation71_spill] sm:$0xff] %v6016_v23  ;;  %v660_v37 = vadd.f32 %v9157_v54, %v9144_v16  ;;  %v692_v1 = vadd.f32 %v9157_v54, %v5695_v11  ;;  %v724_v40 = vadd.f32 %v9157_v54, %v9145_v25  ;;  %v756_v26 = vadd.f32 %v9157_v54, %v9146_v56 }
 0x240   :  { %9155 = vst [vmem:[#allocation96_spill] sm:$0xff] %v6019_v18  ;;  %9156 = vst [vmem:[#allocation64_spill] sm:$0xff] %v6022_v31  ;;  %v788_v21 = vadd.f32 %v9157_v54, %v9147_v13  ;;  %v820_v36 = vadd.f32 %v9157_v54, %v5739_v42  ;;  %v852_v12 = vmul.f32 0.2, %v596_v53  ;;  %v884_v3 = vmul.f32 0.2, %v628_v4 }
 0x241   :  { %v916_v27 = vmul.f32 0.2, %v660_v37  ;;  %v948_v43 = vmul.f32 0.2, %v692_v1  ;;  %v980_v16 = vmul.f32 0.2, %v724_v40  ;;  %v579_v11 = vadd.f32 %v9159_v0, %v9158_v58 }
 0x242   :  { %v1012_v22 = vmul.f32 0.2, %v756_v26  ;;  %v1044_v50 = vmul.f32 0.2, %v788_v21  ;;  %v1076_v25 = vmul.f32 0.2, %v820_v36  ;;  %v1108_v29 = vmax.f32 %v596_v53, %v852_v12 }
 0x243   :  { %v1140_v17 = vmax.f32 %v628_v4, %v884_v3  ;;  %v1172_v56 = vmax.f32 %v660_v37, %v916_v27  ;;  %v1204_v46 = vmax.f32 %v692_v1, %v948_v43  ;;  %v1236_v5 = vmax.f32 %v724_v40, %v980_v16  ;;  %v9168_v37 = vld [vmem:[#allocation72_spill] sm:$0xff]  ;;  %v9169_v40 = vld [vmem:[#allocation29_spill] sm:$0xff]  ;;  %v9171_v3 = vld [vmem:[#allocation74_spill] sm:$0xff] }
 0x244   :  { %v6043_v13 = vmul.f32 %v9080_v8, %v1284_v33  ;;  %v6046_v42 = vmul.f32 %v9080_v8, %v1316_v32  ;;  %v1268_v35 = vmax.f32 %v756_v26, %v1012_v22  ;;  %v1300_v10 = vmax.f32 %v788_v21, %v1044_v50  ;;  %v9172_v43 = vld [vmem:[#allocation59_spill] sm:$0xff] }
 0x245   :  { %v1332_v55 = vmax.f32 %v820_v36, %v1076_v25  ;;  %v6049_v54 = vmul.f32 %v9080_v8, %v1108_v29  ;;  %v6052_v7 = vmul.f32 %v9080_v8, %v1140_v17  ;;  %v6055_v53 = vmul.f32 %v9080_v8, %v1172_v56  ;;  %v9170_v36 = vld [vmem:[#allocation26_spill] sm:$0xff] }
 0x246   :  { %9160 = vst [vmem:[#allocation133_spill] sm:$0xff] %v6043_v13  ;;  %9161 = vst [vmem:[#allocation135_spill] sm:$0xff] %v6046_v42  ;;  %v6058_v4 = vmul.f32 %v9080_v8, %v1204_v46  ;;  %v6061_v33 = vmul.f32 %v9080_v8, %v1236_v5  ;;  %v6064_v32 = vmul.f32 %v9080_v8, %v1268_v35  ;;  %v835_v50 = vmul.f32 0.2, %v579_v11  ;;  %v9173_v46 = vld [vmem:[#allocation136_spill] sm:$0xff] }
 0x247   :  { %9162 = vst [vmem:[#allocation25_spill] sm:$0xff] %v6049_v54  ;;  %9163 = vst [vmem:[#allocation145_spill] sm:$0xff] %v6052_v7  ;;  %v611_v1 = vadd.f32 %v9168_v37, %v9158_v58  ;;  %v643_v26 = vadd.f32 %v9169_v40, %v9158_v58  ;;  %v675_v21 = vadd.f32 %v5794_v15, %v9158_v58 }
 0x248   :  { %9164 = vst [vmem:[#allocation146_spill] sm:$0xff] %v6055_v53  ;;  %9165 = vst [vmem:[#allocation147_spill] sm:$0xff] %v6058_v4  ;;  %v707_v12 = vadd.f32 %v9170_v36, %v9158_v58  ;;  %v739_v27 = vadd.f32 %v9171_v3, %v9158_v58  ;;  %v771_v16 = vadd.f32 %v9172_v43, %v9158_v58 }
 0x249   :  { %9166 = vst [vmem:[#allocation148_spill] sm:$0xff] %v6061_v33  ;;  %9167 = vst [vmem:[#allocation149_spill] sm:$0xff] %v6064_v32  ;;  %v803_v22 = vadd.f32 %v5798_v24, %v9158_v58  ;;  %v867_v25 = vmul.f32 0.2, %v611_v1  ;;  %v899_v29 = vmul.f32 0.2, %v643_v26  ;;  %v595_v5 = vadd.f32 %v9159_v0, %v9173_v46 }
 0x24a   :  { %v931_v17 = vmul.f32 0.2, %v675_v21  ;;  %v963_v56 = vmul.f32 0.2, %v707_v12  ;;  %v995_v35 = vmul.f32 0.2, %v739_v27  ;;  %v1091_v33 = vmax.f32 %v579_v11, %v835_v50 }
 0x24b   :  { %v1027_v32 = vmul.f32 0.2, %v771_v16  ;;  %v1059_v41 = vmul.f32 0.2, %v803_v22  ;;  %v1123_v4 = vmax.f32 %v611_v1, %v867_v25  ;;  %v1155_v28 = vmax.f32 %v643_v26, %v899_v29 }
 0x24c   :  { %v1187_v53 = vmax.f32 %v675_v21, %v931_v17  ;;  %v1219_v7 = vmax.f32 %v707_v12, %v963_v56  ;;  %v6083_v54 = vmul.f32 %v9080_v8, %v1300_v10  ;;  %v6086_v58 = vmul.f32 %v9080_v8, %v1332_v55  ;;  %v9178_v12 = vld [vmem:[#allocation39_spill] sm:$0xff] }
 0x24d   :  { %v1251_v42 = vmax.f32 %v739_v27, %v995_v35  ;;  %v1283_v13 = vmax.f32 %v771_v16, %v1027_v32  ;;  %v1315_v31 = vmax.f32 %v803_v22, %v1059_v41  ;;  %v6089_v18 = vmul.f32 %v9111_v51, %v1091_v33  ;;  %v9179_v27 = vld [vmem:[#allocation138_spill] sm:$0xff] }
 0x24e   :  { %9174 = vst [vmem:[#allocation72_spill] sm:$0xff] %v6083_v54  ;;  %9175 = vst [vmem:[#allocation29_spill] sm:$0xff] %v6086_v58  ;;  %v6092_v0 = vmul.f32 %v9111_v51, %v1123_v4  ;;  %v6095_v11 = vmul.f32 %v9111_v51, %v1155_v28  ;;  %v6098_v1 = vmul.f32 %v9111_v51, %v1187_v53  ;;  %v851_v32 = vmul.f32 0.2, %v595_v5 }
 0x24f   :  { %v6101_v10 = vmul.f32 %v9111_v51, %v1219_v7  ;;  %v6104_v55 = vmul.f32 %v9111_v51, %v1251_v42  ;;  %v627_v41 = vadd.f32 %v9168_v37, %v9173_v46  ;;  %v659_v33 = vadd.f32 %v9169_v40, %v9173_v46 }
 0x250   :  { %v691_v4 = vadd.f32 %v5794_v15, %v9173_v46  ;;  %v723_v28 = vadd.f32 %v9170_v36, %v9173_v46  ;;  %v755_v53 = vadd.f32 %v9171_v3, %v9173_v46  ;;  %v787_v7 = vadd.f32 %v9172_v43, %v9173_v46 }
 0x251   :  { %9176 = vst [vmem:[#allocation26_spill] sm:$0xff] %v6101_v10  ;;  %9177 = vst [vmem:[#allocation74_spill] sm:$0xff] %v6104_v55  ;;  %v819_v42 = vadd.f32 %v5798_v24, %v9173_v46  ;;  %v883_v37 = vmul.f32 0.2, %v627_v41  ;;  %v915_v26 = vmul.f32 0.2, %v659_v33  ;;  %v582_v15 = vadd.f32 %v9179_v27, %v9178_v12 }
 0x252   :  { %v947_v21 = vmul.f32 0.2, %v691_v4  ;;  %v979_v40 = vmul.f32 0.2, %v723_v28  ;;  %v1011_v16 = vmul.f32 0.2, %v755_v53  ;;  %v1107_v50 = vmax.f32 %v595_v5, %v851_v32 }
 0x253   :  { %v1043_v22 = vmul.f32 0.2, %v787_v7  ;;  %v1075_v36 = vmul.f32 0.2, %v819_v42  ;;  %v1139_v25 = vmax.f32 %v627_v41, %v883_v37  ;;  %v1171_v3 = vmax.f32 %v659_v33, %v915_v26  ;;  %v9188_v33 = vld [vmem:[#allocation75_spill] sm:$0xff]  ;;  %v9191_v37 = vld [vmem:[#allocation76_spill] sm:$0xff] }
 0x254   :  { %v1203_v29 = vmax.f32 %v691_v4, %v947_v21  ;;  %v1235_v17 = vmax.f32 %v723_v28, %v979_v40  ;;  %v6123_v43 = vmul.f32 %v9111_v51, %v1283_v13  ;;  %v6126_v24 = vmul.f32 %v9111_v51, %v1315_v31  ;;  %v9189_v28 = vld [vmem:[#allocation57_spill] sm:$0xff]  ;;  %v9192_v21 = vld [vmem:[#allocation102_spill] sm:$0xff] }
 0x255   :  { %v1267_v56 = vmax.f32 %v755_v53, %v1011_v16  ;;  %v1299_v46 = vmax.f32 %v787_v7, %v1043_v22  ;;  %v1331_v35 = vmax.f32 %v819_v42, %v1075_v36  ;;  %v6129_v58 = vmul.f32 %v9111_v51, %v1107_v50  ;;  %v9190_v42 = vld [vmem:[#allocation43_spill] sm:$0xff] }
 0x256   :  { %9180 = vst [vmem:[#allocation59_spill] sm:$0xff] %v6123_v43  ;;  %9181 = vst [vmem:[#allocation136_spill] sm:$0xff] %v6126_v24  ;;  %v6132_v54 = vmul.f32 %v9111_v51, %v1139_v25  ;;  %v6135_v5 = vmul.f32 %v9111_v51, %v1171_v3  ;;  %v6138_v41 = vmul.f32 %v9111_v51, %v1203_v29  ;;  %v838_v22 = vmul.f32 0.2, %v582_v15  ;;  %v9193_v29 = vld [vmem:[#allocation87_spill] sm:$0xff] }
 0x257   :  { %9182 = vst [vmem:[#allocation39_spill] sm:$0xff] %v6129_v58  ;;  %v6141_v13 = vmul.f32 %v9111_v51, %v1235_v17  ;;  %v6144_v31 = vmul.f32 %v9111_v51, %v1267_v56  ;;  %v614_v4 = vadd.f32 %v9179_v27, %v9188_v33  ;;  %v646_v53 = vadd.f32 %v9179_v27, %v9189_v28 }
 0x258   :  { %9183 = vst [vmem:[#allocation138_spill] sm:$0xff] %v6132_v54  ;;  %9184 = vst [vmem:[#allocation150_spill] sm:$0xff] %v6135_v5  ;;  %v678_v7 = vadd.f32 %v9179_v27, %v5818_v38  ;;  %v710_v32 = vadd.f32 %v9179_v27, %v9190_v42  ;;  %v742_v26 = vadd.f32 %v9179_v27, %v9191_v37 }
 0x259   :  { %9185 = vst [vmem:[#allocation151_spill] sm:$0xff] %v6138_v41  ;;  %9186 = vst [vmem:[#allocation152_spill] sm:$0xff] %v6141_v13  ;;  %v774_v40 = vadd.f32 %v9179_v27, %v9192_v21  ;;  %v806_v16 = vadd.f32 %v9179_v27, %v5990_v59  ;;  %v870_v36 = vmul.f32 0.2, %v614_v4  ;;  %v902_v50 = vmul.f32 0.2, %v646_v53 }
 0x25a   :  { %9187 = vst [vmem:[#allocation153_spill] sm:$0xff] %v6144_v31  ;;  %v934_v25 = vmul.f32 0.2, %v678_v7  ;;  %v966_v3 = vmul.f32 0.2, %v710_v32  ;;  %v598_v17 = vadd.f32 %v9193_v29, %v9178_v12  ;;  %v1094_v41 = vmax.f32 %v582_v15, %v838_v22 }
 0x25b   :  { %v998_v56 = vmul.f32 0.2, %v742_v26  ;;  %v1030_v31 = vmul.f32 0.2, %v774_v40  ;;  %v1062_v13 = vmul.f32 0.2, %v806_v16  ;;  %v1126_v5 = vmax.f32 %v614_v4, %v870_v36 }
 0x25c   :  { %v1158_v54 = vmax.f32 %v646_v53, %v902_v50  ;;  %v1190_v58 = vmax.f32 %v678_v7, %v934_v25  ;;  %v1222_v24 = vmax.f32 %v710_v32, %v966_v3  ;;  %v6163_v43 = vmul.f32 %v9111_v51, %v1299_v46 }
 0x25d   :  { %v6166_v27 = vmul.f32 %v9111_v51, %v1331_v35  ;;  %v1254_v55 = vmax.f32 %v742_v26, %v998_v56  ;;  %v1286_v10 = vmax.f32 %v774_v40, %v1030_v31  ;;  %v1318_v52 = vmax.f32 %v806_v16, %v1062_v13 }
 0x25e   :  { %9194 = vst [vmem:[#allocation75_spill] sm:$0xff] %v6163_v43  ;;  %v6169_v23 = vmul.f32 %v9134_v44, %v1094_v41  ;;  %v6172_v12 = vmul.f32 %v9134_v44, %v1126_v5  ;;  %v6175_v15 = vmul.f32 %v9134_v44, %v1158_v54  ;;  %v6178_v4 = vmul.f32 %v9134_v44, %v1190_v58  ;;  %v9215_v43 = vld [vmem:[#allocation56_spill] sm:$0xff] }
 0x25f   :  { %9195 = vst [vmem:[#allocation57_spill] sm:$0xff] %v6166_v27  ;;  %v6181_v46 = vmul.f32 %v9134_v44, %v1222_v24  ;;  %v6184_v35 = vmul.f32 %v9134_v44, %v1254_v55  ;;  %v630_v13 = vadd.f32 %v9193_v29, %v9188_v33  ;;  %v662_v41 = vadd.f32 %v9193_v29, %v9189_v28 }
 0x260   :  { %v694_v5 = vadd.f32 %v9193_v29, %v5818_v38  ;;  %v726_v54 = vadd.f32 %v9193_v29, %v9190_v42  ;;  %v758_v58 = vadd.f32 %v9193_v29, %v9191_v37  ;;  %v790_v24 = vadd.f32 %v9193_v29, %v9192_v21 }
 0x261   :  { %v822_v55 = vadd.f32 %v9193_v29, %v5990_v59  ;;  %v854_v31 = vmul.f32 0.2, %v598_v17  ;;  %v886_v33 = vmul.f32 0.2, %v630_v13  ;;  %v918_v53 = vmul.f32 0.2, %v662_v41 }
 0x262   :  { %v950_v7 = vmul.f32 0.2, %v694_v5  ;;  %v982_v28 = vmul.f32 0.2, %v726_v54  ;;  %v761_v38 = vadd.f32 %v5305_v6, %v9132_v20  ;;  %v1014_v32 = vmul.f32 0.2, %v758_v58 }
 0x263   :  { %v1046_v26 = vmul.f32 0.2, %v790_v24  ;;  %v1078_v42 = vmul.f32 0.2, %v822_v55  ;;  %v1110_v40 = vmax.f32 %v598_v17, %v854_v31  ;;  %v1142_v16 = vmax.f32 %v630_v13, %v886_v33  ;;  %v9205_v33 = vld [vmem:[#allocation88_spill] sm:$0xff] }
 0x264   :  { %v1174_v37 = vmax.f32 %v662_v41, %v918_v53  ;;  %v1206_v22 = vmax.f32 %v694_v5, %v950_v7  ;;  %v1238_v36 = vmax.f32 %v726_v54, %v982_v28  ;;  %v6203_v50 = vmul.f32 %v9134_v44, %v1286_v10 }
 0x265   :  { %v6206_v25 = vmul.f32 %v9134_v44, %v1318_v52  ;;  %v1270_v3 = vmax.f32 %v758_v58, %v1014_v32  ;;  %v1302_v29 = vmax.f32 %v790_v24, %v1046_v26  ;;  %v1334_v56 = vmax.f32 %v822_v55, %v1078_v42  ;;  %v9203_v24 = vld [vmem:[#allocation62_spill] sm:$0xff]  ;;  %v9207_v26 = vld [vmem:[#allocation119_spill] sm:$0xff] }
 0x266   :  { %v6209_v59 = vmul.f32 %v9134_v44, %v1110_v40  ;;  %v6212_v20 = vmul.f32 %v9134_v44, %v1142_v16  ;;  %v6215_v17 = vmul.f32 %v9134_v44, %v1174_v37  ;;  %v6218_v13 = vmul.f32 %v9134_v44, %v1206_v22  ;;  %v9208_v16 = vld [vmem:[#allocation120_spill] sm:$0xff] }
 0x267   :  { %9196 = vst [vmem:[#allocation43_spill] sm:$0xff] %v6206_v25  ;;  %v6221_v10 = vmul.f32 %v9134_v44, %v1238_v36  ;;  %v6224_v52 = vmul.f32 %v9134_v44, %v1270_v3  ;;  %v762_v41 = vadd.f32 %v9119_v39, %v9192_v21  ;;  %v766_v5 = vadd.f32 %v9120_v9, %v9192_v21  ;;  %v9209_v36 = vld [vmem:[#allocation122_spill] sm:$0xff]  ;;  %v9210_v9 = vld [vmem:[#allocation73_spill] sm:$0xff] }
 0x268   :  { %9197 = vst [vmem:[#allocation76_spill] sm:$0xff] %v6209_v59  ;;  %9198 = vst [vmem:[#allocation102_spill] sm:$0xff] %v6212_v20  ;;  %v778_v54 = vadd.f32 %v9122_v34, %v9192_v21  ;;  %v782_v58 = vadd.f32 %v9123_v47, %v9192_v21  ;;  %v1015_v55 = vmul.f32 0.2, %v9203_v24  ;;  %v6236_v31 = vmul.f32 %v9134_v44, %v1302_v29  ;;  %v9211_v39 = vld [vmem:[#allocation69_spill] sm:$0xff]  ;;  %v9216_v20 = vld [vmem:[#allocation99_spill] sm:$0xff] }
 0x269   :  { %9199 = vst [vmem:[#allocation87_spill] sm:$0xff] %v6215_v17  ;;  %9200 = vst [vmem:[#allocation154_spill] sm:$0xff] %v6218_v13  ;;  %v1016_v53 = vmul.f32 0.2, %v9205_v33  ;;  %v1017_v7 = vmul.f32 0.2, %v761_v38  ;;  %v6240_v32 = vmul.f32 %v9134_v44, %v1334_v56 }
 0x26a   :  { %9201 = vst [vmem:[#allocation155_spill] sm:$0xff] %v6221_v10  ;;  %9202 = vst [vmem:[#allocation156_spill] sm:$0xff] %v6224_v52  ;;  %v1018_v28 = vmul.f32 0.2, %v762_v41  ;;  %v1021_v42 = vmul.f32 0.2, %v9207_v26  ;;  %v1271_v3 = vmax.f32 %v9203_v24, %v1015_v55 }
 0x26b   :  { %9204 = vst [vmem:[#allocation62_spill] sm:$0xff] %v6236_v31  ;;  %9206 = vst [vmem:[#allocation88_spill] sm:$0xff] %v6240_v32  ;;  %v1022_v40 = vmul.f32 0.2, %v766_v5  ;;  %v1033_v37 = vmul.f32 0.2, %v9208_v16  ;;  %v1272_v29 = vmax.f32 %v9205_v33, %v1016_v53  ;;  %v1273_v34 = vmax.f32 %v761_v38, %v1017_v7 }
 0x26c   :  { %v1034_v22 = vmul.f32 0.2, %v778_v54  ;;  %v1037_v21 = vmul.f32 0.2, %v9209_v36  ;;  %v1038_v47 = vmul.f32 0.2, %v782_v58  ;;  %v1275_v31 = vmax.f32 %v9211_v39, %v9210_v9 }
 0x26d   :  { %v9212_v52 = vld [vmem:[#allocation31_spill] sm:$0xff]  ;;  %v9213_v56 = vld [vmem:[#allocation94_spill] sm:$0xff]  ;;  %v1274_v27 = vmax.f32 %v762_v41, %v1018_v28  ;;  %v1277_v10 = vmax.f32 %v9207_v26, %v1021_v42  ;;  %v9214_v13 = vld [vmem:[#allocation101_spill] sm:$0xff]  ;;  %v1289_v24 = vmax.f32 %v9208_v16, %v1033_v37  ;;  %v1543_v28 = vmul.f32 %v9111_v51, %v1271_v3 }
 0x26e   :  { %v1276_v32 = vmax.f32 %v9213_v56, %v9212_v52  ;;  %v1287_v17 = vmax.f32 %v9215_v43, %v9214_v13  ;;  %v9217_v59 = vld [vmem:[#allocation117_spill] sm:$0xff]  ;;  %v9218_v55 = vld [vmem:[#allocation128_spill] sm:$0xff]  ;;  %v9220_v53 = vld [vmem:[#allocation30_spill] sm:$0xff]  ;;  %v1293_v9 = vmax.f32 %v9209_v36, %v1037_v21  ;;  %v1278_v52 = vmax.f32 %v766_v5, %v1022_v40 }
 0x26f   :  { %v1288_v25 = vmax.f32 %v9217_v59, %v9216_v20  ;;  %v9219_v33 = vld [vmem:[#allocation65_spill] sm:$0xff]  ;;  %v9221_v7 = vld [vmem:[#allocation118_spill] sm:$0xff]  ;;  %v1290_v41 = vmax.f32 %v778_v54, %v1034_v22  ;;  %v1544_v26 = vmul.f32 %v9080_v8, %v1272_v29  ;;  %v1294_v43 = vmax.f32 %v782_v58, %v1038_v47  ;;  %v6275_v58 = vpop.permute.xlu0 %2217  ;;  %v9222_v22 = vld [vmem:[#allocation139_spill] sm:$0xff] }
 0x270   :  { %v1291_v38 = vmax.f32 %v9219_v33, %v9218_v55  ;;  %v1292_v39 = vmax.f32 %v9221_v7, %v9220_v53  ;;  %v1545_v13 = vmul.f32 %v4430_v45, %v1273_v34  ;;  %v1547_v20 = vmul.f32 %v9111_v51, %v1275_v31  ;;  %v9223_v21 = vld [vmem:[#allocation81_spill] sm:$0xff] }
 0x271   :  { %v1548_v59 = vmul.f32 %v9080_v8, %v1276_v32  ;;  %v1546_v42 = vmul.f32 %v9134_v44, %v1274_v27  ;;  %v1549_v16 = vmul.f32 %v4430_v45, %v1277_v10  ;;  %v1559_v37 = vmul.f32 %v9111_v51, %v1287_v17 }
 0x272   :  { %v1560_v5 = vmul.f32 %v9080_v8, %v1288_v25  ;;  %v1561_v54 = vmul.f32 %v4430_v45, %v1289_v24  ;;  %v1563_v40 = vmul.f32 %v9111_v51, %v1291_v38  ;;  %v1564_v47 = vmul.f32 %v9080_v8, %v1292_v39 }
 0x273   :  { %v1565_v34 = vmul.f32 %v4430_v45, %v1293_v9  ;;  %v1550_v31 = vmul.f32 %v9134_v44, %v1278_v52  ;;  %v2039_v32 = vadd.f32 %v1544_v26, %v1543_v28  ;;  %v2048_v27 = vadd.f32 %v1548_v59, %v1547_v20 }
 0x274   :  { %v2059_v10 = vadd.f32 %v5646_v61, %v9222_v22  ;;  %v1562_v17 = vmul.f32 %v9134_v44, %v1290_v41  ;;  %v2075_v25 = vadd.f32 %v1560_v5, %v1559_v37  ;;  %v2084_v36 = vadd.f32 %v1564_v47, %v1563_v40  ;;  %v9224_v22 = vld [vmem:[#allocation91_spill] sm:$0xff] }
 0x275   :  { %v2095_v3 = vadd.f32 %v5703_v60, %v9223_v21  ;;  %v1566_v29 = vmul.f32 %v9134_v44, %v1294_v43  ;;  %v2040_v56 = vadd.f32 %v2039_v32, %v1545_v13  ;;  %v2049_v24 = vadd.f32 %v2048_v27, %v1549_v16  ;;  %v9225_v21 = vld [vmem:[#allocation45_spill] sm:$0xff] }
 0x276   :  { %v2060_v55 = vrot.slane %v2059_v10, 4  ;;  %v2076_v33 = vadd.f32 %v2075_v25, %v1561_v54  ;;  %v2085_v38 = vadd.f32 %v2084_v36, %v1565_v34  ;;  %v2265_v7 = vrot.slane %v6275_v58, 1 }
 0x277   :  { %v2096_v53 = vrot.slane %v2095_v3, 4  ;;  %v2041_v39 = vadd.f32 %v2040_v56, %v1546_v42  ;;  %v2050_v9 = vadd.f32 %v2049_v24, %v1550_v31  ;;  %v2266_v52 = vrot.slane %v6275_v58, 2 }
 0x278   :  { %v2061_v61 = vadd.f32 %v2060_v55, %v2059_v10  ;;  %v2077_v41 = vadd.f32 %v2076_v33, %v1562_v17  ;;  %v2086_v28 = vadd.f32 %v2085_v38, %v1566_v29  ;;  %v2268_v59 = vrot.slane %v6275_v58, 4  ;;  %v9226_v55 = vld [vmem:[#allocation55_spill] sm:$0xff] }
 0x279   :  { %v2097_v26 = vadd.f32 %v2096_v53, %v2095_v3  ;;  %v2042_v20 = vrot.slane %v2041_v39, 4  ;;  %v2051_v43 = vrot.slane %v2050_v9, 4  ;;  %v2270_v54 = vrot.slane %v6275_v58, 6 }
 0x27a   :  { %v2062_v13 = vrot.slane %v2061_v61, 2  ;;  %v2078_v16 = vrot.slane %v2077_v41, 4  ;;  %v2087_v37 = vrot.slane %v2086_v28, 4  ;;  %v581_v34 = vadd.f32 %v9043_v62, %v5723_v19 }
 0x27b   :  { %v2098_v5 = vrot.slane %v2097_v26, 2  ;;  %v2043_v42 = vadd.f32 %v2042_v20, %v2041_v39  ;;  %v2052_v40 = vadd.f32 %v2051_v43, %v2050_v9  ;;  %v613_v10 = vadd.f32 %v9224_v22, %v5723_v19  ;;  %v9227_v9 = vld [vmem:[#allocation48_spill] sm:$0xff] }
 0x27c   :  { %v2063_v47 = vadd.f32 %v2062_v13, %v2061_v61  ;;  %v2079_v31 = vadd.f32 %v2078_v16, %v2077_v41  ;;  %v2088_v32 = vadd.f32 %v2087_v37, %v2086_v28  ;;  %v645_v3 = vadd.f32 %v9225_v21, %v5723_v19  ;;  %v9228_v20 = vld [vmem:[#allocation92_spill] sm:$0xff] }
 0x27d   :  { %v2099_v27 = vadd.f32 %v2098_v5, %v2097_v26  ;;  %v2044_v17 = vrot.slane %v2043_v42, 2  ;;  %v2053_v25 = vrot.slane %v2052_v40, 2  ;;  %v677_v33 = vadd.f32 %v9226_v55, %v5723_v19 }
 0x27e   :  { %v2064_v36 = vrot.slane %v2063_v47, 1  ;;  %v2080_v29 = vrot.slane %v2079_v31, 2  ;;  %v2089_v56 = vrot.slane %v2088_v32, 2  ;;  %v709_v61 = vadd.f32 %v9227_v9, %v5723_v19 }
 0x27f   :  { %v2100_v24 = vrot.slane %v2099_v27, 1  ;;  %v2045_v38 = vadd.f32 %v2044_v17, %v2043_v42  ;;  %v2054_v53 = vadd.f32 %v2053_v25, %v2052_v40  ;;  %v741_v43 = vadd.f32 %v9228_v20, %v5723_v19 }
 0x280   :  { %v2065_v39 = vadd.f32 %v2064_v36, %v2063_v47  ;;  %v2081_v41 = vadd.f32 %v2080_v29, %v2079_v31  ;;  %v2090_v28 = vadd.f32 %v2089_v56, %v2088_v32  ;;  %v2269_v37 = vrot.slane %v6275_v58, 5 }
 0x281   :  { %v2101_v26 = vadd.f32 %v2100_v24, %v2099_v27  ;;  %v2046_v13 = vrot.slane %v2045_v38, 1  ;;  %v2055_v16 = vrot.slane %v2054_v53, 1  ;;  %v773_v5 = vadd.f32 %v5305_v6, %v5723_v19 }
 0x282   :  { %v2082_v60 = vrot.slane %v2081_v41, 1  ;;  %v2091_v42 = vrot.slane %v2090_v28, 1  ;;  %v6304_v40 = vadd.f32 %v2266_v52, %v2065_v39  ;;  %v805_v47 = vadd.f32 %v5902_v63, %v5723_v19 }
 0x283   :  { %v2047_v31 = vadd.f32 %v2046_v13, %v2045_v38  ;;  %v2056_v32 = vadd.f32 %v2055_v16, %v2054_v53  ;;  %v6309_v17 = vadd.f32 %v2270_v54, %v2101_v26  ;;  %v837_v29 = vmul.f32 0.2, %v581_v34 }
 0x284   :  { %9229 = vst [vmem:[#allocation119_spill] sm:$0xff] %v6304_v40  ;;  %v2083_v25 = vadd.f32 %v2082_v60, %v2081_v41  ;;  %v2092_v36 = vadd.f32 %v2091_v42, %v2090_v28  ;;  %v869_v56 = vmul.f32 0.2, %v613_v10  ;;  %v901_v52 = vmul.f32 0.2, %v645_v3 }
 0x285   :  { %9230 = vst [vmem:[#allocation120_spill] sm:$0xff] %v6309_v17  ;;  %v6312_v24 = vadd.f32 %v6275_v58, %v2047_v31  ;;  %v6314_v44 = vadd.f32 %v2265_v7, %v2056_v32  ;;  %v933_v39 = vmul.f32 0.2, %v677_v33  ;;  %v2501_v19 = vsel %vm2407_vm0, %v6304_v40, -inf }
 0x286   :  { %v6316_v8 = vadd.f32 %v2268_v59, %v2083_v25  ;;  %v965_v38 = vmul.f32 0.2, %v709_v61  ;;  %v997_v53 = vmul.f32 0.2, %v741_v43  ;;  %v1029_v41 = vmul.f32 0.2, %v773_v5 }
 0x287   :  { %9231 = vst [vmem:[#allocation122_spill] sm:$0xff] %v6312_v24  ;;  %9232 = vst [vmem:[#allocation73_spill] sm:$0xff] %v6314_v44  ;;  %v2498_v60 = vsel %vm2407_vm0, %v6312_v24, -inf  ;;  %v2499_v54 = vsel %vm2407_vm0, %v6314_v44, -inf  ;;  %v1061_v28 = vmul.f32 0.2, %v805_v47  ;;  %v6324_v26 = vadd.f32 %v2269_v37, %v2092_v36 }
 0x288   :  { %9233 = vst [vmem:[#allocation69_spill] sm:$0xff] %v6316_v8  ;;  %v2500_v7 = vmax.f32 %v2498_v60, %v2499_v54  ;;  %v6328_v59 = vsel %vm2407_vm0, %v6316_v8, -inf  ;;  %v1093_v13 = vmax.f32 %v581_v34, %v837_v29  ;;  %v1125_v16 = vmax.f32 %v613_v10, %v869_v56  ;;  %v9300_v8 = vld [vmem:[#allocation12_spill] sm:$0xff] }
 0x289   :  { %9234 = vst [vmem:[#allocation31_spill] sm:$0xff] %v6324_v26  ;;  %v1157_v42 = vmax.f32 %v645_v3, %v901_v52  ;;  %v1189_v31 = vmax.f32 %v677_v33, %v933_v39  ;;  %v1221_v32 = vmax.f32 %v709_v61, %v965_v38  ;;  %v1253_v27 = vmax.f32 %v741_v43, %v997_v53  ;;  %v9235_v43 = vld [vmem:[#allocation131_spill] sm:$0xff]  ;;  %v9237_v52 = vld [vmem:[#allocation126_spill] sm:$0xff] }
 0x28a   :  { %v6330_v25 = vmax.f32 %v2500_v7, %v2501_v19  ;;  %v1285_v51 = vmax.f32 %v773_v5, %v1029_v41  ;;  %v1317_v40 = vmax.f32 %v805_v47, %v1061_v28  ;;  %v1365_v44 = vmul.f32 %v4430_v45, %v1093_v13  ;;  %v9236_v47 = vld [vmem:[#allocation132_spill] sm:$0xff]  ;;  %v9240_v7 = vld [vmem:[#allocation71_spill] sm:$0xff] }
 0x28b   :  { %v1397_v37 = vmul.f32 %v4430_v45, %v1125_v16  ;;  %v1429_v36 = vmul.f32 %v4430_v45, %v1157_v42  ;;  %v1461_v60 = vmul.f32 %v4430_v45, %v1189_v31  ;;  %v1493_v54 = vmul.f32 %v4430_v45, %v1221_v32  ;;  %v9241_v31 = vld [vmem:[#allocation52_spill] sm:$0xff] }
 0x28c   :  { %v1525_v34 = vmul.f32 %v4430_v45, %v1253_v27  ;;  %v1557_v10 = vmul.f32 %v4430_v45, %v1285_v51  ;;  %v1589_v3 = vmul.f32 %v4430_v45, %v1317_v40  ;;  %v1634_v33 = vadd.f32 %v6007_v30, %v6089_v18 }
 0x28d   :  { %v1706_v61 = vadd.f32 %v6010_v2, %v6092_v0  ;;  %v1758_v5 = vrot.slane %v9235_v43, 1  ;;  %v1767_v29 = vrot.slane %v9236_v47, 1  ;;  %v1778_v56 = vadd.f32 %v6013_v14, %v6095_v11 }
 0x28e   :  { %v9238_v27 = vrot.slane %v9237_v52, 2  ;;  %v1830_v51 = vrot.slane %v5994_v49, 1  ;;  %v1839_v40 = vrot.slane %v6000_v57, 1  ;;  %v1635_v19 = vadd.f32 %v1634_v33, %v1365_v44 }
 0x28f   :  { %v1707_v30 = vadd.f32 %v1706_v61, %v1397_v37  ;;  %v1759_v18 = vadd.f32 %v1758_v5, %v9235_v43  ;;  %v6355_v2 = vadd.f32 %v1767_v29, %v9236_v47  ;;  %v1779_v0 = vadd.f32 %v1778_v56, %v1429_v36  ;;  %v9244_v37 = vld [vmem:[#allocation96_spill] sm:$0xff]  ;;  %v9245_v47 = vld [vmem:[#allocation74_spill] sm:$0xff] }
 0x290   :  { %v1793_v39 = vadd.f32 %v9238_v27, %v9237_v52  ;;  %v6358_v53 = vadd.f32 %v1830_v51, %v5994_v49  ;;  %v6361_v14 = vadd.f32 %v1839_v40, %v6000_v57  ;;  %v1636_v11 = vadd.f32 %v1635_v19, %v6169_v23  ;;  %v9243_v57 = vld [vmem:[#allocation26_spill] sm:$0xff]  ;;  %v9246_v29 = vld [vmem:[#allocation64_spill] sm:$0xff] }
 0x291   :  { %v1708_v41 = vadd.f32 %v1707_v30, %v6172_v12  ;;  %v9239_v44 = vrot.slane %v5978_v48, 2  ;;  %v1850_v13 = vadd.f32 %v9240_v7, %v6098_v1  ;;  %v1780_v16 = vadd.f32 %v1779_v0, %v6175_v15 }
 0x292   :  { %v1794_v38 = vrot.slane %v1793_v39, 1  ;;  %v9242_v49 = vrot.slane %v9241_v31, 2  ;;  %v1922_v36 = vadd.f32 %v9244_v37, %v9243_v57  ;;  %v1637_v23 = vrot.slane %v1636_v11, 4 }
 0x293   :  { %v1847_v28 = vadd.f32 %v9239_v44, %v5978_v48  ;;  %v1709_v33 = vrot.slane %v1708_v41, 4  ;;  %v1851_v61 = vadd.f32 %v1850_v13, %v1461_v60  ;;  %v1781_v43 = vrot.slane %v1780_v16, 4  ;;  %v9247_v60 = vld [vmem:[#allocation59_spill] sm:$0xff]  ;;  %v9248_v44 = vld [vmem:[#allocation133_spill] sm:$0xff] }
 0x294   :  { %v1795_v42 = vadd.f32 %v1794_v38, %v1793_v39  ;;  %v1865_v32 = vadd.f32 %v9242_v49, %v9241_v31  ;;  %v1923_v48 = vadd.f32 %v1922_v36, %v1493_v54  ;;  %v1994_v1 = vadd.f32 %v9246_v29, %v9245_v47 }
 0x295   :  { %v1848_v12 = vrot.slane %v1847_v28, 1  ;;  %v1638_v56 = vadd.f32 %v1637_v23, %v1636_v11  ;;  %v1710_v15 = vadd.f32 %v1709_v33, %v1708_v41  ;;  %v1852_v27 = vadd.f32 %v1851_v61, %v6178_v4  ;;  %v9249_v11 = vld [vmem:[#allocation136_spill] sm:$0xff]  ;;  %v9250_v41 = vld [vmem:[#allocation135_spill] sm:$0xff] }
 0x296   :  { %v1866_v5 = vrot.slane %v1865_v32, 1  ;;  %v1782_v39 = vadd.f32 %v1781_v43, %v1780_v16  ;;  %v1924_v40 = vadd.f32 %v1923_v48, %v6181_v46  ;;  %v1995_v19 = vadd.f32 %v1994_v1, %v1525_v34 }
 0x297   :  { %v1849_v52 = vadd.f32 %v1848_v12, %v1847_v28  ;;  %v1639_v30 = vrot.slane %v1638_v56, 2  ;;  %v1711_v0 = vrot.slane %v1710_v15, 2  ;;  %v1853_v38 = vrot.slane %v1852_v27, 4 }
 0x298   :  { %v1867_v51 = vadd.f32 %v1866_v5, %v1865_v32  ;;  %v2066_v7 = vadd.f32 %v9248_v44, %v9247_v60  ;;  %v1783_v54 = vrot.slane %v1782_v39, 2  ;;  %v1925_v13 = vrot.slane %v1924_v40, 4 }
 0x299   :  { %v1996_v31 = vadd.f32 %v1995_v19, %v6184_v35  ;;  %v2138_v28 = vadd.f32 %v9250_v41, %v9249_v11  ;;  %v1640_v49 = vadd.f32 %v1639_v30, %v1638_v56  ;;  %v1712_v4 = vadd.f32 %v1711_v0, %v1710_v15  ;;  %v9251_v35 = vld [vmem:[#allocation43_spill] sm:$0xff]  ;;  %v9254_v30 = vld [vmem:[#allocation20_spill] sm:$0xff] }
 0x29a   :  { %v1854_v16 = vadd.f32 %v1853_v38, %v1852_v27  ;;  %v2067_v32 = vadd.f32 %v2066_v7, %v1557_v10  ;;  %v1784_v57 = vadd.f32 %v1783_v54, %v1782_v39  ;;  %v1926_v46 = vadd.f32 %v1925_v13, %v1924_v40  ;;  %v9253_v39 = vld [vmem:[#allocation24_spill] sm:$0xff]  ;;  %v9256_v38 = vld [vmem:[#allocation19_spill] sm:$0xff] }
 0x29b   :  { %v1997_v34 = vrot.slane %v1996_v31, 4  ;;  %v2139_v37 = vadd.f32 %v2138_v28, %v1589_v3  ;;  %v1641_v36 = vrot.slane %v1640_v49, 1  ;;  %v1713_v23 = vrot.slane %v1712_v4, 1 }
 0x29c   :  { %v1855_v33 = vrot.slane %v1854_v16, 2  ;;  %v2068_v12 = vadd.f32 %v2067_v32, %v6203_v50  ;;  %v1785_v61 = vrot.slane %v1784_v57, 1  ;;  %v1927_v43 = vrot.slane %v1926_v46, 2 }
 0x29d   :  { %v1998_v5 = vadd.f32 %v1997_v34, %v1996_v31  ;;  %v6387_v48 = vadd.f32 %v2139_v37, %v9251_v35  ;;  %v1642_v47 = vadd.f32 %v1641_v36, %v1640_v49  ;;  %v1714_v29 = vadd.f32 %v1713_v23, %v1712_v4  ;;  %v9274_v35 = vld [vmem:[#allocation21_spill] sm:$0xff] }
 0x29e   :  { %v1856_v1 = vadd.f32 %v1855_v33, %v1854_v16  ;;  %v2069_v56 = vrot.slane %v2068_v12, 4  ;;  %v1786_v10 = vadd.f32 %v1785_v61, %v1784_v57  ;;  %v1928_v15 = vadd.f32 %v1927_v43, %v1926_v46  ;;  %v9263_v16 = vld [vmem:[#allocation137_spill] sm:$0xff] }
 0x29f   :  { %9252 = vst [vmem:[#allocation94_spill] sm:$0xff] %v6387_v48  ;;  %v1999_v27 = vrot.slane %v1998_v5, 2  ;;  %v6390_v3 = vadd.f32 %v9253_v39, %v1759_v18  ;;  %v9255_v50 = vrot.slane %v9254_v30, 3  ;;  %v9257_v60 = vrot.slane %v9256_v38, 3  ;;  %v9273_v61 = vld [vmem:[#allocation13_spill] sm:$0xff] }
 0x2a0   :  { %v1857_v40 = vrot.slane %v1856_v1, 1  ;;  %v2070_v19 = vadd.f32 %v2069_v56, %v2068_v12  ;;  %v1929_v7 = vrot.slane %v1928_v15, 1  ;;  %v9258_v13 = vrot.slane %v9253_v39, 1 }
 0x2a1   :  { %v6394_v0 = vadd.f32 %v9255_v50, %v1642_v47  ;;  %v6398_v44 = vadd.f32 %v9257_v60, %v1714_v29  ;;  %v2000_v54 = vadd.f32 %v1999_v27, %v1998_v5  ;;  %v9259_v18 = vrot.slane %v9253_v39, 3  ;;  %v9277_v29 = vld [vmem:[#allocation38_spill] sm:$0xff]  ;;  %v9280_v27 = vld [vmem:[#allocation97_spill] sm:$0xff] }
 0x2a2   :  { %v6403_v31 = vadd.f32 %v9258_v13, %v6355_v2  ;;  %v1858_v41 = vadd.f32 %v1857_v40, %v1856_v1  ;;  %v2071_v28 = vrot.slane %v2070_v19, 2  ;;  %v9261_v49 = vrot.slane %v9253_v39, 4  ;;  %v9281_v50 = vld [vmem:[#allocation114_spill] sm:$0xff]  ;;  %v9284_v13 = vld [vmem:[#allocation40_spill] sm:$0xff] }
 0x2a3   :  { %v6407_v11 = vadd.f32 %v9259_v18, %v1786_v10  ;;  %v6415_v32 = vadd.f32 %v9263_v16, %v6358_v53  ;;  %v1930_v57 = vadd.f32 %v1929_v7, %v1928_v15  ;;  %v2001_v46 = vrot.slane %v2000_v54, 1  ;;  %v9285_v18 = vld [vmem:[#allocation35_spill] sm:$0xff] }
 0x2a4   :  { %v6411_v4 = vadd.f32 %v9261_v49, %v1795_v42  ;;  %v9265_v2 = vrot.slane %v9263_v16, 1  ;;  %v9267_v37 = vrot.slane %v9263_v16, 2  ;;  %v2072_v23 = vadd.f32 %v2071_v28, %v2070_v19 }
 0x2a5   :  { %9260 = vst [vmem:[#allocation101_spill] sm:$0xff] %v6407_v11  ;;  %9264 = vst [vmem:[#allocation99_spill] sm:$0xff] %v6415_v32  ;;  %v9269_v33 = vrot.slane %v9263_v16, 3  ;;  %v9271_v12 = vrot.slane %v9263_v16, 4  ;;  %v2411_v43 = vsel %vm2407_vm0, %v9273_v61, -inf  ;;  %v2002_v5 = vadd.f32 %v2001_v46, %v2000_v54 }
 0x2a6   :  { %9262 = vst [vmem:[#allocation56_spill] sm:$0xff] %v6411_v4  ;;  %v6420_v34 = vadd.f32 %v9265_v2, %v6361_v14  ;;  %v6424_v36 = vadd.f32 %v9267_v37, %v1849_v52  ;;  %v9275_v14 = vrot.slane %v9274_v35, 3  ;;  %v9278_v52 = vld [vmem:[#allocation60_spill] sm:$0xff]  ;;  %v2413_v10 = vsel %vm2407_vm0, %v6394_v0, -inf  ;;  %v9287_v2 = vld [vmem:[#allocation27_spill] sm:$0xff] }
 0x2a7   :  { %v6428_v42 = vadd.f32 %v9269_v33, %v1858_v41  ;;  %v6432_v53 = vadd.f32 %v9271_v12, %v1867_v51  ;;  %v9279_v1 = vmax.f32 %v9277_v29, %v9278_v52  ;;  %v2073_v15 = vrot.slane %v2072_v23, 1  ;;  %v9288_v12 = vld [vmem:[#allocation127_spill] sm:$0xff] }
 0x2a8   :  { %9266 = vst [vmem:[#allocation117_spill] sm:$0xff] %v6420_v34  ;;  %9268 = vst [vmem:[#allocation128_spill] sm:$0xff] %v6424_v36  ;;  %v6438_v47 = vadd.f32 %v9275_v14, %v1930_v57  ;;  %v2426_v51 = vsel %vm2407_vm0, %v9280_v27, -inf  ;;  %v2428_v40 = vsel %vm2407_vm0, %v6398_v44, -inf  ;;  %v2438_v19 = vsel %vm2407_vm0, %v6390_v3, -inf }
 0x2a9   :  { %9270 = vst [vmem:[#allocation65_spill] sm:$0xff] %v6428_v42  ;;  %9272 = vst [vmem:[#allocation30_spill] sm:$0xff] %v6432_v53  ;;  %v2412_v56 = vmax.f32 %v9279_v1, %v2411_v43  ;;  %v9282_v60 = vrot.slane %v9281_v50, 3  ;;  %v9286_v41 = vmax.f32 %v9284_v13, %v9285_v18  ;;  %v2439_v49 = vsel %vm2407_vm0, %v6403_v31, -inf  ;;  %v9292_v13 = vld [vmem:[#allocation79_spill] sm:$0xff] }
 0x2aa   :  { %9276 = vst [vmem:[#allocation118_spill] sm:$0xff] %v6438_v47  ;;  %v2074_v57 = vadd.f32 %v2073_v15, %v2072_v23  ;;  %v2440_v46 = vmax.f32 %v2438_v19, %v2439_v49  ;;  %v2441_v37 = vsel %vm2407_vm0, %v9287_v2, -inf  ;;  %v2443_v33 = vsel %vm2407_vm0, %v6407_v11, -inf  ;;  %v9291_v15 = vld [vmem:[#allocation36_spill] sm:$0xff] }
 0x2ab   :  { %v6453_v7 = vadd.f32 %v9282_v60, %v2002_v5  ;;  %v2414_v54 = vmax.f32 %v2412_v56, %v2413_v10  ;;  %v2427_v28 = vmax.f32 %v9286_v41, %v2426_v51  ;;  %v2445_v14 = vsel %vm2407_vm0, %v6411_v4, -inf  ;;  %v9330_v4 = vld [vmem:[#allocation88_spill] sm:$0xff] }
 0x2ac   :  { %v2453_v29 = vsel %vm2407_vm0, %v6415_v32, -inf  ;;  %v9289_v52 = vrot.slane %v6275_v58, 3  ;;  %v2442_v1 = vmax.f32 %v2440_v46, %v2441_v37  ;;  %v2454_v56 = vsel %vm2407_vm0, %v6420_v34, -inf  ;;  %v9294_v46 = vld [vmem:[#allocation121_spill] sm:$0xff]  ;;  %v9295_v37 = vld [vmem:[#allocation103_spill] sm:$0xff] }
 0x2ad   :  { %9283 = vst [vmem:[#allocation139_spill] sm:$0xff] %v6453_v7  ;;  %v6465_v43 = vmax.f32 %v2414_v54, %v9288_v12  ;;  %v2429_v5 = vmax.f32 %v2427_v28, %v2428_v40  ;;  %v2456_v10 = vsel %vm2407_vm0, %v6424_v36, -inf  ;;  %v2455_v40 = vmax.f32 %v2453_v29, %v2454_v56  ;;  %v9293_v28 = vld [vmem:[#allocation77_spill] sm:$0xff] }
 0x2ae   :  { %v6473_v23 = vadd.f32 %v9289_v52, %v2074_v57  ;;  %v2458_v19 = vsel %vm2407_vm0, %v6428_v42, -inf  ;;  %v2460_v60 = vsel %vm2407_vm0, %v6432_v53, -inf  ;;  %v2444_v54 = vmax.f32 %v2442_v1, %v2443_v33  ;;  %v9297_v29 = vld [vmem:[#allocation93_spill] sm:$0xff]  ;;  %v9298_v52 = vld [vmem:[#allocation82_spill] sm:$0xff]  ;;  %v9322_v42 = vld [vmem:[#allocation75_spill] sm:$0xff] }
 0x2af   :  { %v6480_v51 = vmax.f32 %v2429_v5, %v9291_v15  ;;  %v2471_v18 = vsel %vm2407_vm0, %v9292_v13, -inf  ;;  %v2473_v41 = vsel %vm2407_vm0, %v6438_v47, -inf  ;;  %v2486_v49 = vsel %vm2407_vm0, %v9293_v28, -inf  ;;  %v9320_v53 = vld [vmem:[#allocation153_spill] sm:$0xff] }
 0x2b0   :  { %9290 = vst [vmem:[#allocation81_spill] sm:$0xff] %v6473_v23  ;;  %v2457_v57 = vmax.f32 %v2455_v40, %v2456_v10  ;;  %v9296_v12 = vmax.f32 %v9294_v46, %v9295_v37  ;;  %v9299_v56 = vmax.f32 %v9297_v29, %v9298_v52  ;;  %v2488_v33 = vsel %vm2407_vm0, %v6453_v7, -inf  ;;  %v9303_v29 = vld [vmem:[#allocation39_spill] sm:$0xff]  ;;  %v9304_v52 = vld [vmem:[#allocation25_spill] sm:$0xff] }
 0x2b1   :  { %v6500_v1 = vmax.f32 %v2444_v54, %v2445_v14  ;;  %v2503_v48 = vsel %vm2407_vm0, %v6473_v23, -inf  ;;  %v597_v24 = vadd.f32 %v9043_v62, %v9300_v8  ;;  %v629_v10 = vadd.f32 %v9224_v22, %v9300_v8  ;;  %v9301_v22 = vld [vmem:[#allocation129_spill] sm:$0xff] }
 0x2b2   :  { %v2472_v5 = vmax.f32 %v9296_v12, %v2471_v18  ;;  %v2487_v15 = vmax.f32 %v9299_v56, %v2486_v49  ;;  %v2459_v40 = vmax.f32 %v2457_v57, %v2458_v19  ;;  %v2504_v37 = vmax.f32 %v6330_v25, %v2503_v48 }
 0x2b3   :  { %v661_v49 = vadd.f32 %v9225_v21, %v9300_v8  ;;  %v693_v14 = vadd.f32 %v9226_v55, %v9300_v8  ;;  %v725_v54 = vadd.f32 %v9227_v9, %v9300_v8  ;;  %v757_v62 = vadd.f32 %v9228_v20, %v9300_v8 }
 0x2b4   :  { %v2474_v18 = vmax.f32 %v2472_v5, %v2473_v41  ;;  %v2489_v46 = vmax.f32 %v2487_v15, %v2488_v33  ;;  %v6517_v12 = vmax.f32 %v2459_v40, %v2460_v60  ;;  %v9302_v41 = vld [vmem:[#allocation113_spill] sm:$0xff]  ;;  %v6526_v25 = vmax.f32 %v2504_v37, %v6328_v59 }
 0x2b5   :  { %v789_v21 = vadd.f32 %v5305_v6, %v9300_v8  ;;  %v821_v55 = vadd.f32 %v5902_v63, %v9300_v8  ;;  %v853_v9 = vmul.f32 0.2, %v597_v24  ;;  %v885_v48 = vmul.f32 0.2, %v629_v10 }
 0x2b6   :  { %v6520_v19 = vmax.f32 %v2474_v18, %v9301_v22  ;;  %v6523_v57 = vmax.f32 %v2489_v46, %v9302_v41  ;;  %v917_v20 = vmul.f32 0.2, %v661_v49  ;;  %v949_v60 = vmul.f32 0.2, %v693_v14 }
 0x2b7   :  { %v981_v5 = vmul.f32 0.2, %v725_v54  ;;  %v1670_v56 = vadd.f32 %v9304_v52, %v9303_v29  ;;  %v1013_v15 = vmul.f32 0.2, %v757_v62  ;;  %v1045_v33 = vmul.f32 0.2, %v789_v21 }
 0x2b8   :  { %v1077_v40 = vmul.f32 0.2, %v821_v55  ;;  %v1109_v18 = vmax.f32 %v597_v24, %v853_v9  ;;  %v1141_v59 = vmax.f32 %v629_v10, %v885_v48  ;;  %v1173_v46 = vmax.f32 %v661_v49, %v917_v20  ;;  %v9306_v9 = vld [vmem:[#allocation145_spill] sm:$0xff]  ;;  %v9307_v20 = vld [vmem:[#allocation134_spill] sm:$0xff] }
 0x2b9   :  { %v1205_v37 = vmax.f32 %v693_v14, %v949_v60  ;;  %v1237_v22 = vmax.f32 %v725_v54, %v981_v5  ;;  %v6536_v6 = vsel %vm2407_vm0, %v6309_v17, -inf  ;;  %v1269_v8 = vmax.f32 %v757_v62, %v1013_v15  ;;  %v9308_v5 = vld [vmem:[#allocation150_spill] sm:$0xff] }
 0x2ba   :  { %v1301_v41 = vmax.f32 %v789_v21, %v1045_v33  ;;  %v1381_v23 = vmul.f32 %v4430_v45, %v1109_v18  ;;  %v6541_v7 = vsel %vm2407_vm0, %v6324_v26, -inf  ;;  %v1333_v29 = vmax.f32 %v821_v55, %v1077_v40  ;;  %v9305_v21 = vld [vmem:[#allocation138_spill] sm:$0xff]  ;;  %v9310_v33 = vld [vmem:[#allocation76_spill] sm:$0xff]  ;;  %v9317_v26 = vld [vmem:[#allocation23_spill] sm:$0xff] }
 0x2bb   :  { %v1413_v52 = vmul.f32 %v4430_v45, %v1141_v59  ;;  %v1445_v24 = vmul.f32 %v4430_v45, %v1173_v46  ;;  %v1477_v10 = vmul.f32 %v4430_v45, %v1205_v37  ;;  %v1509_v49 = vmul.f32 %v4430_v45, %v1237_v22  ;;  %v9309_v55 = vld [vmem:[#allocation146_spill] sm:$0xff]  ;;  %v9313_v37 = vld [vmem:[#allocation151_spill] sm:$0xff] }
 0x2bc   :  { %v1541_v14 = vmul.f32 %v4430_v45, %v1269_v8  ;;  %v1671_v54 = vadd.f32 %v1670_v56, %v1381_v23  ;;  %v1573_v62 = vmul.f32 %v4430_v45, %v1301_v41  ;;  %v1742_v48 = vadd.f32 %v9306_v9, %v9305_v21  ;;  %v9311_v18 = vld [vmem:[#allocation90_spill] sm:$0xff]  ;;  %v9314_v22 = vld [vmem:[#allocation147_spill] sm:$0xff]  ;;  %v9315_v23 = vld [vmem:[#allocation152_spill] sm:$0xff] }
 0x2bd   :  { %v1803_v60 = vrot.slane %v9307_v20, 1  ;;  %v1814_v15 = vadd.f32 %v9309_v55, %v9308_v5  ;;  %v9312_v59 = vrot.slane %v9311_v18, 2  ;;  %v1886_v8 = vadd.f32 %v9314_v22, %v9313_v37  ;;  %v9316_v56 = vld [vmem:[#allocation148_spill] sm:$0xff]  ;;  %v9321_v37 = vld [vmem:[#allocation149_spill] sm:$0xff] }
 0x2be   :  { %v1672_v40 = vadd.f32 %v1671_v54, %v9310_v33  ;;  %v1958_v41 = vadd.f32 %v9316_v56, %v9315_v23  ;;  %v1605_v17 = vmul.f32 %v4430_v45, %v1333_v29  ;;  %v1743_v21 = vadd.f32 %v1742_v48, %v1413_v52  ;;  %v9318_v33 = vld [vmem:[#allocation102_spill] sm:$0xff]  ;;  %v9323_v23 = vld [vmem:[#allocation72_spill] sm:$0xff] }
 0x2bf   :  { %v1883_v46 = vadd.f32 %v9312_v59, %v9311_v18  ;;  %v1815_v9 = vadd.f32 %v1814_v15, %v1445_v24  ;;  %v1875_v28 = vrot.slane %v9317_v26, 1  ;;  %v1804_v5 = vadd.f32 %v1803_v60, %v9307_v20  ;;  %v9319_v18 = vld [vmem:[#allocation87_spill] sm:$0xff]  ;;  %v9324_v24 = vld [vmem:[#allocation154_spill] sm:$0xff] }
 0x2c0   :  { %v1673_v47 = vrot.slane %v1672_v40, 4  ;;  %v1887_v54 = vadd.f32 %v1886_v8, %v1477_v10  ;;  %v1959_v55 = vadd.f32 %v1958_v41, %v1509_v49  ;;  %v1744_v13 = vadd.f32 %v1743_v21, %v9318_v33  ;;  %v9325_v15 = vld [vmem:[#allocation155_spill] sm:$0xff]  ;;  %v9326_v21 = vld [vmem:[#allocation57_spill] sm:$0xff] }
 0x2c1   :  { %v1816_v59 = vadd.f32 %v1815_v9, %v9319_v18  ;;  %v2030_v22 = vadd.f32 %v9321_v37, %v9320_v53  ;;  %v2102_v56 = vadd.f32 %v9323_v23, %v9322_v42  ;;  %v1884_v52 = vrot.slane %v1883_v46, 1  ;;  %v9327_v9 = vld [vmem:[#allocation29_spill] sm:$0xff]  ;;  %v9328_v37 = vld [vmem:[#allocation156_spill] sm:$0xff] }
 0x2c2   :  { %v1674_v29 = vadd.f32 %v1673_v47, %v1672_v40  ;;  %v1888_v48 = vadd.f32 %v1887_v54, %v9324_v24  ;;  %v1960_v45 = vadd.f32 %v1959_v55, %v9325_v15  ;;  %v1745_v36 = vrot.slane %v1744_v13, 4  ;;  %v9329_v47 = vld [vmem:[#allocation62_spill] sm:$0xff] }
 0x2c3   :  { %v1817_v20 = vrot.slane %v1816_v59, 4  ;;  %v2031_v10 = vadd.f32 %v2030_v22, %v1541_v14  ;;  %v2103_v49 = vadd.f32 %v2102_v56, %v1573_v62  ;;  %v2174_v33 = vadd.f32 %v9327_v9, %v9326_v21 }
 0x2c4   :  { %v1675_v60 = vrot.slane %v1674_v29, 2  ;;  %v1889_v8 = vrot.slane %v1888_v48, 4  ;;  %v1961_v41 = vrot.slane %v1960_v45, 4  ;;  %v1746_v53 = vadd.f32 %v1745_v36, %v1744_v13 }
 0x2c5   :  { %v1818_v18 = vadd.f32 %v1817_v20, %v1816_v59  ;;  %v2032_v42 = vadd.f32 %v2031_v10, %v9328_v37  ;;  %v2104_v40 = vadd.f32 %v2103_v49, %v9329_v47  ;;  %v2175_v55 = vadd.f32 %v2174_v33, %v1605_v17 }
 0x2c6   :  { %v1676_v23 = vadd.f32 %v1675_v60, %v1674_v29  ;;  %v1890_v54 = vadd.f32 %v1889_v8, %v1888_v48  ;;  %v1962_v24 = vadd.f32 %v1961_v41, %v1960_v45  ;;  %v1747_v15 = vrot.slane %v1746_v53, 2 }
 0x2c7   :  { %v1819_v34 = vrot.slane %v1818_v18, 2  ;;  %v2033_v14 = vrot.slane %v2032_v42, 4  ;;  %v2105_v62 = vrot.slane %v2104_v40, 4  ;;  %v6578_v11 = vadd.f32 %v2175_v55, %v9330_v4 }
 0x2c8   :  { %v1677_v22 = vrot.slane %v1676_v23, 1  ;;  %v1891_v56 = vrot.slane %v1890_v54, 2  ;;  %v1963_v32 = vrot.slane %v1962_v24, 2  ;;  %v1748_v36 = vadd.f32 %v1747_v15, %v1746_v53 }
 0x2c9   :  { %9331 = vst [vmem:[#allocation91_spill] sm:$0xff] %v6578_v11  ;;  %v1820_v13 = vadd.f32 %v1819_v34, %v1818_v18  ;;  %v2034_v59 = vadd.f32 %v2033_v14, %v2032_v42  ;;  %v2106_v20 = vadd.f32 %v2105_v62, %v2104_v40  ;;  %v1876_v29 = vadd.f32 %v1875_v28, %v9317_v26  ;;  %v9334_v28 = vld [vmem:[#allocation68_spill] sm:$0xff] }
 0x2ca   :  { %v1678_v10 = vadd.f32 %v1677_v22, %v1676_v23  ;;  %v1892_v48 = vadd.f32 %v1891_v56, %v1890_v54  ;;  %v1964_v45 = vadd.f32 %v1963_v32, %v1962_v24  ;;  %v1749_v17 = vrot.slane %v1748_v36, 1  ;;  %v9340_v22 = vld [vmem:[#allocation105_spill] sm:$0xff] }
 0x2cb   :  { %v1821_v49 = vrot.slane %v1820_v13, 1  ;;  %v2035_v60 = vrot.slane %v2034_v59, 2  ;;  %v2107_v8 = vrot.slane %v2106_v20, 2  ;;  %v1885_v41 = vadd.f32 %v1884_v52, %v1883_v46 }
 0x2cc   :  { %v1893_v21 = vrot.slane %v1892_v48, 1  ;;  %v1965_v9 = vrot.slane %v1964_v45, 1  ;;  %v9332_v33 = vrot.slane %v9253_v39, 5  ;;  %v1750_v53 = vadd.f32 %v1749_v17, %v1748_v36 }
 0x2cd   :  { %v1822_v34 = vadd.f32 %v1821_v49, %v1820_v13  ;;  %v2036_v18 = vadd.f32 %v2035_v60, %v2034_v59  ;;  %v2108_v37 = vadd.f32 %v2107_v8, %v2106_v20  ;;  %v9333_v26 = vrot.slane %v9254_v30, 7  ;;  %v9341_v59 = vld [vmem:[#allocation50_spill] sm:$0xff] }
 0x2ce   :  { %v6583_v4 = vadd.f32 %v9332_v33, %v1804_v5  ;;  %v1894_v42 = vadd.f32 %v1893_v21, %v1892_v48  ;;  %v1966_v47 = vadd.f32 %v1965_v9, %v1964_v45  ;;  %v2418_v40 = vmax.f32 %v6465_v43, %v9334_v28  ;;  %v9343_v48 = vld [vmem:[#allocation142_spill] sm:$0xff] }
 0x2cf   :  { %v6587_v32 = vadd.f32 %v9333_v26, %v1678_v10  ;;  %v2037_v46 = vrot.slane %v2036_v18, 1  ;;  %v2109_v52 = vrot.slane %v2108_v37, 1  ;;  %v9335_v23 = vrot.slane %v9256_v38, 7  ;;  %v9344_v8 = vld [vmem:[#allocation54_spill] sm:$0xff]  ;;  %v9349_v26 = vld [vmem:[#allocation11_spill] sm:$0xff] }
 0x2d0   :  { %v9336_v5 = vrot.slane %v9263_v16, 5  ;;  %v9337_v55 = vrot.slane %v9253_v39, 7  ;;  %v9338_v30 = vrot.slane %v9263_v16, 6  ;;  %v9339_v43 = vrot.slane %v9263_v16, 7 }
 0x2d1   :  { %v6593_v54 = vadd.f32 %v9335_v23, %v1750_v53  ;;  %v2419_v38 = vsel %vm2407_vm0, %v9340_v22, -inf  ;;  %v2038_v56 = vadd.f32 %v2037_v46, %v2036_v18  ;;  %v2110_v36 = vadd.f32 %v2109_v52, %v2108_v37 }
 0x2d2   :  { %v6597_v24 = vadd.f32 %v9336_v5, %v1876_v29  ;;  %v6601_v15 = vadd.f32 %v9337_v55, %v1822_v34  ;;  %v6605_v14 = vadd.f32 %v9338_v30, %v1885_v41  ;;  %v6609_v62 = vadd.f32 %v9339_v43, %v1894_v42  ;;  %v9348_v42 = vld [vmem:[#allocation130_spill] sm:$0xff] }
 0x2d3   :  { %v2420_v13 = vmax.f32 %v2418_v40, %v2419_v38  ;;  %v2433_v20 = vmax.f32 %v6480_v51, %v9341_v59  ;;  %v9342_v39 = vrot.slane %v9274_v35, 7  ;;  %v2421_v29 = vsel %vm2407_vm0, %v6587_v32, -inf  ;;  %v9351_v5 = vld [vmem:[#allocation34_spill] sm:$0xff] }
 0x2d4   :  { %v2434_v16 = vsel %vm2407_vm0, %v9343_v48, -inf  ;;  %v2436_v45 = vsel %vm2407_vm0, %v6593_v54, -inf  ;;  %v2447_v60 = vsel %vm2407_vm0, %v6583_v4, -inf  ;;  %v2449_v51 = vsel %vm2407_vm0, %v9344_v8, -inf }
 0x2d5   :  { %v6617_v10 = vadd.f32 %v9342_v39, %v1966_v47  ;;  %v2422_v17 = vmax.f32 %v2420_v13, %v2421_v29  ;;  %v2435_v49 = vmax.f32 %v2433_v20, %v2434_v16  ;;  %v9345_v35 = vrot.slane %v9281_v50, 7  ;;  %v9352_v13 = vld [vmem:[#allocation33_spill] sm:$0xff]  ;;  %v9354_v20 = vld [vmem:[#allocation83_spill] sm:$0xff] }
 0x2d6   :  { %v9347_v21 = vrot.slane %v6275_v58, 7  ;;  %v2448_v33 = vmax.f32 %v6500_v1, %v2447_v60  ;;  %v2462_v53 = vsel %vm2407_vm0, %v6597_v24, -inf  ;;  %v2451_v18 = vsel %vm2407_vm0, %v6601_v15, -inf  ;;  %v9350_v1 = vld [vmem:[#allocation42_spill] sm:$0xff] }
 0x2d7   :  { %v6631_v41 = vadd.f32 %v9345_v35, %v2038_v56  ;;  %v2437_v34 = vmax.f32 %v2435_v49, %v2436_v45  ;;  %v2463_v37 = vmax.f32 %v6517_v12, %v2462_v53  ;;  %v2478_v50 = vmax.f32 %v6520_v19, %v9348_v42  ;;  %v9356_v45 = vld [vmem:[#allocation107_spill] sm:$0xff]  ;;  %v9358_v60 = vld [vmem:[#allocation14_spill] sm:$0xff]  ;;  %v9360_v35 = vld [vmem:[#allocation32_spill] sm:$0xff] }
 0x2d8   :  { %v6635_v9 = vadd.f32 %v9347_v21, %v2110_v36  ;;  %v2450_v47 = vmax.f32 %v2448_v33, %v2449_v51  ;;  %v2464_v58 = vsel %vm2407_vm0, %v6605_v14, -inf  ;;  %v2479_v28 = vsel %vm2407_vm0, %v9349_v26, -inf  ;;  %v9362_v53 = vld [vmem:[#allocation51_spill] sm:$0xff] }
 0x2d9   :  { %9346 = vst [vmem:[#allocation45_spill] sm:$0xff] %v6631_v41  ;;  %v2493_v40 = vmax.f32 %v6523_v57, %v9350_v1  ;;  %v2465_v46 = vmax.f32 %v2463_v37, %v2464_v58  ;;  %v2466_v52 = vsel %vm2407_vm0, %v6609_v62, -inf  ;;  %v2480_v23 = vmax.f32 %v2478_v50, %v2479_v28  ;;  %v9364_v37 = vld [vmem:[#allocation98_spill] sm:$0xff]  ;;  %v9370_v28 = vld [vmem:[#allocation109_spill] sm:$0xff] }
 0x2da   :  { %v2494_v12 = vsel %vm2407_vm0, %v9351_v5, -inf  ;;  %v2452_v55 = vmax.f32 %v2450_v47, %v2451_v18  ;;  %v2481_v19 = vsel %vm2407_vm0, %v6617_v10, -inf  ;;  %v2508_v43 = vmax.f32 %v6526_v25, %v6541_v7  ;;  %v9368_v47 = vld [vmem:[#allocation85_spill] sm:$0xff] }
 0x2db   :  { %v2495_v30 = vmax.f32 %v2493_v40, %v2494_v12  ;;  %v2467_v38 = vmax.f32 %v2465_v46, %v2466_v52  ;;  %v2482_v56 = vmax.f32 %v2480_v23, %v2481_v19  ;;  %v2496_v57 = vsel %vm2407_vm0, %v6631_v41, -inf  ;;  %v9372_v40 = vld [vmem:[#allocation47_spill] sm:$0xff]  ;;  %v9376_v23 = vld [vmem:[#allocation110_spill] sm:$0xff]  ;;  %v9378_v19 = vld [vmem:[#allocation100_spill] sm:$0xff] }
 0x2dc   :  { %v2528_v36 = vlaneseq  ;;  %v6662_v59 = vmul.f32 0.2, %v9352_v13  ;;  %v6665_v39 = vmul.f32 0.2, %v9354_v20  ;;  %v2510_v16 = vmax.f32 %v2508_v43, %v6536_v6  ;;  %v9365_v6 = vld [vmem:[#allocation46_spill] sm:$0xff]  ;;  %v9380_v43 = vld [vmem:[#allocation28_spill] sm:$0xff] }
 0x2dd   :  { %v2497_v29 = vmax.f32 %v2495_v30, %v2496_v57  ;;  %v6669_v49 = vmul.f32 0.2, %v9356_v45  ;;  %v6672_v7 = vmul.f32 0.2, %v9358_v60  ;;  %v2511_v25 = vsel %vm2407_vm0, %v6635_v9, -inf  ;;  %v9399_v45 = vld [vmem:[#allocation104_spill] sm:$0xff] }
 0x2de   :  { %9353 = vst [vmem:[#allocation55_spill] sm:$0xff] %v6662_v59  ;;  %9355 = vst [vmem:[#allocation48_spill] sm:$0xff] %v6665_v39  ;;  %v2529_v51 = vshrl.u32 %v2528_v36, 7  ;;  %v6677_v21 = vmul.f32 0.2, %v9360_v35  ;;  %v2512_v33 = vmax.f32 %v2510_v16, %v2511_v25  ;;  %v6681_v18 = vadd.f32 %v5902_v63, %v9362_v53  ;;  %v9374_v63 = vld [vmem:[#allocation86_spill] sm:$0xff] }
 0x2df   :  { %9357 = vst [vmem:[#allocation92_spill] sm:$0xff] %v6669_v49  ;;  %9359 = vst [vmem:[#allocation131_spill] sm:$0xff] %v6672_v7  ;;  %v6685_v42 = vadd.f32 %v9365_v6, %v9364_v37  ;;  %v6691_v58 = vadd.f32 %v9368_v47, %v9364_v37  ;;  %v6695_v1 = vadd.f32 %v9370_v28, %v9364_v37  ;;  %v6710_v30 = vmul.f32 0.2, %v9378_v19  ;;  %v9397_v7 = vld [vmem:[#allocation65_spill] sm:$0xff]  ;;  %v9400_v49 = vld [vmem:[#allocation58_spill] sm:$0xff] }
 0x2e0   :  { %9361 = vst [vmem:[#allocation132_spill] sm:$0xff] %v6677_v21  ;;  %9363 = vst [vmem:[#allocation126_spill] sm:$0xff] %v6681_v18  ;;  %v6687_v50 = vsub.s32 0, %v2529_v51  ;;  %v6699_v46 = vadd.f32 %v9372_v40, %v9364_v37  ;;  %v6703_v52 = vadd.f32 %v9374_v63, %v9364_v37  ;;  %v6707_v12 = vadd.f32 %v9376_v23, %v9364_v37  ;;  %v9401_v20 = vld [vmem:[#allocation79_spill] sm:$0xff]  ;;  %v9402_v39 = vld [vmem:[#allocation118_spill] sm:$0xff] }
 0x2e1   :  { %9366 = vst [vmem:[#allocation71_spill] sm:$0xff] %v6685_v42  ;;  %9369 = vst [vmem:[#allocation26_spill] sm:$0xff] %v6691_v58  ;;  %v6713_v57 = vmul.f32 0.2, %v9380_v43  ;;  %v9405_v59 = vld [vmem:[#allocation95_spill] sm:$0xff]  ;;  %v9414_v42 = vld [vmem:[#allocation81_spill] sm:$0xff] }
 0x2e2   :  { %9367 = vst [vmem:[#allocation52_spill] sm:$0xff] %v6687_v50  ;;  %9371 = vst [vmem:[#allocation96_spill] sm:$0xff] %v6695_v1  ;;  %v6716_v36 = vrot.slane %v2422_v17, %v6687_v50  ;;  %v6719_v16 = vrot.slane %v2437_v34, %v6687_v50  ;;  %v6722_v25 = vrot.slane %v2452_v55, %v6687_v50  ;;  %v6737_v17 = vmul.f32 0.2, %v6681_v18  ;;  %v9384_v34 = vld [vmem:[#allocation41_spill] sm:$0xff]  ;;  %v9385_v55 = vld [vmem:[#allocation44_spill] sm:$0xff] }
 0x2e3   :  { %9373 = vst [vmem:[#allocation74_spill] sm:$0xff] %v6699_v46  ;;  %9375 = vst [vmem:[#allocation64_spill] sm:$0xff] %v6703_v52  ;;  %v6725_v51 = vrot.slane %v2467_v38, %v6687_v50  ;;  %v6728_v53 = vrot.slane %v2482_v56, %v6687_v50  ;;  %v6731_v37 = vrot.slane %v2497_v29, %v6687_v50  ;;  %v9386_v29 = vld [vmem:[#allocation63_spill] sm:$0xff] }
 0x2e4   :  { %9377 = vst [vmem:[#allocation59_spill] sm:$0xff] %v6707_v12  ;;  %9379 = vst [vmem:[#allocation133_spill] sm:$0xff] %v6710_v30  ;;  %v6734_v6 = vrot.slane %v2512_v33, %v6687_v50  ;;  %v2560_v47 = vsub.f32 %v9384_v34, %v6716_v36  ;;  %v2561_v28 = vsub.f32 %v9385_v55, %v6716_v36  ;;  %v9387_v33 = vld [vmem:[#allocation61_spill] sm:$0xff] }
 0x2e5   :  { %9381 = vst [vmem:[#allocation136_spill] sm:$0xff] %v6713_v57  ;;  %9382 = vst [vmem:[#allocation135_spill] sm:$0xff] %v6731_v37  ;;  %v2562_v38 = vsub.f32 %v9273_v61, %v6716_v36  ;;  %v2563_v56 = vsub.f32 %v6394_v0, %v6716_v36  ;;  %v2564_v40 = vsub.f32 %v9386_v29, %v6716_v36  ;;  %v9388_v55 = vld [vmem:[#allocation49_spill] sm:$0xff]  ;;  %v9389_v61 = vld [vmem:[#allocation116_spill] sm:$0xff] }
 0x2e6   :  { %9383 = vst [vmem:[#allocation43_spill] sm:$0xff] %v6737_v17  ;;  %v2565_v63 = vsub.f32 %v9387_v33, %v6716_v36  ;;  %v2566_v23 = vsub.f32 %v9340_v22, %v6716_v36  ;;  %v2567_v34 = vsub.f32 %v6587_v32, %v6716_v36  ;;  %v2568_v11 = vsub.f32 %v9388_v55, %v6719_v16  ;;  %v9390_v33 = vld [vmem:[#allocation53_spill] sm:$0xff] }
 0x2e7   :  { %v2569_v35 = vsub.f32 %v9389_v61, %v6719_v16  ;;  %v2570_v0 = vsub.f32 %v9280_v27, %v6719_v16  ;;  %v2571_v29 = vsub.f32 %v6398_v44, %v6719_v16  ;;  %v2572_v21 = vsub.f32 %v9390_v33, %v6719_v16  ;;  %v9391_v22 = vld [vmem:[#allocation37_spill] sm:$0xff] }
 0x2e8   :  { %v2573_v60 = vsub.f32 %v9391_v22, %v6719_v16  ;;  %v2574_v32 = vsub.f32 %v9343_v48, %v6719_v16  ;;  %v2575_v36 = vsub.f32 %v6593_v54, %v6719_v16  ;;  %v2576_v55 = vsub.f32 %v6390_v3, %v6722_v25  ;;  %v9392_v61 = vld [vmem:[#allocation101_spill] sm:$0xff]  ;;  %v9393_v22 = vld [vmem:[#allocation56_spill] sm:$0xff]  ;;  %v9398_v48 = vld [vmem:[#allocation30_spill] sm:$0xff] }
 0x2e9   :  { %v2577_v27 = vsub.f32 %v6403_v31, %v6722_v25  ;;  %v2578_v44 = vsub.f32 %v9287_v2, %v6722_v25  ;;  %v2579_v33 = vsub.f32 %v9392_v61, %v6722_v25  ;;  %v9394_v31 = vld [vmem:[#allocation99_spill] sm:$0xff]  ;;  %v9395_v2 = vld [vmem:[#allocation117_spill] sm:$0xff]  ;;  %v9396_v61 = vld [vmem:[#allocation128_spill] sm:$0xff]  ;;  %v2615_v18 = vsub.f32 %v6635_v9, %v6734_v6 }
 0x2ea   :  { %v9403_v54 = vld [vmem:[#allocation124_spill] sm:$0xff]  ;;  %v9404_v3 = vld [vmem:[#allocation125_spill] sm:$0xff]  ;;  %v2624_v46 = vmul.f32 1.442695, %v2560_v47  ;;  %v2626_v17 = vmul.f32 1.442695, %v2561_v28 }
 0x2eb   :  { %v2628_v1 = vmul.f32 1.442695, %v2562_v38  ;;  %v2630_v37 = vmul.f32 1.442695, %v2563_v56  ;;  %v2632_v12 = vmul.f32 1.442695, %v2564_v40 }
 0x2ec   :  { %v2634_v58 = vmul.f32 1.442695, %v2565_v63  ;;  %4006 = vpow2.f32 %v2624_v46  ;;  %v2636_v16 = vmul.f32 1.442695, %v2566_v23  ;;  %v2638_v26 = vmul.f32 1.442695, %v2567_v34 }
 0x2ed   :  { %4008 = vpow2.f32 %v2626_v17  ;;  %v2640_v41 = vmul.f32 1.442695, %v2568_v11  ;;  %v2642_v50 = vmul.f32 1.442695, %v2569_v35  ;;  %v2644_v13 = vmul.f32 1.442695, %v2570_v0 }
 0x2ee   :  { %4010 = vpow2.f32 %v2628_v1  ;;  %v2646_v47 = vmul.f32 1.442695, %v2571_v29  ;;  %v2648_v28 = vmul.f32 1.442695, %v2572_v21  ;;  %v2650_v38 = vmul.f32 1.442695, %v2573_v60 }
 0x2ef   :  { %4012 = vpow2.f32 %v2630_v37  ;;  %v2652_v56 = vmul.f32 1.442695, %v2574_v32  ;;  %v2654_v40 = vmul.f32 1.442695, %v2575_v36  ;;  %v2656_v63 = vmul.f32 1.442695, %v2576_v55 }
 0x2f0   :  { %4014 = vpow2.f32 %v2632_v12  ;;  %v6855_v52 = vmul.f32 1.442695, %v2577_v27  ;;  %v6857_v46 = vmul.f32 1.442695, %v2578_v44  ;;  %v6859_v23 = vmul.f32 1.442695, %v2579_v33 }
 0x2f1   :  { %4016 = vpow2.f32 %v2634_v58  ;;  %v9418_v11 = vsub.f32 %v9393_v22, %v6722_v25  ;;  %v9419_v60 = vsub.f32 %v6583_v4, %v6722_v25  ;;  %v9420_v1 = vsub.f32 %v9344_v8, %v6722_v25 }
 0x2f2   :  { %4018 = vpow2.f32 %v2636_v16  ;;  %v9421_v37 = vsub.f32 %v6601_v15, %v6722_v25  ;;  %v9422_v17 = vsub.f32 %v9394_v31, %v6725_v51  ;;  %v9423_v4 = vsub.f32 %v9395_v2, %v6725_v51 }
 0x2f3   :  { %v6864_v35 = vmul.f32 1.442695, %v9418_v11  ;;  %v6869_v21 = vmul.f32 1.442695, %v9419_v60  ;;  %v6874_v12 = vmul.f32 1.442695, %v9420_v1  ;;  %4020 = vpow2.f32 %v2638_v26 }
 0x2f4   :  { %v6879_v58 = vmul.f32 1.442695, %v9421_v37  ;;  %v6884_v34 = vmul.f32 1.442695, %v9422_v17  ;;  %v6889_v0 = vmul.f32 1.442695, %v9423_v4  ;;  %v9424_v8 = vsub.f32 %v9396_v61, %v6725_v51 }
 0x2f5   :  { %v9425_v15 = vsub.f32 %v9397_v7, %v6725_v51  ;;  %v9426_v32 = vsub.f32 %v9398_v48, %v6725_v51  ;;  %4022 = vpow2.f32 %v2640_v41  ;;  %v9427_v26 = vsub.f32 %v6597_v24, %v6725_v51  ;;  %v9439_v60 = vld [vmem:[#allocation135_spill] sm:$0xff] }
 0x2f6   :  { %v6894_v29 = vmul.f32 1.442695, %v9424_v8  ;;  %v9428_v27 = vsub.f32 %v6605_v14, %v6725_v51  ;;  %v9429_v7 = vsub.f32 %v6609_v62, %v6725_v51  ;;  %4024 = vpow2.f32 %v2642_v50  ;;  %v6936_v62 = vpop.eup %4006  ;;  %v9443_v8 = vld [vmem:[#allocation77_spill] sm:$0xff] }
 0x2f7   :  { %v6899_v25 = vmul.f32 1.442695, %v9425_v15  ;;  %v6904_v36 = vmul.f32 1.442695, %v9426_v32  ;;  %v6909_v55 = vmul.f32 1.442695, %v9427_v26  ;;  %v9430_v41 = vsub.f32 %v9399_v45, %v6728_v53  ;;  %v6953_v2 = vpop.eup %4008 }
 0x2f8   :  { %v6914_v44 = vmul.f32 1.442695, %v9428_v27  ;;  %v6919_v33 = vmul.f32 1.442695, %v9429_v7  ;;  %v9431_v24 = vsub.f32 %v9400_v49, %v6728_v53  ;;  %v9432_v14 = vsub.f32 %v9401_v20, %v6728_v53  ;;  %v6970_v37 = vpop.eup %4010 }
 0x2f9   :  { %v6924_v22 = vmul.f32 1.442695, %v9430_v41  ;;  %4026 = vpow2.f32 %v2644_v13  ;;  %v9433_v50 = vsub.f32 %v9402_v39, %v6728_v53  ;;  %v9434_v51 = vsub.f32 %v9403_v54, %v6728_v53  ;;  %v9436_v13 = vld [vmem:[#allocation11_spill] sm:$0xff]  ;;  %v6987_v26 = vpop.eup %4012 }
 0x2fa   :  { %v6929_v48 = vmul.f32 1.442695, %v9431_v24  ;;  %v6934_v31 = vmul.f32 1.442695, %v9432_v14  ;;  %v9435_v16 = vsub.f32 %v9404_v3, %v6728_v53  ;;  %4028 = vpow2.f32 %v2646_v47  ;;  %v9441_v47 = vld [vmem:[#allocation78_spill] sm:$0xff]  ;;  %v9449_v41 = vld [vmem:[#allocation111_spill] sm:$0xff] }
 0x2fb   :  { %v6941_v45 = vmul.f32 1.442695, %v9433_v50  ;;  %v6946_v49 = vmul.f32 1.442695, %v9434_v51  ;;  %v9437_v61 = vsub.f32 %v9436_v13, %v6728_v53  ;;  %v9438_v11 = vsub.f32 %v6617_v10, %v6728_v53  ;;  %v9445_v53 = vld [vmem:[#allocation139_spill] sm:$0xff]  ;;  %v7004_v13 = vpop.eup %4014 }
 0x2fc   :  { %v6951_v20 = vmul.f32 1.442695, %v9435_v16  ;;  %v9440_v1 = vsub.f32 %v9405_v59, %v9439_v60  ;;  %4030 = vpow2.f32 %v2648_v28  ;;  %v9442_v17 = vsub.f32 %v9441_v47, %v9439_v60  ;;  %v9447_v28 = vld [vmem:[#allocation115_spill] sm:$0xff] }
 0x2fd   :  { %v6958_v39 = vmul.f32 1.442695, %v9437_v61  ;;  %v6963_v54 = vmul.f32 1.442695, %v9438_v11  ;;  %v9444_v15 = vsub.f32 %v9443_v8, %v9439_v60  ;;  %v9446_v32 = vsub.f32 %v9445_v53, %v9439_v60  ;;  %v9457_v8 = vld [vmem:[#allocation73_spill] sm:$0xff] }
 0x2fe   :  { %v6968_v3 = vmul.f32 1.442695, %v9440_v1  ;;  %v6975_v4 = vmul.f32 1.442695, %v9442_v17  ;;  %4032 = vpow2.f32 %v2650_v38  ;;  %v9448_v27 = vsub.f32 %v9447_v28, %v9439_v60  ;;  %v9453_v38 = vld [vmem:[#allocation45_spill] sm:$0xff]  ;;  %v9455_v1 = vld [vmem:[#allocation122_spill] sm:$0xff] }
 0x2ff   :  { %v6980_v10 = vmul.f32 1.442695, %v9444_v15  ;;  %v6985_v59 = vmul.f32 1.442695, %v9446_v32  ;;  %v9450_v24 = vsub.f32 %v9449_v41, %v9439_v60  ;;  %v9451_v50 = vmov %v9351_v5  ;;  %v7021_v32 = vpop.eup %4016  ;;  %v9459_v28 = vld [vmem:[#allocation119_spill] sm:$0xff] }
 0x300   :  { %v6992_v7 = vmul.f32 1.442695, %v9448_v27  ;;  %v9452_v51 = vsub.f32 %v9451_v50, %v9439_v60  ;;  %4034 = vpow2.f32 %v2652_v56  ;;  %v9454_v61 = vsub.f32 %v9453_v38, %v9439_v60  ;;  %v7038_v38 = vpop.eup %4018 }
 0x301   :  { %v6997_v14 = vmul.f32 1.442695, %v9450_v24  ;;  %v9456_v47 = vsub.f32 %v9455_v1, %v6734_v6  ;;  %v9458_v15 = vsub.f32 %v9457_v8, %v6734_v6  ;;  %4036 = vpow2.f32 %v2654_v40  ;;  %v9462_v24 = vld [vmem:[#allocation69_spill] sm:$0xff] }
 0x302   :  { %v7002_v16 = vmul.f32 1.442695, %v9452_v51  ;;  %v7009_v11 = vmul.f32 1.442695, %v9454_v61  ;;  %v9460_v56 = vsub.f32 %v9459_v28, %v6734_v6  ;;  %v9461_v60 = vsub.f32 %v9414_v42, %v6734_v6  ;;  %v9464_v61 = vld [vmem:[#allocation31_spill] sm:$0xff]  ;;  %v7051_v28 = vpop.eup %4020 }
 0x303   :  { %v7014_v17 = vmul.f32 1.442695, %v9456_v47  ;;  %v7019_v53 = vmul.f32 1.442695, %v9458_v15  ;;  %v9463_v50 = vsub.f32 %v9462_v24, %v6734_v6  ;;  %4038 = vpow2.f32 %v2656_v63  ;;  %v9466_v47 = vld [vmem:[#allocation120_spill] sm:$0xff]  ;;  %v7061_v24 = vpop.eup %4022 }
 0x304   :  { %v7026_v27 = vmul.f32 1.442695, %v9460_v56  ;;  %v7031_v41 = vmul.f32 1.442695, %v9461_v60  ;;  %v9465_v40 = vsub.f32 %v9464_v61, %v6734_v6  ;;  %v9467_v8 = vsub.f32 %v9466_v47, %v6734_v6 }
 0x305   :  { %v7036_v51 = vmul.f32 1.442695, %v9463_v50  ;;  %v2816_v42 = vrot.slane %v6953_v2, 7  ;;  %4040 = vpow2.f32 %v6855_v52  ;;  %v7057_v63 = vmul.f32 1.442695, %v2615_v18 }
 0x306   :  { %v7043_v1 = vmul.f32 1.442695, %v9465_v40  ;;  %v7048_v15 = vmul.f32 1.442695, %v9467_v8  ;;  %v2819_v56 = vrot.slane %v6970_v37, 6  ;;  %v2822_v60 = vrot.slane %v6987_v26, 5  ;;  %v7068_v40 = vpop.eup %4024 }
 0x307   :  { %4042 = vpow2.f32 %v6857_v46  ;;  %v2818_v50 = vsel %vm2817_vm1, %v2816_v42, %v6936_v62  ;;  %v2825_v61 = vrot.slane %v7004_v13, 4  ;;  %v2828_v52 = vrot.slane %v7021_v32, 3  ;;  %v7074_v47 = vpop.eup %4026  ;;  %v9469_v42 = vld [vmem:[#allocation71_spill] sm:$0xff] }
 0x308   :  { %4044 = vpow2.f32 %v6859_v23  ;;  %v2821_v9 = vsel %vm2820_vm2, %v2819_v56, %v2818_v50  ;;  %v2831_v18 = vrot.slane %v7038_v38, 2  ;;  %v2834_v6 = vrot.slane %v7051_v28, 1  ;;  %9468 = vst [vmem:[#allocation24_spill] sm:$0xff] %v7074_v47  ;;  %v7082_v57 = vpop.eup %4028  ;;  %v9472_v50 = vld [vmem:[#allocation66_spill] sm:$0xff] }
 0x309   :  { %4046 = vpow2.f32 %v6864_v35  ;;  %v2824_v46 = vsel %vm2823_vm3, %v2822_v60, %v2821_v9  ;;  %v2837_v8 = vrot.slane %v7068_v40, 7  ;;  %v7080_v5 = vmul.f32 0.2, %v9469_v42  ;;  %9471 = vst [vmem:[#allocation19_spill] sm:$0xff] %v7082_v57  ;;  %v7090_v30 = vpop.eup %4030 }
 0x30a   :  { %4048 = vpow2.f32 %v6869_v21  ;;  %v2827_v23 = vsel %vm2826_vm4, %v2825_v61, %v2824_v46  ;;  %v2839_v56 = vrot.slane %v7074_v47, 6  ;;  %v7088_v43 = vmul.f32 0.2, %v9472_v50  ;;  %9474 = vst [vmem:[#allocation13_spill] sm:$0xff] %v7090_v30  ;;  %v7097_v19 = vpop.eup %4032 }
 0x30b   :  { %9470 = vst [vmem:[#allocation20_spill] sm:$0xff] %v7080_v5  ;;  %4050 = vpow2.f32 %v6874_v12  ;;  %v2830_v35 = vsel %vm2829_vm5, %v2828_v52, %v2827_v23  ;;  %v2838_v60 = vsel %vm2817_vm1, %v2837_v8, %v7061_v24  ;;  %v2841_v9 = vrot.slane %v7082_v57, 5  ;;  %9475 = vst [vmem:[#allocation21_spill] sm:$0xff] %v7097_v19  ;;  %v7103_v47 = vpop.eup %4034 }
 0x30c   :  { %9473 = vst [vmem:[#allocation137_spill] sm:$0xff] %v7088_v43  ;;  %4052 = vpow2.f32 %v6879_v58  ;;  %v2833_v21 = vsel %vm2832_vm6, %v2831_v18, %v2830_v35  ;;  %v2840_v61 = vsel %vm2820_vm2, %v2839_v56, %v2838_v60  ;;  %v2843_v46 = vrot.slane %v7090_v30, 4  ;;  %9476 = vst [vmem:[#allocation38_spill] sm:$0xff] %v7103_v47  ;;  %v7109_v23 = vpop.eup %4036  ;;  %v9478_v60 = vld [vmem:[#allocation26_spill] sm:$0xff] }
 0x30d   :  { %4054 = vpow2.f32 %v6884_v34  ;;  %v2836_v12 = vsel %vm2835_vm7, %v2834_v6, %v2833_v21  ;;  %v2842_v52 = vsel %vm2823_vm3, %v2841_v9, %v2840_v61  ;;  %v2845_v8 = vrot.slane %v7097_v19, 3  ;;  %9477 = vst [vmem:[#allocation60_spill] sm:$0xff] %v7109_v23  ;;  %v7114_v35 = vpop.eup %4038 }
 0x30e   :  { %4056 = vpow2.f32 %v6889_v0  ;;  %v2844_v58 = vsel %vm2826_vm4, %v2843_v46, %v2842_v52  ;;  %v2847_v18 = vrot.slane %v7103_v47, 2  ;;  %v2943_v56 = vrot.slane %v2836_v12, 4  ;;  %v9481_v46 = vld [vmem:[#allocation22_spill] sm:$0xff] }
 0x30f   :  { %4058 = vpow2.f32 %v6894_v29  ;;  %v2846_v34 = vsel %vm2829_vm5, %v2845_v8, %v2844_v58  ;;  %v2849_v6 = vrot.slane %v7109_v23, 1  ;;  %v7120_v9 = vmul.f32 0.2, %v9478_v60  ;;  %v7122_v21 = vpop.eup %4040  ;;  %v9484_v58 = vld [vmem:[#allocation96_spill] sm:$0xff] }
 0x310   :  { %9480 = vst [vmem:[#allocation114_spill] sm:$0xff] %v7122_v21  ;;  %4060 = vpow2.f32 %v6899_v25  ;;  %v2848_v0 = vsel %vm2832_vm6, %v2847_v18, %v2846_v34  ;;  %v2944_v61 = vadd.f32 %v2943_v56, %v2836_v12  ;;  %v7127_v52 = vmul.f32 0.2, %v9481_v46 }
 0x311   :  { %9479 = vst [vmem:[#allocation97_spill] sm:$0xff] %v7120_v9  ;;  %v7129_v47 = vpop.eup %4042  ;;  %4062 = vpow2.f32 %v6904_v36  ;;  %v2850_v29 = vsel %vm2835_vm7, %v2849_v6, %v2848_v0  ;;  %v2851_v8 = vrot.slane %v7122_v21, 7  ;;  %v7135_v23 = vmul.f32 0.2, %v9484_v58  ;;  %v9487_v6 = vld [vmem:[#allocation123_spill] sm:$0xff] }
 0x312   :  { %9482 = vst [vmem:[#allocation40_spill] sm:$0xff] %v7127_v52  ;;  %9483 = vst [vmem:[#allocation35_spill] sm:$0xff] %v7129_v47  ;;  %v7137_v19 = vpop.eup %4044  ;;  %4064 = vpow2.f32 %v6909_v55  ;;  %v2853_v25 = vrot.slane %v7129_v47, 6  ;;  %v2945_v12 = vrot.slane %v2944_v61, 2  ;;  %v2949_v18 = vrot.slane %v2850_v29, 4  ;;  %v9529_v52 = vld [vmem:[#allocation13_spill] sm:$0xff] }
 0x313   :  { %9485 = vst [vmem:[#allocation27_spill] sm:$0xff] %v7135_v23  ;;  %9486 = vst [vmem:[#allocation127_spill] sm:$0xff] %v7137_v19  ;;  %v7141_v56 = vpop.eup %4046  ;;  %4066 = vpow2.f32 %v6914_v44  ;;  %v2852_v36 = vsel %vm2817_vm1, %v2851_v8, %v7114_v35  ;;  %v2855_v34 = vrot.slane %v7137_v19, 5  ;;  %v7148_v0 = vmul.f32 0.2, %v9487_v6 }
 0x314   :  { %v7150_v21 = vpop.eup %4048  ;;  %4068 = vpow2.f32 %v6919_v33  ;;  %v2854_v55 = vsel %vm2820_vm2, %v2853_v25, %v2852_v36  ;;  %v2857_v47 = vrot.slane %v7141_v56, 4  ;;  %v2946_v30 = vadd.f32 %v2945_v12, %v2944_v61 }
 0x315   :  { %9488 = vst [vmem:[#allocation36_spill] sm:$0xff] %v7148_v0  ;;  %v7155_v57 = vpop.eup %4050  ;;  %4070 = vpow2.f32 %v6924_v22  ;;  %v2856_v44 = vsel %vm2823_vm3, %v2855_v34, %v2854_v55  ;;  %v2859_v8 = vrot.slane %v7150_v21, 3  ;;  %v2950_v19 = vadd.f32 %v2949_v18, %v2850_v29 }
 0x316   :  { %v7160_v6 = vpop.eup %4052  ;;  %4072 = vpow2.f32 %v6929_v48  ;;  %v2858_v33 = vsel %vm2826_vm4, %v2857_v47, %v2856_v44  ;;  %v2861_v25 = vrot.slane %v7155_v57, 2  ;;  %v2947_v36 = vrot.slane %v2946_v30, 1  ;;  %v9489_v47 = vld [vmem:[#allocation74_spill] sm:$0xff] }
 0x317   :  { %v7165_v0 = vpop.eup %4054  ;;  %4074 = vpow2.f32 %v6934_v31  ;;  %v2860_v22 = vsel %vm2829_vm5, %v2859_v8, %v2858_v33  ;;  %v2863_v61 = vrot.slane %v7160_v6, 1  ;;  %v2951_v12 = vrot.slane %v2950_v19, 2 }
 0x318   :  { %v7170_v34 = vpop.eup %4056  ;;  %4076 = vpow2.f32 %v6941_v45  ;;  %v2862_v48 = vsel %vm2832_vm6, %v2861_v25, %v2860_v22  ;;  %v7174_v29 = vadd.f32 %v2947_v36, %v2946_v30  ;;  %v7177_v18 = vmul.f32 0.2, %v9489_v47  ;;  %v9491_v25 = vld [vmem:[#allocation89_spill] sm:$0xff] }
 0x319   :  { %v7179_v55 = vpop.eup %4058  ;;  %4078 = vpow2.f32 %v6946_v49  ;;  %v2864_v31 = vsel %vm2835_vm7, %v2863_v61, %v2862_v48  ;;  %v2865_v44 = vrot.slane %v7170_v34, 7  ;;  %v2952_v8 = vadd.f32 %v2951_v12, %v2950_v19 }
 0x31a   :  { %9490 = vst [vmem:[#allocation121_spill] sm:$0xff] %v7177_v18  ;;  %v7184_v33 = vpop.eup %4060  ;;  %4080 = vpow2.f32 %v6951_v20  ;;  %v2867_v45 = vrot.slane %v7179_v55, 6  ;;  %v2955_v30 = vrot.slane %v2864_v31, 4  ;;  %v7189_v36 = vmul.f32 0.2, %v9491_v25 }
 0x31b   :  { %v7191_v22 = vpop.eup %4062  ;;  %4082 = vpow2.f32 %v6958_v39  ;;  %v2866_v49 = vsel %vm2817_vm1, %v2865_v44, %v7165_v0  ;;  %v2869_v61 = vrot.slane %v7184_v33, 5  ;;  %v2953_v19 = vrot.slane %v2952_v8, 1 }
 0x31c   :  { %9492 = vst [vmem:[#allocation103_spill] sm:$0xff] %v7189_v36  ;;  %v7197_v12 = vpop.eup %4064  ;;  %4084 = vpow2.f32 %v6963_v54  ;;  %v2868_v20 = vsel %vm2820_vm2, %v2867_v45, %v2866_v49  ;;  %v2871_v48 = vrot.slane %v7191_v22, 4  ;;  %v2956_v25 = vadd.f32 %v2955_v30, %v2864_v31 }
 0x31d   :  { %v7202_v36 = vpop.eup %4066  ;;  %4086 = vpow2.f32 %v6968_v3  ;;  %v2870_v39 = vsel %vm2823_vm3, %v2869_v61, %v2868_v20  ;;  %v2873_v44 = vrot.slane %v7197_v12, 3  ;;  %v7207_v47 = vadd.f32 %v2953_v19, %v2952_v8  ;;  %v9494_v61 = vld [vmem:[#allocation52_spill] sm:$0xff] }
 0x31e   :  { %v7209_v18 = vpop.eup %4068  ;;  %4088 = vpow2.f32 %v6975_v4  ;;  %v2872_v54 = vsel %vm2826_vm4, %v2871_v48, %v2870_v39  ;;  %v2875_v45 = vrot.slane %v7202_v36, 2  ;;  %v2957_v49 = vrot.slane %v2956_v25, 2 }
 0x31f   :  { %9493 = vst [vmem:[#allocation93_spill] sm:$0xff] %v7209_v18  ;;  %v7214_v31 = vpop.eup %4070  ;;  %4090 = vpow2.f32 %v6980_v10  ;;  %v2874_v3 = vsel %vm2829_vm5, %v2873_v44, %v2872_v54  ;;  %v2877_v30 = vrot.slane %v7209_v18, 1  ;;  %v9496_v54 = vld [vmem:[#allocation64_spill] sm:$0xff] }
 0x320   :  { %v7221_v19 = vpop.eup %4072  ;;  %4092 = vpow2.f32 %v6985_v59  ;;  %v2876_v4 = vsel %vm2832_vm6, %v2875_v45, %v2874_v3  ;;  %v2958_v20 = vadd.f32 %v2957_v49, %v2956_v25  ;;  %v7233_v8 = vmul.f32 0.2, %v9496_v54 }
 0x321   :  { %v7227_v39 = vpop.eup %4074  ;;  %4094 = vpow2.f32 %v6992_v7  ;;  %v2878_v10 = vsel %vm2835_vm7, %v2877_v30, %v2876_v4  ;;  %v2879_v44 = vrot.slane %v7221_v19, 7  ;;  %v9499_v30 = vld [vmem:[#allocation112_spill] sm:$0xff] }
 0x322   :  { %9495 = vst [vmem:[#allocation82_spill] sm:$0xff] %v7227_v39  ;;  %9497 = vst [vmem:[#allocation12_spill] sm:$0xff] %v7233_v8  ;;  %v7235_v18 = vpop.eup %4076  ;;  %4096 = vpow2.f32 %v6997_v14  ;;  %v2881_v59 = vrot.slane %v7227_v39, 6  ;;  %v2959_v25 = vrot.slane %v2958_v20, 1  ;;  %v2961_v45 = vrot.slane %v2878_v10, 4 }
 0x323   :  { %9498 = vst [vmem:[#allocation129_spill] sm:$0xff] %v7235_v18  ;;  %v7239_v49 = vpop.eup %4078  ;;  %4098 = vpow2.f32 %v7002_v16  ;;  %v2880_v7 = vsel %vm2817_vm1, %v2879_v44, %v7214_v31  ;;  %v2883_v3 = vrot.slane %v7235_v18, 5  ;;  %v7246_v4 = vmul.f32 0.2, %v9499_v30 }
 0x324   :  { %v7248_v48 = vpop.eup %4080  ;;  %4100 = vpow2.f32 %v7009_v11  ;;  %v2882_v14 = vsel %vm2820_vm2, %v2881_v59, %v2880_v7  ;;  %v2885_v54 = vrot.slane %v7239_v49, 4  ;;  %v2960_v8 = vadd.f32 %v2959_v25, %v2958_v20  ;;  %v9501_v7 = vld [vmem:[#allocation59_spill] sm:$0xff] }
 0x325   :  { %9500 = vst [vmem:[#allocation113_spill] sm:$0xff] %v7246_v4  ;;  %v7253_v39 = vpop.eup %4082  ;;  %4102 = vpow2.f32 %v7014_v17  ;;  %v2884_v16 = vsel %vm2823_vm3, %v2883_v3, %v2882_v14  ;;  %v2887_v44 = vrot.slane %v7248_v48, 3  ;;  %v2962_v18 = vadd.f32 %v2961_v45, %v2878_v10 }
 0x326   :  { %v7258_v30 = vpop.eup %4084  ;;  %4104 = vpow2.f32 %v7019_v53  ;;  %v2886_v11 = vsel %vm2826_vm4, %v2885_v54, %v2884_v16  ;;  %v2889_v59 = vrot.slane %v7253_v39, 2  ;;  %v7264_v4 = vmul.f32 0.2, %v9501_v7 }
 0x327   :  { %v7266_v20 = vpop.eup %4086  ;;  %4106 = vpow2.f32 %v7026_v27  ;;  %v2888_v17 = vsel %vm2829_vm5, %v2887_v44, %v2886_v11  ;;  %v2891_v25 = vrot.slane %v7258_v30, 1  ;;  %v2963_v10 = vrot.slane %v2962_v18, 2 }
 0x328   :  { %9502 = vst [vmem:[#allocation39_spill] sm:$0xff] %v7264_v4  ;;  %v7271_v45 = vpop.eup %4088  ;;  %4108 = vpow2.f32 %v7031_v41  ;;  %v2890_v53 = vsel %vm2832_vm6, %v2889_v59, %v2888_v17  ;;  %v3002_v54 = vrot.slane %v2960_v8, %v9494_v61 }
 0x329   :  { %v7278_v7 = vpop.eup %4090  ;;  %4110 = vpow2.f32 %v7036_v51  ;;  %v2892_v27 = vsel %vm2835_vm7, %v2891_v25, %v2890_v53  ;;  %v2893_v44 = vrot.slane %v7271_v45, 7  ;;  %v2964_v11 = vadd.f32 %v2963_v10, %v2962_v18 }
 0x32a   :  { %v7283_v4 = vpop.eup %4092  ;;  %4112 = vpow2.f32 %v7043_v1  ;;  %v2895_v41 = vrot.slane %v7278_v7, 6  ;;  %v2967_v59 = vrot.slane %v2892_v27, 4 }
 0x32b   :  { %v7289_v17 = vpop.eup %4094  ;;  %4114 = vpow2.f32 %v7048_v15  ;;  %v2894_v51 = vsel %vm2817_vm1, %v2893_v44, %v7266_v20  ;;  %v2897_v25 = vrot.slane %v7283_v4, 5  ;;  %v2965_v18 = vrot.slane %v2964_v11, 1 }
 0x32c   :  { %v7295_v10 = vpop.eup %4096  ;;  %4116 = vpow2.f32 %v7057_v63  ;;  %v2896_v1 = vsel %vm2820_vm2, %v2895_v41, %v2894_v51  ;;  %v2899_v53 = vrot.slane %v7289_v17, 4  ;;  %v2968_v16 = vadd.f32 %v2967_v59, %v2892_v27 }
 0x32d   :  { %9505 = vst [vmem:[#allocation25_spill] sm:$0xff] %v7295_v10  ;;  %v7300_v8 = vpop.eup %4098  ;;  %v2898_v5 = vsel %vm2823_vm3, %v2897_v25, %v2896_v1  ;;  %v2901_v15 = vrot.slane %v7295_v10, 3  ;;  %v2966_v42 = vadd.f32 %v2965_v18, %v2964_v11  ;;  %v9507_v44 = vrot.slane %v7174_v29, %v9494_v61 }
 0x32e   :  { %9506 = vst [vmem:[#allocation138_spill] sm:$0xff] %v7300_v8  ;;  %v7307_v3 = vpop.eup %4100  ;;  %v2900_v63 = vsel %vm2826_vm4, %v2899_v53, %v2898_v5  ;;  %v2903_v41 = vrot.slane %v7300_v8, 2  ;;  %v2969_v51 = vrot.slane %v2968_v16, 2  ;;  %v9508_v27 = vrot.slane %v7207_v47, %v9494_v61 }
 0x32f   :  { %4118 = vrcp.f32 %v9507_v44  ;;  %v7314_v59 = vpop.eup %4102  ;;  %v2902_v25 = vsel %vm2829_vm5, %v2901_v15, %v2900_v63  ;;  %v2905_v11 = vrot.slane %v7307_v3, 1  ;;  %v3006_v29 = vrot.slane %v2966_v42, %v9494_v61 }
 0x330   :  { %4120 = vrcp.f32 %v9508_v27  ;;  %v7321_v14 = vpop.eup %4104  ;;  %v2904_v5 = vsel %vm2832_vm6, %v2903_v41, %v2902_v25  ;;  %v2970_v53 = vadd.f32 %v2969_v51, %v2968_v16 }
 0x331   :  { %4122 = vrcp.f32 %v3002_v54  ;;  %v7326_v10 = vpop.eup %4106  ;;  %v2906_v15 = vsel %vm2835_vm7, %v2905_v11, %v2904_v5  ;;  %v2907_v63 = vrot.slane %v7321_v14, 7 }
 0x332   :  { %9513 = vst [vmem:[#allocation145_spill] sm:$0xff] %v7326_v10  ;;  %4124 = vrcp.f32 %v3006_v29  ;;  %v7332_v44 = vpop.eup %4108  ;;  %v2909_v18 = vrot.slane %v7326_v10, 6  ;;  %v2971_v41 = vrot.slane %v2970_v53, 1  ;;  %v2973_v16 = vrot.slane %v2906_v15, 4 }
 0x333   :  { %9514 = vst [vmem:[#allocation134_spill] sm:$0xff] %v7332_v44  ;;  %v7337_v51 = vpop.eup %4110  ;;  %v2908_v25 = vsel %vm2817_vm1, %v2907_v63, %v7314_v59  ;;  %v2911_v11 = vrot.slane %v7332_v44, 5 }
 0x334   :  { %9515 = vst [vmem:[#allocation150_spill] sm:$0xff] %v7337_v51  ;;  %v7346_v8 = vpop.eup %4112  ;;  %v2910_v47 = vsel %vm2820_vm2, %v2909_v18, %v2908_v25  ;;  %v2913_v1 = vrot.slane %v7337_v51, 4  ;;  %v7350_v54 = vadd.f32 %v2971_v41, %v2970_v53  ;;  %v2974_v9 = vadd.f32 %v2973_v16, %v2906_v15 }
 0x335   :  { %9520 = vst [vmem:[#allocation146_spill] sm:$0xff] %v7346_v8  ;;  %v7352_v60 = vpop.eup %4114  ;;  %v2912_v63 = vsel %vm2823_vm3, %v2911_v11, %v2910_v47  ;;  %v2915_v44 = vrot.slane %v7346_v8, 3 }
 0x336   :  { %9521 = vst [vmem:[#allocation76_spill] sm:$0xff] %v7352_v60  ;;  %v7360_v42 = vpop.eup %4116  ;;  %v2914_v18 = vsel %vm2826_vm4, %v2913_v1, %v2912_v63  ;;  %v2917_v53 = vrot.slane %v7352_v60, 2  ;;  %v2975_v41 = vrot.slane %v2974_v9, 2  ;;  %v3010_v27 = vrot.slane %v7350_v54, %v9494_v61 }
 0x337   :  { %9522 = vst [vmem:[#allocation90_spill] sm:$0xff] %v7360_v42  ;;  %v2916_v47 = vsel %vm2829_vm5, %v2915_v44, %v2914_v18  ;;  %v2919_v11 = vrot.slane %v7360_v42, 1  ;;  %v9530_v42 = vld [vmem:[#allocation21_spill] sm:$0xff] }
 0x338   :  { %v2918_v1 = vsel %vm2832_vm6, %v2917_v53, %v2916_v47  ;;  %v2976_v63 = vadd.f32 %v2975_v41, %v2974_v9  ;;  %v9527_v47 = vld [vmem:[#allocation24_spill] sm:$0xff]  ;;  %4126 = vrcp.f32 %v3010_v27 }
 0x339   :  { %v4119_v43 = vpop.eup %4118  ;;  %v2920_v25 = vsel %vm2835_vm7, %v2919_v11, %v2918_v1  ;;  %v9528_v1 = vld [vmem:[#allocation19_spill] sm:$0xff] }
 0x33a   :  { %v4121_v58 = vpop.eup %4120  ;;  %v3024_v46 = vmul.f32 %v4119_v43, %v6936_v62  ;;  %v3025_v29 = vmul.f32 %v4119_v43, %v6953_v2  ;;  %v3026_v44 = vmul.f32 %v4119_v43, %v6970_v37  ;;  %v3027_v18 = vmul.f32 %v4119_v43, %v6987_v26 }
 0x33b   :  { %v3028_v15 = vmul.f32 %v4119_v43, %v7004_v13  ;;  %v4123_v54 = vpop.eup %4122  ;;  %v2977_v16 = vrot.slane %v2976_v63, 1  ;;  %v2979_v5 = vrot.slane %v2920_v25, 4  ;;  %v3029_v23 = vmul.f32 %v4119_v43, %v7021_v32  ;;  %v9531_v32 = vld [vmem:[#allocation38_spill] sm:$0xff] }
 0x33c   :  { %v3030_v53 = vmul.f32 %v4119_v43, %v7038_v38  ;;  %v4125_v9 = vpop.eup %4124  ;;  %v3031_v62 = vmul.f32 %v4119_v43, %v7051_v28  ;;  %v3033_v2 = vmul.f32 %v4121_v58, %v7061_v24  ;;  %v3034_v41 = vmul.f32 %v4121_v58, %v7068_v40  ;;  %v9532_v38 = vld [vmem:[#allocation60_spill] sm:$0xff]  ;;  %v9533_v40 = vld [vmem:[#allocation114_spill] sm:$0xff] }
 0x33d   :  { %v3035_v37 = vmul.f32 %v4121_v58, %v9527_v47  ;;  %v2978_v11 = vadd.f32 %v2977_v16, %v2976_v63  ;;  %v2980_v26 = vadd.f32 %v2979_v5, %v2920_v25  ;;  %v3036_v13 = vmul.f32 %v4121_v58, %v9528_v1  ;;  %v9534_v47 = vld [vmem:[#allocation35_spill] sm:$0xff] }
 0x33e   :  { %v3037_v50 = vmul.f32 %v4121_v58, %v9529_v52  ;;  %v3038_v60 = vmul.f32 %v4121_v58, %v9530_v42  ;;  %v3039_v8 = vmul.f32 %v4121_v58, %v9531_v32  ;;  %v3040_v51 = vmul.f32 %v4121_v58, %v9532_v38  ;;  %v9535_v5 = vld [vmem:[#allocation127_spill] sm:$0xff] }
 0x33f   :  { %v3042_v43 = vmul.f32 %v4123_v54, %v7114_v35  ;;  %v2981_v28 = vrot.slane %v2980_v26, 2  ;;  %v3014_v24 = vrot.slane %v2978_v11, %v9494_v61  ;;  %v3043_v10 = vmul.f32 %v4123_v54, %v9533_v40 }
 0x340   :  { %v3044_v16 = vmul.f32 %v4123_v54, %v9534_v47  ;;  %v3045_v25 = vmul.f32 %v4123_v54, %v9535_v5  ;;  %v3046_v63 = vmul.f32 %v4123_v54, %v7141_v56  ;;  %v3047_v52 = vmul.f32 %v4123_v54, %v7150_v21  ;;  %v9536_v5 = vld [vmem:[#allocation93_spill] sm:$0xff] }
 0x341   :  { %v3048_v42 = vmul.f32 %v4123_v54, %v7155_v57  ;;  %v2982_v1 = vadd.f32 %v2981_v28, %v2980_v26  ;;  %v3049_v58 = vmul.f32 %v4123_v54, %v7160_v6  ;;  %v3051_v35 = vmul.f32 %v4125_v9, %v7165_v0 }
 0x342   :  { %v3052_v32 = vmul.f32 %v4125_v9, %v7170_v34  ;;  %v3053_v11 = vmul.f32 %v4125_v9, %v7179_v55  ;;  %v3054_v38 = vmul.f32 %v4125_v9, %v7184_v33  ;;  %v3055_v40 = vmul.f32 %v4125_v9, %v7191_v22 }
 0x343   :  { %v3056_v47 = vmul.f32 %v4125_v9, %v7197_v12  ;;  %v2983_v56 = vrot.slane %v2982_v1, 1  ;;  %v3057_v21 = vmul.f32 %v4125_v9, %v7202_v36  ;;  %v3058_v57 = vmul.f32 %v4125_v9, %v9536_v5 }
 0x344   :  { %4128 = vrcp.f32 %v3014_v24  ;;  %v3098_v6 = vrot.slane %v3024_v46, %v9494_v61  ;;  %v3102_v0 = vrot.slane %v3025_v29, %v9494_v61  ;;  %v7410_v34 = vrot.slane %v3026_v44, %v9494_v61 }
 0x345   :  { %v2984_v55 = vadd.f32 %v2983_v56, %v2982_v1  ;;  %v7413_v33 = vrot.slane %v3027_v18, %v9494_v61  ;;  %v7416_v22 = vrot.slane %v3028_v15, %v9494_v61  ;;  %v7419_v36 = vrot.slane %v3029_v23, %v9494_v61  ;;  %v7505_v1 = vld [vmem:[#allocation2 + $0x8] sm:$0xff] }
 0x346   :  { %v7422_v12 = vrot.slane %v3030_v53, %v9494_v61  ;;  %v7425_v46 = vrot.slane %v3031_v62, %v9494_v61  ;;  %v7428_v27 = vrot.slane %v3033_v2, %v9494_v61  ;;  %v7431_v29 = vrot.slane %v3034_v41, %v9494_v61 }
 0x347   :  { %v3018_v44 = vrot.slane %v2984_v55, %v9494_v61  ;;  %v7435_v15 = vrot.slane %v3035_v37, %v9494_v61  ;;  %v7438_v23 = vrot.slane %v3036_v13, %v9494_v61  ;;  %v7441_v18 = vrot.slane %v3037_v50, %v9494_v61 }
 0x348   :  { %v7444_v54 = vrot.slane %v3038_v60, %v9494_v61  ;;  %v7447_v53 = vrot.slane %v3039_v8, %v9494_v61  ;;  %v7450_v9 = vrot.slane %v3040_v51, %v9494_v61  ;;  %v7453_v62 = vrot.slane %v3042_v43, %v9494_v61 }
 0x349   :  { %4130 = vrcp.f32 %v3018_v44  ;;  %v7456_v2 = vrot.slane %v3043_v10, %v9494_v61  ;;  %v7459_v41 = vrot.slane %v3044_v16, %v9494_v61  ;;  %v7462_v50 = vrot.slane %v3045_v25, %v9494_v61 }
 0x34a   :  { %v7465_v60 = vrot.slane %v3046_v63, %v9494_v61  ;;  %v7468_v8 = vrot.slane %v3047_v52, %v9494_v61  ;;  %v7471_v51 = vrot.slane %v3048_v42, %v9494_v61  ;;  %v7474_v37 = vrot.slane %v3049_v58, %v9494_v61  ;;  %v4127_v63 = vpop.eup %4126  ;;  %v7500_v52 = vld [vmem:[#allocation2] sm:$0xff] }
 0x34b   :  { %v7477_v10 = vrot.slane %v3051_v35, %v9494_v61  ;;  %v7480_v26 = vrot.slane %v3052_v32, %v9494_v61  ;;  %v7483_v13 = vrot.slane %v3053_v11, %v9494_v61  ;;  %v7486_v43 = vrot.slane %v3054_v38, %v9494_v61  ;;  %v7510_v35 = vld [vmem:[#allocation2 + $0x10] sm:$0xff]  ;;  %v7515_v11 = vld [vmem:[#allocation2 + $0x18] sm:$0xff] }
 0x34c   :  { %v7489_v28 = vrot.slane %v3055_v40, %v9494_v61  ;;  %v7492_v24 = vrot.slane %v3056_v47, %v9494_v61  ;;  %v7495_v16 = vrot.slane %v3057_v21, %v9494_v61  ;;  %v7498_v25 = vrot.slane %v3058_v57, %v9494_v61  ;;  %v9542_v21 = vld [vmem:[#allocation82_spill] sm:$0xff]  ;;  %v9543_v57 = vld [vmem:[#allocation129_spill] sm:$0xff] }
 0x34d   :  { %v7503_v42 = vmul.f32 %v7500_v52, %v3098_v6  ;;  %v7508_v58 = vmul.f32 %v7505_v1, %v3098_v6  ;;  %v7513_v32 = vmul.f32 %v7510_v35, %v3102_v0  ;;  %v7518_v38 = vmul.f32 %v7515_v11, %v3102_v0 }
 0x34e   :  { %9537 = vst [vmem:[#allocation151_spill] sm:$0xff] %v7498_v25  ;;  %v4129_v40 = vpop.eup %4128  ;;  %v3060_v47 = vmul.f32 %v4127_v63, %v7214_v31  ;;  %v3061_v56 = vmul.f32 %v4127_v63, %v7221_v19  ;;  %v3062_v5 = vmul.f32 %v4127_v63, %v9542_v21  ;;  %v3063_v6 = vmul.f32 %v4127_v63, %v9543_v57  ;;  %v9545_v25 = vld [vmem:[#allocation138_spill] sm:$0xff] }
 0x34f   :  { %9538 = vst [vmem:[#allocation147_spill] sm:$0xff] %v7503_v42  ;;  %9539 = vst [vmem:[#allocation152_spill] sm:$0xff] %v7508_v58  ;;  %v3064_v55 = vmul.f32 %v4127_v63, %v7239_v49  ;;  %v3065_v44 = vmul.f32 %v4127_v63, %v7248_v48  ;;  %v3066_v58 = vmul.f32 %v4127_v63, %v7253_v39  ;;  %v9544_v42 = vld [vmem:[#allocation25_spill] sm:$0xff] }
 0x350   :  { %9540 = vst [vmem:[#allocation148_spill] sm:$0xff] %v7513_v32  ;;  %9541 = vst [vmem:[#allocation23_spill] sm:$0xff] %v7518_v38  ;;  %v3067_v32 = vmul.f32 %v4127_v63, %v7258_v30  ;;  %v3069_v0 = vmul.f32 %v4129_v40, %v7266_v20  ;;  %v3070_v38 = vmul.f32 %v4129_v40, %v7271_v45 }
 0x351   :  { %v3071_v31 = vmul.f32 %v4129_v40, %v7278_v7  ;;  %v3072_v19 = vmul.f32 %v4129_v40, %v7283_v4  ;;  %v3073_v21 = vmul.f32 %v4129_v40, %v7289_v17  ;;  %v3074_v57 = vmul.f32 %v4129_v40, %v9544_v42 }
 0x352   :  { %v3075_v49 = vmul.f32 %v4129_v40, %v9545_v25  ;;  %v3076_v48 = vmul.f32 %v4129_v40, %v7307_v3  ;;  %v7537_v39 = vrot.slane %v3060_v47, %v9494_v61  ;;  %v7540_v30 = vrot.slane %v3061_v56, %v9494_v61  ;;  %v9551_v40 = vld [vmem:[#allocation145_spill] sm:$0xff]  ;;  %v9552_v56 = vld [vmem:[#allocation134_spill] sm:$0xff] }
 0x353   :  { %v7543_v20 = vrot.slane %v3062_v5, %v9494_v61  ;;  %v7546_v7 = vrot.slane %v3063_v6, %v9494_v61  ;;  %v4131_v4 = vpop.eup %4130  ;;  %v7549_v45 = vrot.slane %v3064_v55, %v9494_v61  ;;  %v7552_v17 = vrot.slane %v3065_v44, %v9494_v61  ;;  %v9553_v6 = vld [vmem:[#allocation150_spill] sm:$0xff]  ;;  %v9555_v44 = vld [vmem:[#allocation76_spill] sm:$0xff] }
 0x354   :  { %v7555_v3 = vrot.slane %v3066_v58, %v9494_v61  ;;  %v7558_v25 = vrot.slane %v3067_v32, %v9494_v61  ;;  %v3078_v63 = vmul.f32 %v4131_v4, %v7314_v59  ;;  %v3079_v42 = vmul.f32 %v4131_v4, %v7321_v14 }
 0x355   :  { %9546 = vst [vmem:[#allocation102_spill] sm:$0xff] %v7543_v20  ;;  %9547 = vst [vmem:[#allocation87_spill] sm:$0xff] %v7546_v7  ;;  %v3080_v47 = vmul.f32 %v4131_v4, %v9551_v40  ;;  %v3081_v5 = vmul.f32 %v4131_v4, %v9552_v56  ;;  %v3082_v55 = vmul.f32 %v4131_v4, %v9553_v6  ;;  %v9556_v20 = vld [vmem:[#allocation90_spill] sm:$0xff] }
 0x356   :  { %9548 = vst [vmem:[#allocation153_spill] sm:$0xff] %v7549_v45  ;;  %9549 = vst [vmem:[#allocation149_spill] sm:$0xff] %v7552_v17  ;;  %v9554_v45 = vld [vmem:[#allocation146_spill] sm:$0xff]  ;;  %v3084_v17 = vmul.f32 %v4131_v4, %v9555_v44  ;;  %v3085_v58 = vmul.f32 %v4131_v4, %v9556_v20  ;;  %v7572_v32 = vrot.slane %v3070_v38, %v9494_v61 }
 0x357   :  { %9550 = vst [vmem:[#allocation75_spill] sm:$0xff] %v7555_v3  ;;  %v3083_v7 = vmul.f32 %v4131_v4, %v9554_v45  ;;  %v7569_v3 = vrot.slane %v3069_v0, %v9494_v61  ;;  %v7575_v14 = vrot.slane %v3071_v31, %v9494_v61  ;;  %v7578_v59 = vrot.slane %v3072_v19, %v9494_v61 }
 0x358   :  { %v7581_v40 = vrot.slane %v3073_v21, %v9494_v61  ;;  %v7584_v45 = vrot.slane %v3074_v57, %v9494_v61  ;;  %v7587_v20 = vrot.slane %v3075_v49, %v9494_v61  ;;  %v7590_v0 = vrot.slane %v3076_v48, %v9494_v61 }
 0x359   :  { %v7593_v38 = vrot.slane %v3078_v63, %v9494_v61  ;;  %v7596_v31 = vrot.slane %v3079_v42, %v9494_v61  ;;  %v7599_v19 = vrot.slane %v3080_v47, %v9494_v61  ;;  %v7602_v21 = vrot.slane %v3081_v5, %v9494_v61  ;;  %v7616_v63 = vld [vmem:[#allocation2 + $0x20] sm:$0xff]  ;;  %v7622_v47 = vld [vmem:[#allocation2 + $0x28] sm:$0xff]  ;;  %v7634_v5 = vld [vmem:[#allocation2 + $0x38] sm:$0xff] }
 0x35a   :  { %v7605_v57 = vrot.slane %v3082_v55, %v9494_v61  ;;  %v7608_v49 = vrot.slane %v3083_v7, %v9494_v61  ;;  %v7611_v48 = vrot.slane %v3084_v17, %v9494_v61  ;;  %v7614_v4 = vrot.slane %v3085_v58, %v9494_v61  ;;  %9557 = vst [vmem:[#allocation72_spill] sm:$0xff] %v7616_v63  ;;  %v7628_v7 = vld [vmem:[#allocation2 + $0x30] sm:$0xff]  ;;  %v7640_v55 = vld [vmem:[#allocation2 + $0x40] sm:$0xff] }
 0x35b   :  { %v7620_v42 = vmul.f32 %v7616_v63, %v7410_v34  ;;  %9559 = vst [vmem:[#allocation155_spill] sm:$0xff] %v7622_v47  ;;  %v7626_v56 = vmul.f32 %v7622_v47, %v7410_v34  ;;  %9561 = vst [vmem:[#allocation29_spill] sm:$0xff] %v7628_v7  ;;  %v7632_v17 = vmul.f32 %v7628_v7, %v7413_v33  ;;  %v7646_v34 = vld [vmem:[#allocation2 + $0x48] sm:$0xff]  ;;  %v7652_v61 = vld [vmem:[#allocation2 + $0x50] sm:$0xff] }
 0x35c   :  { %9563 = vst [vmem:[#allocation62_spill] sm:$0xff] %v7634_v5  ;;  %v7638_v6 = vmul.f32 %v7634_v5, %v7413_v33  ;;  %v7644_v44 = vmul.f32 %v7640_v55, %v7416_v22  ;;  %v7650_v58 = vmul.f32 %v7646_v34, %v7416_v22  ;;  %v7658_v33 = vld [vmem:[#allocation2 + $0x58] sm:$0xff]  ;;  %v7670_v22 = vld [vmem:[#allocation2 + $0x68] sm:$0xff] }
 0x35d   :  { %9558 = vst [vmem:[#allocation154_spill] sm:$0xff] %v7620_v42  ;;  %9560 = vst [vmem:[#allocation57_spill] sm:$0xff] %v7626_v56  ;;  %v7664_v56 = vld [vmem:[#allocation2 + $0x60] sm:$0xff]  ;;  %v7676_v42 = vld [vmem:[#allocation2 + $0x70] sm:$0xff] }
 0x35e   :  { %9562 = vst [vmem:[#allocation156_spill] sm:$0xff] %v7632_v17  ;;  %9564 = vst [vmem:[#allocation88_spill] sm:$0xff] %v7638_v6  ;;  %v7656_v17 = vmul.f32 %v7652_v61, %v7419_v36  ;;  %v7662_v6 = vmul.f32 %v7658_v33, %v7419_v36  ;;  %v7682_v36 = vld [vmem:[#allocation2 + $0x78] sm:$0xff] }
 0x35f   :  { %9565 = vst [vmem:[#allocation68_spill] sm:$0xff] %v7644_v44  ;;  %9566 = vst [vmem:[#allocation105_spill] sm:$0xff] %v7650_v58  ;;  %v7668_v44 = vmul.f32 %v7664_v56, %v7422_v12  ;;  %v7674_v58 = vmul.f32 %v7670_v22, %v7422_v12  ;;  %v7694_v12 = vmul.f32 %v7505_v1, %v7428_v27 }
 0x360   :  { %9567 = vst [vmem:[#allocation50_spill] sm:$0xff] %v7656_v17  ;;  %9568 = vst [vmem:[#allocation142_spill] sm:$0xff] %v7662_v6  ;;  %v7680_v17 = vmul.f32 %v7676_v42, %v7425_v46  ;;  %v7686_v6 = vmul.f32 %v7682_v36, %v7425_v46  ;;  %v7706_v46 = vmul.f32 %v7616_v63, %v7435_v15 }
 0x361   :  { %9569 = vst [vmem:[#allocation54_spill] sm:$0xff] %v7668_v44  ;;  %9570 = vst [vmem:[#allocation130_spill] sm:$0xff] %v7674_v58  ;;  %v7690_v44 = vmul.f32 %v7500_v52, %v7428_v27  ;;  %v7698_v58 = vmul.f32 %v7510_v35, %v7431_v29  ;;  %v7714_v27 = vmul.f32 %v7628_v7, %v7438_v23 }
 0x362   :  { %9571 = vst [vmem:[#allocation42_spill] sm:$0xff] %v7680_v17  ;;  %9572 = vst [vmem:[#allocation51_spill] sm:$0xff] %v7686_v6  ;;  %v7702_v17 = vmul.f32 %v7515_v11, %v7431_v29  ;;  %v7710_v6 = vmul.f32 %v7622_v47, %v7435_v15  ;;  %v7722_v29 = vmul.f32 %v7640_v55, %v7441_v18 }
 0x363   :  { %9573 = vst [vmem:[#allocation98_spill] sm:$0xff] %v7694_v12  ;;  %v7718_v12 = vmul.f32 %v7634_v5, %v7438_v23  ;;  %v7730_v15 = vmul.f32 %v7652_v61, %v7444_v54  ;;  %v7738_v23 = vmul.f32 %v7664_v56, %v7447_v53 }
 0x364   :  { %9574 = vst [vmem:[#allocation46_spill] sm:$0xff] %v7702_v17  ;;  %9575 = vst [vmem:[#allocation85_spill] sm:$0xff] %v7710_v6  ;;  %v7726_v17 = vmul.f32 %v7646_v34, %v7441_v18  ;;  %v7734_v6 = vmul.f32 %v7658_v33, %v7444_v54  ;;  %v7746_v18 = vmul.f32 %v7676_v42, %v7450_v9 }
 0x365   :  { %9576 = vst [vmem:[#allocation109_spill] sm:$0xff] %v7718_v12  ;;  %9577 = vst [vmem:[#allocation47_spill] sm:$0xff] %v7722_v29  ;;  %v7742_v12 = vmul.f32 %v7670_v22, %v7447_v53  ;;  %v7754_v54 = vmul.f32 %v7500_v52, %v7453_v62  ;;  %v7762_v53 = vmul.f32 %v7510_v35, %v7456_v2 }
 0x366   :  { %9578 = vst [vmem:[#allocation86_spill] sm:$0xff] %v7726_v17  ;;  %9579 = vst [vmem:[#allocation110_spill] sm:$0xff] %v7730_v15  ;;  %v7750_v17 = vmul.f32 %v7682_v36, %v7450_v9  ;;  %v7770_v9 = vmul.f32 %v7616_v63, %v7459_v41  ;;  %v7798_v15 = vmul.f32 %v7658_v33, %v7468_v8 }
 0x367   :  { %9580 = vst [vmem:[#allocation41_spill] sm:$0xff] %v7734_v6  ;;  %9581 = vst [vmem:[#allocation44_spill] sm:$0xff] %v7738_v23  ;;  %v7758_v6 = vmul.f32 %v7505_v1, %v7453_v62  ;;  %v7778_v62 = vmul.f32 %v7628_v7, %v7462_v50  ;;  %v7790_v23 = vmul.f32 %v7646_v34, %v7465_v60 }
 0x368   :  { %9582 = vst [vmem:[#allocation63_spill] sm:$0xff] %v7742_v12  ;;  %9583 = vst [vmem:[#allocation61_spill] sm:$0xff] %v7746_v18  ;;  %v7766_v12 = vmul.f32 %v7515_v11, %v7456_v2  ;;  %v7782_v18 = vmul.f32 %v7634_v5, %v7462_v50  ;;  %v7786_v2 = vmul.f32 %v7640_v55, %v7465_v60 }
 0x369   :  { %9584 = vst [vmem:[#allocation49_spill] sm:$0xff] %v7750_v17  ;;  %v7774_v17 = vmul.f32 %v7622_v47, %v7459_v41  ;;  %9586 = vst [vmem:[#allocation53_spill] sm:$0xff] %v7790_v23  ;;  %v7794_v41 = vmul.f32 %v7652_v61, %v7468_v8  ;;  %v7802_v50 = vmul.f32 %v7664_v56, %v7471_v51 }
 0x36a   :  { %9585 = vst [vmem:[#allocation116_spill] sm:$0xff] %v7786_v2  ;;  %9588 = vst [vmem:[#allocation101_spill] sm:$0xff] %v7798_v15  ;;  %v7806_v29 = vmul.f32 %v7670_v22, %v7471_v51  ;;  %v7810_v60 = vmul.f32 %v7676_v42, %v7474_v37  ;;  %v7814_v23 = vmul.f32 %v7682_v36, %v7474_v37 }
 0x36b   :  { %9587 = vst [vmem:[#allocation37_spill] sm:$0xff] %v7794_v41  ;;  %9589 = vst [vmem:[#allocation56_spill] sm:$0xff] %v7802_v50  ;;  %v7818_v8 = vmul.f32 %v7500_v52, %v7477_v10  ;;  %v7822_v15 = vmul.f32 %v7505_v1, %v7477_v10  ;;  %v7826_v51 = vmul.f32 %v7510_v35, %v7480_v26 }
 0x36c   :  { %9590 = vst [vmem:[#allocation99_spill] sm:$0xff] %v7806_v29  ;;  %9591 = vst [vmem:[#allocation117_spill] sm:$0xff] %v7810_v60  ;;  %v7830_v29 = vmul.f32 %v7515_v11, %v7480_v26  ;;  %v7834_v37 = vmul.f32 %v7616_v63, %v7483_v13  ;;  %v7842_v10 = vmul.f32 %v7628_v7, %v7486_v43 }
 0x36d   :  { %9592 = vst [vmem:[#allocation128_spill] sm:$0xff] %v7814_v23  ;;  %v7838_v23 = vmul.f32 %v7622_v47, %v7483_v13  ;;  %v7846_v60 = vmul.f32 %v7634_v5, %v7486_v43  ;;  %v7850_v26 = vmul.f32 %v7640_v55, %v7489_v28  ;;  %v7854_v50 = vmul.f32 %v7646_v34, %v7489_v28 }
 0x36e   :  { %v7858_v13 = vmul.f32 %v7652_v61, %v7492_v24  ;;  %v7862_v41 = vmul.f32 %v7658_v33, %v7492_v24  ;;  %v7866_v43 = vmul.f32 %v7664_v56, %v7495_v16  ;;  %v7870_v2 = vmul.f32 %v7670_v22, %v7495_v16 }
 0x36f   :  { %9593 = vst [vmem:[#allocation65_spill] sm:$0xff] %v7850_v26  ;;  %9594 = vst [vmem:[#allocation30_spill] sm:$0xff] %v7854_v50  ;;  %v9597_v26 = vld [vmem:[#allocation151_spill] sm:$0xff]  ;;  %v7882_v24 = vmul.f32 %v7500_v52, %v7537_v39  ;;  %v7890_v16 = vmul.f32 %v7510_v35, %v7540_v30 }
 0x370   :  { %9595 = vst [vmem:[#allocation104_spill] sm:$0xff] %v7862_v41  ;;  %9596 = vst [vmem:[#allocation58_spill] sm:$0xff] %v7870_v2  ;;  %v7874_v28 = vmul.f32 %v7676_v42, %v9597_v26  ;;  %v7878_v50 = vmul.f32 %v7682_v36, %v9597_v26  ;;  %v7886_v41 = vmul.f32 %v7505_v1, %v7537_v39 }
 0x371   :  { %9600 = vst [vmem:[#allocation124_spill] sm:$0xff] %v7882_v24  ;;  %9602 = vst [vmem:[#allocation95_spill] sm:$0xff] %v7890_v16  ;;  %v7894_v2 = vmul.f32 %v7515_v11, %v7540_v30  ;;  %v9607_v24 = vld [vmem:[#allocation87_spill] sm:$0xff]  ;;  %v9610_v16 = vld [vmem:[#allocation153_spill] sm:$0xff] }
 0x372   :  { %9598 = vst [vmem:[#allocation79_spill] sm:$0xff] %v7874_v28  ;;  %9599 = vst [vmem:[#allocation118_spill] sm:$0xff] %v7878_v50  ;;  %v9604_v28 = vld [vmem:[#allocation102_spill] sm:$0xff]  ;;  %v7906_v39 = vmul.f32 %v7628_v7, %v9607_v24  ;;  %v7914_v30 = vmul.f32 %v7640_v55, %v9610_v16 }
 0x373   :  { %9601 = vst [vmem:[#allocation125_spill] sm:$0xff] %v7886_v41  ;;  %9603 = vst [vmem:[#allocation81_spill] sm:$0xff] %v7894_v2  ;;  %v7898_v26 = vmul.f32 %v7616_v63, %v9604_v28  ;;  %v7902_v50 = vmul.f32 %v7622_v47, %v9604_v28  ;;  %v7910_v41 = vmul.f32 %v7634_v5, %v9607_v24 }
 0x374   :  { %9608 = vst [vmem:[#allocation78_spill] sm:$0xff] %v7906_v39  ;;  %9611 = vst [vmem:[#allocation139_spill] sm:$0xff] %v7914_v30  ;;  %v7918_v2 = vmul.f32 %v7646_v34, %v9610_v16  ;;  %v9616_v39 = vld [vmem:[#allocation75_spill] sm:$0xff]  ;;  %v7938_v16 = vmul.f32 %v7676_v42, %v7558_v25  ;;  %v7998_v30 = vmul.f32 %v7670_v22, %v7587_v20 }
 0x375   :  { %9605 = vst [vmem:[#allocation11_spill] sm:$0xff] %v7898_v26  ;;  %9606 = vst [vmem:[#allocation135_spill] sm:$0xff] %v7902_v50  ;;  %v9613_v26 = vld [vmem:[#allocation149_spill] sm:$0xff]  ;;  %v7930_v24 = vmul.f32 %v7664_v56, %v9616_v39 }
 0x376   :  { %9609 = vst [vmem:[#allocation77_spill] sm:$0xff] %v7910_v41  ;;  %9612 = vst [vmem:[#allocation115_spill] sm:$0xff] %v7918_v2  ;;  %v7922_v28 = vmul.f32 %v7652_v61, %v9613_v26  ;;  %v7926_v50 = vmul.f32 %v7658_v33, %v9613_v26  ;;  %v7934_v41 = vmul.f32 %v7670_v22, %v9616_v39 }
 0x377   :  { %9617 = vst [vmem:[#allocation45_spill] sm:$0xff] %v7930_v24  ;;  %9619 = vst [vmem:[#allocation73_spill] sm:$0xff] %v7938_v16  ;;  %v7942_v2 = vmul.f32 %v7682_v36, %v7558_v25  ;;  %v7946_v26 = vmul.f32 %v7500_v52, %v7569_v3  ;;  %v7954_v39 = vmul.f32 %v7510_v35, %v7572_v32 }
 0x378   :  { %9614 = vst [vmem:[#allocation111_spill] sm:$0xff] %v7922_v28  ;;  %9615 = vst [vmem:[#allocation34_spill] sm:$0xff] %v7926_v50  ;;  %v7950_v50 = vmul.f32 %v7505_v1, %v7569_v3  ;;  %v7962_v25 = vmul.f32 %v7616_v63, %v7575_v14  ;;  %v7970_v3 = vmul.f32 %v7628_v7, %v7578_v59 }
 0x379   :  { %9618 = vst [vmem:[#allocation122_spill] sm:$0xff] %v7934_v41  ;;  %9620 = vst [vmem:[#allocation119_spill] sm:$0xff] %v7942_v2  ;;  %v7958_v41 = vmul.f32 %v7515_v11, %v7572_v32  ;;  %v7966_v2 = vmul.f32 %v7622_v47, %v7575_v14  ;;  %v7974_v16 = vmul.f32 %v7634_v5, %v7578_v59 }
 0x37a   :  { %v7978_v32 = vmul.f32 %v7640_v55, %v7581_v40  ;;  %v7982_v24 = vmul.f32 %v7646_v34, %v7581_v40  ;;  %v7986_v14 = vmul.f32 %v7652_v61, %v7584_v45  ;;  %v7990_v28 = vmul.f32 %v7658_v33, %v7584_v45  ;;  %9623 = vst [vmem:[#allocation120_spill] sm:$0xff] %v7998_v30 }
 0x37b   :  { %v7994_v59 = vmul.f32 %v7664_v56, %v7587_v20  ;;  %v8002_v40 = vmul.f32 %v7676_v42, %v7590_v0  ;;  %v8010_v45 = vmul.f32 %v7500_v52, %v7593_v38  ;;  %v8018_v20 = vmul.f32 %v7510_v35, %v7596_v31 }
 0x37c   :  { %9621 = vst [vmem:[#allocation69_spill] sm:$0xff] %v7982_v24  ;;  %9622 = vst [vmem:[#allocation31_spill] sm:$0xff] %v7990_v28  ;;  %v8006_v24 = vmul.f32 %v7682_v36, %v7590_v0  ;;  %v8014_v28 = vmul.f32 %v7505_v1, %v7593_v38  ;;  %v8022_v30 = vmul.f32 %v7515_v11, %v7596_v31 }
 0x37d   :  { %v8026_v0 = vmul.f32 %v7616_v63, %v7599_v19  ;;  %v8030_v52 = vmul.f32 %v7622_v47, %v7599_v19  ;;  %v8034_v1 = vmul.f32 %v7628_v7, %v7602_v21  ;;  %v8038_v35 = vmul.f32 %v7634_v5, %v7602_v21  ;;  %v9626_v5 = vld [vmem:[#allocation148_spill] sm:$0xff]  ;;  %v9628_v7 = vld [vmem:[#allocation23_spill] sm:$0xff]  ;;  %v9629_v63 = vld [vmem:[#allocation98_spill] sm:$0xff] }
 0x37e   :  { %v8042_v11 = vmul.f32 %v7640_v55, %v7605_v57  ;;  %v8046_v38 = vmul.f32 %v7646_v34, %v7605_v57  ;;  %v8050_v31 = vmul.f32 %v7652_v61, %v7608_v49  ;;  %v8054_v19 = vmul.f32 %v7658_v33, %v7608_v49  ;;  %v9625_v34 = vld [vmem:[#allocation147_spill] sm:$0xff]  ;;  %v9627_v33 = vld [vmem:[#allocation152_spill] sm:$0xff] }
 0x37f   :  { %v8058_v21 = vmul.f32 %v7664_v56, %v7611_v48  ;;  %v8062_v55 = vmul.f32 %v7670_v22, %v7611_v48  ;;  %v8066_v57 = vmul.f32 %v7676_v42, %v7614_v4  ;;  %v8070_v61 = vmul.f32 %v7682_v36, %v7614_v4  ;;  %v9630_v48 = vld [vmem:[#allocation46_spill] sm:$0xff] }
 0x380   :  { %v3479_v49 = vadd.f32 %v9626_v5, %v9625_v34  ;;  %v3486_v47 = vadd.f32 %v9628_v7, %v9627_v33  ;;  %v3493_v56 = vadd.f32 %v7698_v58, %v7690_v44  ;;  %v3500_v22 = vadd.f32 %v9630_v48, %v9629_v63  ;;  %v9631_v36 = vld [vmem:[#allocation154_spill] sm:$0xff]  ;;  %v9632_v34 = vld [vmem:[#allocation57_spill] sm:$0xff] }
 0x381   :  { %9624 = vst [vmem:[#allocation24_spill] sm:$0xff] %v8066_v57  ;;  %v3507_v42 = vadd.f32 %v7762_v53, %v7754_v54  ;;  %v3514_v57 = vadd.f32 %v7766_v12, %v7758_v6  ;;  %v3521_v4 = vadd.f32 %v7826_v51, %v7818_v8  ;;  %v3528_v5 = vadd.f32 %v7830_v29, %v7822_v15  ;;  %v9633_v58 = vld [vmem:[#allocation85_spill] sm:$0xff]  ;;  %v9634_v53 = vld [vmem:[#allocation156_spill] sm:$0xff] }
 0x382   :  { %v3480_v7 = vadd.f32 %v3479_v49, %v9631_v36  ;;  %v3487_v33 = vadd.f32 %v3486_v47, %v9632_v34  ;;  %v3494_v44 = vadd.f32 %v3493_v56, %v7706_v46  ;;  %v3501_v63 = vadd.f32 %v3500_v22, %v9633_v58  ;;  %v9635_v51 = vld [vmem:[#allocation88_spill] sm:$0xff]  ;;  %v9636_v49 = vld [vmem:[#allocation109_spill] sm:$0xff]  ;;  %v9644_v58 = vld [vmem:[#allocation30_spill] sm:$0xff] }
 0x383   :  { %v3508_v48 = vadd.f32 %v3507_v42, %v7770_v9  ;;  %v3515_v54 = vadd.f32 %v3514_v57, %v7774_v17  ;;  %v3522_v6 = vadd.f32 %v3521_v4, %v7834_v37  ;;  %v3529_v12 = vadd.f32 %v3528_v5, %v7838_v23  ;;  %v9637_v57 = vld [vmem:[#allocation68_spill] sm:$0xff]  ;;  %v9638_v22 = vld [vmem:[#allocation105_spill] sm:$0xff]  ;;  %v9639_v42 = vld [vmem:[#allocation47_spill] sm:$0xff] }
 0x384   :  { %v3481_v8 = vadd.f32 %v3480_v7, %v9634_v53  ;;  %v3488_v29 = vadd.f32 %v3487_v33, %v9635_v51  ;;  %v3495_v15 = vadd.f32 %v3494_v44, %v7714_v27  ;;  %v3502_v47 = vadd.f32 %v3501_v63, %v9636_v49  ;;  %v9640_v5 = vld [vmem:[#allocation86_spill] sm:$0xff]  ;;  %v9641_v7 = vld [vmem:[#allocation116_spill] sm:$0xff]  ;;  %v9642_v34 = vld [vmem:[#allocation53_spill] sm:$0xff] }
 0x385   :  { %v3509_v46 = vadd.f32 %v3508_v48, %v7778_v62  ;;  %v3516_v56 = vadd.f32 %v3515_v54, %v7782_v18  ;;  %v3523_v9 = vadd.f32 %v3522_v6, %v7842_v10  ;;  %v3530_v17 = vadd.f32 %v3529_v12, %v7846_v60  ;;  %v9643_v44 = vld [vmem:[#allocation65_spill] sm:$0xff]  ;;  %v9645_v63 = vld [vmem:[#allocation50_spill] sm:$0xff] }
 0x386   :  { %v3482_v37 = vadd.f32 %v3481_v8, %v9637_v57  ;;  %v3489_v23 = vadd.f32 %v3488_v29, %v9638_v22  ;;  %v3496_v4 = vadd.f32 %v3495_v15, %v9639_v42  ;;  %v3503_v36 = vadd.f32 %v3502_v47, %v9640_v5  ;;  %v9646_v48 = vld [vmem:[#allocation142_spill] sm:$0xff]  ;;  %v9648_v12 = vld [vmem:[#allocation41_spill] sm:$0xff]  ;;  %v9651_v47 = vld [vmem:[#allocation104_spill] sm:$0xff] }
 0x387   :  { %v3510_v27 = vadd.f32 %v3509_v46, %v9641_v7  ;;  %v3517_v33 = vadd.f32 %v3516_v56, %v9642_v34  ;;  %v3524_v62 = vadd.f32 %v3523_v9, %v9643_v44  ;;  %v3531_v18 = vadd.f32 %v3530_v17, %v9644_v58  ;;  %v9647_v54 = vld [vmem:[#allocation110_spill] sm:$0xff]  ;;  %v9649_v8 = vld [vmem:[#allocation37_spill] sm:$0xff]  ;;  %v9654_v22 = vld [vmem:[#allocation44_spill] sm:$0xff] }
 0x388   :  { %v3483_v10 = vadd.f32 %v3482_v37, %v9645_v63  ;;  %v3490_v60 = vadd.f32 %v3489_v23, %v9646_v48  ;;  %v3497_v6 = vadd.f32 %v3496_v4, %v9647_v54  ;;  %v3504_v53 = vadd.f32 %v3503_v36, %v9648_v12  ;;  %v9650_v29 = vld [vmem:[#allocation101_spill] sm:$0xff]  ;;  %v9652_v56 = vld [vmem:[#allocation54_spill] sm:$0xff]  ;;  %v9655_v42 = vld [vmem:[#allocation63_spill] sm:$0xff] }
 0x389   :  { %v3511_v51 = vadd.f32 %v3510_v27, %v9649_v8  ;;  %v3518_v15 = vadd.f32 %v3517_v33, %v9650_v29  ;;  %v3525_v49 = vadd.f32 %v3524_v62, %v7858_v13  ;;  %v3532_v46 = vadd.f32 %v3531_v18, %v9651_v47  ;;  %v9653_v57 = vld [vmem:[#allocation130_spill] sm:$0xff]  ;;  %v9656_v5 = vld [vmem:[#allocation56_spill] sm:$0xff]  ;;  %v9657_v7 = vld [vmem:[#allocation99_spill] sm:$0xff] }
 0x38a   :  { %v3484_v9 = vadd.f32 %v3483_v10, %v9652_v56  ;;  %v3491_v17 = vadd.f32 %v3490_v60, %v9653_v57  ;;  %v3498_v37 = vadd.f32 %v3497_v6, %v9654_v22  ;;  %v3505_v23 = vadd.f32 %v3504_v53, %v9655_v42  ;;  %v9658_v34 = vld [vmem:[#allocation58_spill] sm:$0xff]  ;;  %v9660_v62 = vld [vmem:[#allocation51_spill] sm:$0xff]  ;;  %v9661_v18 = vld [vmem:[#allocation61_spill] sm:$0xff] }
 0x38b   :  { %v3512_v4 = vadd.f32 %v3511_v51, %v9656_v5  ;;  %v3519_v36 = vadd.f32 %v3518_v15, %v9657_v7  ;;  %v3526_v27 = vadd.f32 %v3525_v49, %v7866_v43  ;;  %v3533_v33 = vadd.f32 %v3532_v46, %v9658_v34  ;;  %v9659_v44 = vld [vmem:[#allocation42_spill] sm:$0xff]  ;;  %v9662_v10 = vld [vmem:[#allocation49_spill] sm:$0xff]  ;;  %v9664_v6 = vld [vmem:[#allocation128_spill] sm:$0xff] }
 0x38c   :  { %v3485_v13 = vadd.f32 %v3484_v9, %v9659_v44  ;;  %v3492_v58 = vadd.f32 %v3491_v17, %v9660_v62  ;;  %v3499_v63 = vadd.f32 %v3498_v37, %v9661_v18  ;;  %v3506_v48 = vadd.f32 %v3505_v23, %v9662_v10  ;;  %v9663_v60 = vld [vmem:[#allocation117_spill] sm:$0xff]  ;;  %v9665_v53 = vld [vmem:[#allocation79_spill] sm:$0xff]  ;;  %v9666_v51 = vld [vmem:[#allocation118_spill] sm:$0xff] }
 0x38d   :  { %v3513_v54 = vadd.f32 %v3512_v4, %v9663_v60  ;;  %v3520_v12 = vadd.f32 %v3519_v36, %v9664_v6  ;;  %v3527_v8 = vadd.f32 %v3526_v27, %v9665_v53  ;;  %v3534_v29 = vadd.f32 %v3533_v33, %v9666_v51  ;;  %v9667_v15 = vld [vmem:[#allocation124_spill] sm:$0xff]  ;;  %v9668_v43 = vld [vmem:[#allocation95_spill] sm:$0xff]  ;;  %v9669_v47 = vld [vmem:[#allocation125_spill] sm:$0xff] }
 0x38e   :  { %v3535_v49 = vadd.f32 %v9668_v43, %v9667_v15  ;;  %v9670_v46 = vld [vmem:[#allocation81_spill] sm:$0xff]  ;;  %v3549_v9 = vadd.f32 %v7954_v39, %v7946_v26  ;;  %v3556_v57 = vadd.f32 %v7958_v41, %v7950_v50  ;;  %v3563_v17 = vadd.f32 %v8018_v20, %v8010_v45  ;;  %v9671_v23 = vld [vmem:[#allocation11_spill] sm:$0xff]  ;;  %v9673_v39 = vld [vmem:[#allocation78_spill] sm:$0xff] }
 0x38f   :  { %v3542_v56 = vadd.f32 %v9670_v46, %v9669_v47  ;;  %v3570_v22 = vadd.f32 %v8022_v30, %v8014_v28  ;;  %v3721_v37 = vmul.f32 -1.442695, %v3485_v13  ;;  %v3722_v42 = vmul.f32 -1.442695, %v3492_v58  ;;  %v9672_v4 = vld [vmem:[#allocation135_spill] sm:$0xff]  ;;  %v9674_v20 = vld [vmem:[#allocation77_spill] sm:$0xff] }
 0x390   :  { %v3536_v5 = vadd.f32 %v3535_v49, %v9671_v23  ;;  %v3550_v36 = vadd.f32 %v3549_v9, %v7962_v25  ;;  %v3557_v27 = vadd.f32 %v3556_v57, %v7966_v2  ;;  %v3564_v26 = vadd.f32 %v3563_v17, %v8026_v0  ;;  %v9675_v44 = vld [vmem:[#allocation139_spill] sm:$0xff]  ;;  %v9677_v58 = vld [vmem:[#allocation69_spill] sm:$0xff]  ;;  %v9679_v60 = vld [vmem:[#allocation34_spill] sm:$0xff] }
 0x391   :  { %v3543_v7 = vadd.f32 %v3542_v56, %v9672_v4  ;;  %v3571_v41 = vadd.f32 %v3570_v22, %v8030_v52  ;;  %4132 = vpow2.f32 %v3721_v37  ;;  %v3723_v50 = vmul.f32 -1.442695, %v3499_v63  ;;  %v9676_v13 = vld [vmem:[#allocation115_spill] sm:$0xff]  ;;  %v9681_v43 = vld [vmem:[#allocation45_spill] sm:$0xff]  ;;  %v9682_v49 = vld [vmem:[#allocation122_spill] sm:$0xff] }
 0x392   :  { %v3537_v45 = vadd.f32 %v3536_v5, %v9673_v39  ;;  %v3551_v28 = vadd.f32 %v3550_v36, %v7970_v3  ;;  %v3558_v34 = vadd.f32 %v3557_v27, %v7974_v16  ;;  %v3565_v33 = vadd.f32 %v3564_v26, %v8034_v1  ;;  %v9678_v10 = vld [vmem:[#allocation111_spill] sm:$0xff]  ;;  %v9683_v47 = vld [vmem:[#allocation120_spill] sm:$0xff]  ;;  %v9684_v57 = vld [vmem:[#allocation73_spill] sm:$0xff] }
 0x393   :  { %v3544_v30 = vadd.f32 %v3543_v7, %v9674_v20  ;;  %v3572_v25 = vadd.f32 %v3571_v41, %v8038_v35  ;;  %4134 = vpow2.f32 %v3722_v42  ;;  %v3724_v2 = vmul.f32 -1.442695, %v3506_v48  ;;  %v9680_v6 = vld [vmem:[#allocation31_spill] sm:$0xff]  ;;  %v9686_v42 = vld [vmem:[#allocation24_spill] sm:$0xff] }
 0x394   :  { %v3538_v0 = vadd.f32 %v3537_v45, %v9675_v44  ;;  %v3552_v62 = vadd.f32 %v3551_v28, %v7978_v32  ;;  %v3559_v18 = vadd.f32 %v3558_v34, %v9677_v58  ;;  %v3566_v63 = vadd.f32 %v3565_v33, %v8042_v11  ;;  %v9685_v17 = vld [vmem:[#allocation119_spill] sm:$0xff]  ;;  %v9687_v27 = vld [vmem:[#allocation36_spill] sm:$0xff]  ;;  %v9690_v45 = vld [vmem:[#allocation74_spill] sm:$0xff] }
 0x395   :  { %v3545_v52 = vadd.f32 %v3544_v30, %v9676_v13  ;;  %v3573_v3 = vadd.f32 %v3572_v25, %v8046_v38  ;;  %4136 = vpow2.f32 %v3723_v50  ;;  %v3725_v16 = vmul.f32 -1.442695, %v3513_v54  ;;  %v9688_v26 = vld [vmem:[#allocation123_spill] sm:$0xff]  ;;  %v9692_v30 = vld [vmem:[#allocation14_spill] sm:$0xff]  ;;  %v9693_v34 = vld [vmem:[#allocation144_spill] sm:$0xff] }
 0x396   :  { %v3539_v1 = vadd.f32 %v3538_v0, %v9678_v10  ;;  %v3553_v48 = vadd.f32 %v3552_v62, %v7986_v14  ;;  %v3560_v53 = vadd.f32 %v3559_v18, %v9680_v6  ;;  %v3567_v51 = vadd.f32 %v3566_v63, %v8050_v31  ;;  %v9691_v20 = vld [vmem:[#allocation131_spill] sm:$0xff]  ;;  %v9694_v33 = vld [vmem:[#allocation140_spill] sm:$0xff]  ;;  %v9696_v0 = vld [vmem:[#allocation89_spill] sm:$0xff] }
 0x397   :  { %v3546_v35 = vadd.f32 %v3545_v52, %v9679_v60  ;;  %v3574_v32 = vadd.f32 %v3573_v3, %v8054_v19  ;;  %4138 = vpow2.f32 %v3724_v2  ;;  %v3726_v15 = vmul.f32 -1.442695, %v3520_v12  ;;  %v9695_v44 = vld [vmem:[#allocation103_spill] sm:$0xff]  ;;  %v9697_v52 = vld [vmem:[#allocation12_spill] sm:$0xff]  ;;  %v9701_v10 = vld [vmem:[#allocation70_spill] sm:$0xff] }
 0x398   :  { %v3540_v11 = vadd.f32 %v3539_v1, %v9681_v43  ;;  %v3554_v54 = vadd.f32 %v3553_v48, %v7994_v59  ;;  %v3561_v46 = vadd.f32 %v3560_v53, %v9683_v47  ;;  %v3568_v56 = vadd.f32 %v3567_v51, %v8058_v21  ;;  %v9698_v62 = vld [vmem:[#allocation64_spill] sm:$0xff]  ;;  %v9702_v1 = vld [vmem:[#allocation141_spill] sm:$0xff]  ;;  %v9705_v51 = vld [vmem:[#allocation39_spill] sm:$0xff] }
 0x399   :  { %v3547_v38 = vadd.f32 %v3546_v35, %v9682_v49  ;;  %v3575_v14 = vadd.f32 %v3574_v32, %v8062_v55  ;;  %4140 = vpow2.f32 %v3725_v16  ;;  %v3727_v9 = vmul.f32 -1.442695, %v3527_v8  ;;  %v9699_v63 = vld [vmem:[#allocation132_spill] sm:$0xff]  ;;  %v9703_v35 = vld [vmem:[#allocation113_spill] sm:$0xff]  ;;  %v9706_v32 = vld [vmem:[#allocation59_spill] sm:$0xff] }
 0x39a   :  { %v3541_v31 = vadd.f32 %v3540_v11, %v9684_v57  ;;  %v3555_v12 = vadd.f32 %v3554_v54, %v8002_v40  ;;  %v3562_v22 = vadd.f32 %v3561_v46, %v8006_v24  ;;  %v3569_v23 = vadd.f32 %v3568_v56, %v9686_v42  ;;  %v9700_v3 = vld [vmem:[#allocation32_spill] sm:$0xff]  ;;  %v9708_v11 = vld [vmem:[#allocation133_spill] sm:$0xff] }
 0x39b   :  { %v3548_v19 = vadd.f32 %v3547_v38, %v9685_v17  ;;  %v4133_v37 = vpop.eup %4132  ;;  %v3576_v59 = vadd.f32 %v3575_v14, %v8070_v61  ;;  %4142 = vpow2.f32 %v3726_v15  ;;  %v3728_v5 = vmul.f32 -1.442695, %v3534_v29  ;;  %v9689_v61 = vld [vmem:[#allocation121_spill] sm:$0xff]  ;;  %v9704_v48 = vld [vmem:[#allocation112_spill] sm:$0xff]  ;;  %v9710_v38 = vld [vmem:[#allocation15_spill] sm:$0xff] }
 0x39c   :  { %4144 = vpow2.f32 %v3727_v9  ;;  %v3729_v21 = vmul.f32 -1.442695, %v3541_v31  ;;  %v3731_v4 = vmul.f32 -1.442695, %v3555_v12  ;;  %v3732_v7 = vmul.f32 -1.442695, %v3562_v22 }
 0x39d   :  { %v3730_v55 = vmul.f32 -1.442695, %v3548_v19  ;;  %v4135_v8 = vpop.eup %4134  ;;  %4146 = vpow2.f32 %v3728_v5  ;;  %v3733_v36 = vmul.f32 -1.442695, %v3569_v23  ;;  %v1321_v40 = vmax.f32 %v9688_v26, %v9687_v27  ;;  %v9707_v43 = vld [vmem:[#allocation100_spill] sm:$0xff]  ;;  %v9715_v31 = vld [vmem:[#allocation126_spill] sm:$0xff] }
 0x39e   :  { %4148 = vpow2.f32 %v3729_v21  ;;  %v3734_v24 = vmul.f32 -1.442695, %v3576_v59  ;;  %v3639_v41 = vadd.f32 1.0, %v4133_v37  ;;  %v3640_v50 = vadd.f32 1.0, %v4135_v8  ;;  %v9711_v46 = vld [vmem:[#allocation28_spill] sm:$0xff]  ;;  %v9716_v17 = vld [vmem:[#allocation43_spill] sm:$0xff] }
 0x39f   :  { %v4137_v39 = vpop.eup %4136  ;;  %4150 = vpow2.f32 %v3730_v55  ;;  %v1322_v29 = vmax.f32 %v9690_v45, %v9689_v61  ;;  %v1323_v28 = vmax.f32 %v9692_v30, %v9691_v20  ;;  %v1324_v25 = vmax.f32 %v9694_v33, %v9693_v34  ;;  %v9712_v56 = vld [vmem:[#allocation136_spill] sm:$0xff]  ;;  %v9718_v12 = vld [vmem:[#allocation18_spill] sm:$0xff]  ;;  %v9719_v37 = vld [vmem:[#allocation71_spill] sm:$0xff] }
 0x3a0   :  { %4152 = vpow2.f32 %v3731_v4  ;;  %v3641_v2 = vadd.f32 1.0, %v4137_v39  ;;  %v1325_v13 = vmax.f32 %v9696_v0, %v9695_v44  ;;  %v1326_v58 = vmax.f32 %v9698_v62, %v9697_v52  ;;  %v9714_v9 = vld [vmem:[#allocation16_spill] sm:$0xff]  ;;  %v9722_v59 = vld [vmem:[#allocation17_spill] sm:$0xff]  ;;  %v9724_v4 = vld [vmem:[#allocation55_spill] sm:$0xff] }
 0x3a1   :  { %v4139_v18 = vpop.eup %4138  ;;  %4154 = vpow2.f32 %v3732_v7  ;;  %v1327_v16 = vmax.f32 %v9700_v3, %v9699_v63  ;;  %v1328_v60 = vmax.f32 %v9702_v1, %v9701_v10  ;;  %v1329_v6 = vmax.f32 %v9704_v48, %v9703_v35  ;;  %v9720_v42 = vld [vmem:[#allocation20_spill] sm:$0xff]  ;;  %v9723_v55 = vld [vmem:[#allocation33_spill] sm:$0xff]  ;;  %v9729_v61 = vld [vmem:[#allocation66_spill] sm:$0xff] }
 0x3a2   :  { %4156 = vpow2.f32 %v3733_v36  ;;  %v3642_v53 = vadd.f32 1.0, %v4139_v18  ;;  %v1330_v15 = vmax.f32 %v9706_v32, %v9705_v51  ;;  %v9709_v49 = vmax.f32 %v9707_v43, %v9708_v11  ;;  %v9726_v36 = vld [vmem:[#allocation80_spill] sm:$0xff]  ;;  %v9730_v45 = vld [vmem:[#allocation137_spill] sm:$0xff]  ;;  %v9732_v34 = vld [vmem:[#allocation26_spill] sm:$0xff] }
 0x3a3   :  { %v4141_v47 = vpop.eup %4140  ;;  %4158 = vpow2.f32 %v3734_v24  ;;  %v9713_v14 = vmax.f32 %v9711_v46, %v9712_v56  ;;  %v9717_v19 = vmax.f32 %v9715_v31, %v9716_v17  ;;  %v9721_v23 = vmax.f32 %v9719_v37, %v9720_v42  ;;  %v9727_v27 = vld [vmem:[#allocation84_spill] sm:$0xff]  ;;  %v9733_v33 = vld [vmem:[#allocation97_spill] sm:$0xff]  ;;  %v9735_v0 = vld [vmem:[#allocation83_spill] sm:$0xff] }
 0x3a4   :  { %v1575_v54 = vmul.f32 %v9710_v38, %v9709_v49  ;;  %v3643_v21 = vadd.f32 1.0, %v4141_v47  ;;  %4160 = vrcp.f32 %v3639_v41  ;;  %v9725_v8 = vmax.f32 %v9723_v55, %v9724_v4  ;;  %v9736_v52 = vld [vmem:[#allocation48_spill] sm:$0xff]  ;;  %v9741_v48 = vld [vmem:[#allocation22_spill] sm:$0xff]  ;;  %v9750_v4 = vld [vmem:[#allocation67_spill] sm:$0xff] }
 0x3a5   :  { %v1576_v57 = vmul.f32 %v9714_v9, %v9713_v14  ;;  %v1577_v22 = vmul.f32 %v9718_v12, %v9717_v19  ;;  %v8220_v5 = vmul.f32 %v9722_v59, %v9721_v23  ;;  %v9728_v26 = vmax.f32 %v9726_v36, %v9727_v27  ;;  %v4143_v39 = vpop.eup %4142  ;;  %v9739_v10 = vld [vmem:[#allocation108_spill] sm:$0xff]  ;;  %v9745_v14 = vld [vmem:[#allocation27_spill] sm:$0xff] }
 0x3a6   :  { %v1579_v7 = vmul.f32 %v9710_v38, %v9725_v8  ;;  %4162 = vrcp.f32 %v3640_v50  ;;  %v9731_v20 = vmax.f32 %v9729_v61, %v9730_v45  ;;  %v9734_v41 = vmax.f32 %v9732_v34, %v9733_v33  ;;  %v4145_v63 = vpop.eup %4144  ;;  %v9738_v50 = vld [vmem:[#allocation106_spill] sm:$0xff]  ;;  %v9742_v43 = vld [vmem:[#allocation40_spill] sm:$0xff]  ;;  %v9747_v19 = vld [vmem:[#allocation107_spill] sm:$0xff] }
 0x3a7   :  { %v1580_v24 = vmul.f32 %v9714_v9, %v9728_v26  ;;  %v9737_v62 = vmax.f32 %v9735_v0, %v9736_v52  ;;  %v3644_v3 = vadd.f32 1.0, %v4143_v39  ;;  %4164 = vrcp.f32 %v3641_v2  ;;  %v4147_v47 = vpop.eup %4146  ;;  %v9744_v56 = vld [vmem:[#allocation96_spill] sm:$0xff]  ;;  %v9751_v8 = vld [vmem:[#allocation143_spill] sm:$0xff] }
 0x3a8   :  { %v1581_v30 = vmul.f32 %v9718_v12, %v9731_v20  ;;  %v8238_v44 = vmul.f32 %v9722_v59, %v9734_v41  ;;  %v9740_v1 = vmax.f32 %v9738_v50, %v9739_v10  ;;  %v9743_v11 = vmax.f32 %v9741_v48, %v9742_v43  ;;  %v9748_v2 = vld [vmem:[#allocation92_spill] sm:$0xff]  ;;  %v4149_v23 = vpop.eup %4148  ;;  %v9753_v43 = vld [vmem:[#allocation94_spill] sm:$0xff] }
 0x3a9   :  { %v1583_v18 = vmul.f32 %v9710_v38, %v9737_v62  ;;  %v3645_v46 = vadd.f32 1.0, %v4145_v63  ;;  %4166 = vrcp.f32 %v3642_v53  ;;  %v9746_v31 = vmax.f32 %v9744_v56, %v9745_v14  ;;  %v4151_v26 = vpop.eup %4150 }
 0x3aa   :  { %v1584_v35 = vmul.f32 %v9714_v9, %v9740_v1  ;;  %v1585_v49 = vmul.f32 %v9718_v12, %v9743_v11  ;;  %v9749_v37 = vmax.f32 %v9747_v19, %v9748_v2  ;;  %v3646_v55 = vadd.f32 1.0, %v4147_v47  ;;  %v4153_v20 = vpop.eup %4152  ;;  %v9754_v19 = vld [vmem:[#allocation91_spill] sm:$0xff] }
 0x3ab   :  { %v1586_v17 = vmul.f32 %v9722_v59, %v9746_v31  ;;  %4168 = vrcp.f32 %v3643_v21  ;;  %v9752_v36 = vmax.f32 %v9750_v4, %v9751_v8  ;;  %v1593_v53 = vmul.f32 %v9718_v12, %v1321_v40  ;;  %v4155_v41 = vpop.eup %4154 }
 0x3ac   :  { %v1591_v42 = vmul.f32 %v9710_v38, %v9749_v37  ;;  %v3647_v39 = vadd.f32 1.0, %v4149_v23  ;;  %4170 = vrcp.f32 %v3644_v3  ;;  %v1594_v61 = vmul.f32 %v9722_v59, %v1322_v29  ;;  %v4157_v62 = vpop.eup %4156 }
 0x3ad   :  { %v1592_v27 = vmul.f32 %v9714_v9, %v9752_v36  ;;  %v1595_v45 = vmul.f32 %v9710_v38, %v1323_v28  ;;  %v3648_v34 = vadd.f32 1.0, %v4151_v26  ;;  %4172 = vrcp.f32 %v3645_v46  ;;  %v4159_v3 = vpop.eup %4158 }
 0x3ae   :  { %v1596_v33 = vmul.f32 %v9714_v9, %v1324_v25  ;;  %v1597_v21 = vmul.f32 %v9718_v12, %v1325_v13  ;;  %v3649_v0 = vadd.f32 1.0, %v4153_v20  ;;  %4174 = vrcp.f32 %v3646_v55  ;;  %v4161_v13 = vpop.eup %4160 }
 0x3af   :  { %v1598_v52 = vmul.f32 %v9722_v59, %v1326_v58  ;;  %v1599_v40 = vmul.f32 %v9710_v38, %v1327_v16  ;;  %v3650_v63 = vadd.f32 1.0, %v4155_v41  ;;  %4176 = vrcp.f32 %v3647_v39  ;;  %3687 = vst [vmem:[#allocation7] sm:$0xff] %v4161_v13 }
 0x3b0   :  { %v1600_v29 = vmul.f32 %v9714_v9, %v1328_v60  ;;  %v1601_v28 = vmul.f32 %v9718_v12, %v1329_v6  ;;  %v3651_v50 = vadd.f32 1.0, %v4157_v62  ;;  %4178 = vrcp.f32 %v3648_v34  ;;  %v4163_v11 = vpop.eup %4162 }
 0x3b1   :  { %v2111_v25 = vadd.f32 %v1576_v57, %v1575_v54  ;;  %v2120_v10 = vadd.f32 %v1580_v24, %v1579_v7  ;;  %v3652_v1 = vadd.f32 1.0, %v4159_v3  ;;  %4180 = vrcp.f32 %v3649_v0  ;;  %v4165_v60 = vpop.eup %4164  ;;  %3688 = vst [vmem:[#allocation7 + $0x8] sm:$0xff] %v4163_v11 }
 0x3b2   :  { %v2129_v48 = vadd.f32 %v1584_v35, %v1583_v18  ;;  %v2141_v58 = vrot.slane %v9753_v43, 4  ;;  %4182 = vrcp.f32 %v3650_v63  ;;  %v2147_v47 = vadd.f32 %v1592_v27, %v1591_v42  ;;  %3689 = vst [vmem:[#allocation7 + $0x10] sm:$0xff] %v4165_v60 }
 0x3b3   :  { %v2112_v16 = vadd.f32 %v2111_v25, %v1577_v22  ;;  %v2121_v38 = vadd.f32 %v2120_v10, %v1581_v30  ;;  %4184 = vrcp.f32 %v3651_v50  ;;  %v2156_v54 = vadd.f32 %v1596_v33, %v1595_v45  ;;  %v4167_v57 = vpop.eup %4166 }
 0x3b4   :  { %v2130_v6 = vadd.f32 %v2129_v48, %v1585_v49  ;;  %v2142_v9 = vadd.f32 %v2141_v58, %v9753_v43  ;;  %4186 = vrcp.f32 %v3652_v1  ;;  %v2148_v24 = vadd.f32 %v2147_v47, %v1593_v53  ;;  %3690 = vst [vmem:[#allocation7 + $0x18] sm:$0xff] %v4167_v57  ;;  %v2222_v1 = vpop.permute.xlu1 %2221 }
 0x3b5   :  { %v2113_v12 = vadd.f32 %v2112_v16, %v8220_v5  ;;  %v2122_v7 = vadd.f32 %v2121_v38, %v8238_v44  ;;  %v4169_v18 = vpop.eup %4168  ;;  %v2157_v35 = vadd.f32 %v2156_v54, %v1597_v21  ;;  %v2165_v46 = vadd.f32 %v1600_v29, %v1599_v40 }
 0x3b6   :  { %v2131_v22 = vadd.f32 %v2130_v6, %v1586_v17  ;;  %v2143_v30 = vrot.slane %v2142_v9, 2  ;;  %v4171_v56 = vpop.eup %4170  ;;  %3691 = vst [vmem:[#allocation7 + $0x20] sm:$0xff] %v4169_v18  ;;  %v2149_v31 = vadd.f32 %v2148_v24, %v1594_v61  ;;  %v2177_v2 = vrot.slane %v9754_v19, 4 }
 0x3b7   :  { %v2114_v49 = vrot.slane %v2113_v12, 4  ;;  %v2123_v14 = vrot.slane %v2122_v7, 4  ;;  %v4173_v37 = vpop.eup %4172  ;;  %3692 = vst [vmem:[#allocation7 + $0x28] sm:$0xff] %v4171_v56  ;;  %v1602_v5 = vmul.f32 %v9722_v59, %v1330_v15  ;;  %v2158_v42 = vadd.f32 %v2157_v35, %v1598_v52 }
 0x3b8   :  { %v2132_v44 = vrot.slane %v2131_v22, 4  ;;  %v2166_v17 = vadd.f32 %v2165_v46, %v1601_v28  ;;  %v4175_v23 = vpop.eup %4174  ;;  %3693 = vst [vmem:[#allocation7 + $0x30] sm:$0xff] %v4173_v37  ;;  %v2144_v8 = vadd.f32 %v2143_v30, %v2142_v9  ;;  %v2150_v36 = vrot.slane %v2149_v31, 4 }
 0x3b9   :  { %v2115_v55 = vadd.f32 %v2114_v49, %v2113_v12  ;;  %v2124_v4 = vadd.f32 %v2123_v14, %v2122_v7  ;;  %v4177_v27 = vpop.eup %4176  ;;  %3694 = vst [vmem:[#allocation7 + $0x38] sm:$0xff] %v4175_v23  ;;  %v2159_v26 = vrot.slane %v2158_v42, 4  ;;  %v2178_v61 = vadd.f32 %v2177_v2, %v9754_v19 }
 0x3ba   :  { %v2133_v53 = vadd.f32 %v2132_v44, %v2131_v22  ;;  %v2167_v39 = vadd.f32 %v2166_v17, %v1602_v5  ;;  %v4179_v45 = vpop.eup %4178  ;;  %3695 = vst [vmem:[#allocation7 + $0x40] sm:$0xff] %v4177_v27  ;;  %v2151_v15 = vadd.f32 %v2150_v36, %v2149_v31  ;;  %v2145_v52 = vrot.slane %v2144_v8, 1 }
 0x3bb   :  { %v2116_v51 = vrot.slane %v2115_v55, 2  ;;  %v2125_v32 = vrot.slane %v2124_v4, 2  ;;  %v4181_v59 = vpop.eup %4180  ;;  %3696 = vst [vmem:[#allocation7 + $0x48] sm:$0xff] %v4179_v45  ;;  %v2160_v34 = vadd.f32 %v2159_v26, %v2158_v42  ;;  %v2179_v3 = vrot.slane %v2178_v61, 2 }
 0x3bc   :  { %v2134_v20 = vrot.slane %v2133_v53, 2  ;;  %v2168_v33 = vrot.slane %v2167_v39, 4  ;;  %v4183_v21 = vpop.eup %4182  ;;  %3697 = vst [vmem:[#allocation7 + $0x50] sm:$0xff] %v4181_v59  ;;  %v2152_v40 = vrot.slane %v2151_v15, 2  ;;  %v2146_v38 = vadd.f32 %v2145_v52, %v2144_v8 }
 0x3bd   :  { %v2117_v41 = vadd.f32 %v2116_v51, %v2115_v55  ;;  %v2126_v0 = vadd.f32 %v2125_v32, %v2124_v4  ;;  %v4185_v62 = vpop.eup %4184  ;;  %3698 = vst [vmem:[#allocation7 + $0x58] sm:$0xff] %v4183_v21  ;;  %v2161_v29 = vrot.slane %v2160_v34, 2  ;;  %v2180_v9 = vadd.f32 %v2179_v3, %v2178_v61 }
 0x3be   :  { %v2135_v63 = vadd.f32 %v2134_v20, %v2133_v53  ;;  %v2169_v28 = vadd.f32 %v2168_v33, %v2167_v39  ;;  %v4187_v50 = vpop.eup %4186  ;;  %3699 = vst [vmem:[#allocation7 + $0x60] sm:$0xff] %v4185_v62  ;;  %v2153_v13 = vadd.f32 %v2152_v40, %v2151_v15  ;;  %v2272_v57 = vrot.slane %v2222_v1, 1 }
 0x3bf   :  { %v2118_v25 = vrot.slane %v2117_v41, 1  ;;  %v2127_v10 = vrot.slane %v2126_v0, 1  ;;  %3700 = vst [vmem:[#allocation7 + $0x68] sm:$0xff] %v4187_v50  ;;  %v2162_v43 = vadd.f32 %v2161_v29, %v2160_v34  ;;  %v2273_v12 = vrot.slane %v2222_v1, 2  ;;  %v9755_v34 = vld [vmem:[#allocation52_spill] sm:$0xff] }
 0x3c0   :  { %v2136_v48 = vrot.slane %v2135_v63, 1  ;;  %v2170_v58 = vrot.slane %v2169_v28, 2  ;;  %v2154_v47 = vrot.slane %v2153_v13, 1  ;;  %v2274_v7 = vrot.slane %v2222_v1, 3 }
 0x3c1   :  { %v2119_v11 = vadd.f32 %v2118_v25, %v2117_v41  ;;  %v2128_v16 = vadd.f32 %v2127_v10, %v2126_v0  ;;  %v2163_v54 = vrot.slane %v2162_v43, 1  ;;  %v2181_v14 = vrot.slane %v2180_v9, 1 }
 0x3c2   :  { %v2137_v60 = vadd.f32 %v2136_v48, %v2135_v63  ;;  %v2171_v6 = vadd.f32 %v2170_v58, %v2169_v28  ;;  %v2155_v24 = vadd.f32 %v2154_v47, %v2153_v13  ;;  %v2402_v46 = vadd.f32 %v2274_v7, %v2146_v38 }
 0x3c3   :  { %v2399_v18 = vadd.f32 %v2222_v1, %v2119_v11  ;;  %v2400_v30 = vadd.f32 %v2272_v57, %v2128_v16  ;;  %v2164_v49 = vadd.f32 %v2163_v54, %v2162_v43  ;;  %v2275_v31 = vrot.slane %v2222_v1, 4 }
 0x3c4   :  { %v2172_v22 = vrot.slane %v2171_v6, 1  ;;  %v2401_v35 = vadd.f32 %v2273_v12, %v2137_v60  ;;  %v2276_v2 = vrot.slane %v2222_v1, 5  ;;  %v2518_v17 = vsel %vm2407_vm0, %v2402_v46, -inf }
 0x3c5   :  { %v2513_v56 = vsel %vm2407_vm0, %v2399_v18, -inf  ;;  %v2514_v19 = vsel %vm2407_vm0, %v2400_v30, -inf  ;;  %v2403_v44 = vadd.f32 %v2275_v31, %v2155_v24  ;;  %v2182_v55 = vadd.f32 %v2181_v14, %v2180_v9 }
 0x3c6   :  { %v2515_v37 = vmax.f32 %v2513_v56, %v2514_v19  ;;  %v2173_v5 = vadd.f32 %v2172_v22, %v2171_v6  ;;  %v2516_v42 = vsel %vm2407_vm0, %v2401_v35, -inf  ;;  %v2277_v4 = vrot.slane %v2222_v1, 6 }
 0x3c7   :  { %v2404_v8 = vadd.f32 %v2276_v2, %v2164_v49  ;;  %v2278_v27 = vrot.slane %v2222_v1, 7  ;;  %v2520_v26 = vsel %vm2407_vm0, %v2403_v44, -inf }
 0x3c8   :  { %v2517_v23 = vmax.f32 %v2515_v37, %v2516_v42  ;;  %v2405_v53 = vadd.f32 %v2277_v4, %v2173_v5 }
 0x3c9   :  { %v2406_v61 = vadd.f32 %v2278_v27, %v2182_v55  ;;  %v2522_v45 = vsel %vm2407_vm0, %v2404_v8, -inf }
 0x3ca   :  { %v2519_v36 = vmax.f32 %v2517_v23, %v2518_v17  ;;  %v2524_v32 = vsel %vm2407_vm0, %v2405_v53, -inf }
 0x3cb   :  { %v2526_v59 = vsel %vm2407_vm0, %v2406_v61, -inf }
 0x3cc   :  { %v2521_v39 = vmax.f32 %v2519_v36, %v2520_v26 }
 0x3ce   :  { %v2523_v51 = vmax.f32 %v2521_v39, %v2522_v45 }
 0x3d0   :  { %v2525_v15 = vmax.f32 %v2523_v51, %v2524_v32  ;;  %v4230_v51 = vld [vmem:[#allocation2] sm:$0xff] }
 0x3d2   :  { %v2527_v20 = vmax.f32 %v2525_v15, %v2526_v59  ;;  %v4231_v15 = vld [vmem:[#allocation2 + $0x8] sm:$0xff] }
 0x3d4   :  { %v2559_v33 = vrot.slane %v2527_v20, %v9755_v34  ;;  %v4232_v20 = vld [vmem:[#allocation2 + $0x10] sm:$0xff] }
 0x3d6   :  { %v2616_v21 = vsub.f32 %v2399_v18, %v2559_v33  ;;  %v2617_v41 = vsub.f32 %v2400_v30, %v2559_v33  ;;  %v2618_v0 = vsub.f32 %v2401_v35, %v2559_v33  ;;  %v2619_v52 = vsub.f32 %v2402_v46, %v2559_v33 }
 0x3d7   :  { %v2620_v40 = vsub.f32 %v2403_v44, %v2559_v33  ;;  %v2621_v62 = vsub.f32 %v2404_v8, %v2559_v33  ;;  %v2622_v63 = vsub.f32 %v2405_v53, %v2559_v33  ;;  %v2623_v29 = vsub.f32 %v2406_v61, %v2559_v33 }
 0x3d8   :  { %v2736_v28 = vmul.f32 1.442695, %v2616_v21  ;;  %v2738_v3 = vmul.f32 1.442695, %v2617_v41  ;;  %v2740_v50 = vmul.f32 1.442695, %v2618_v0 }
 0x3d9   :  { %v2742_v25 = vmul.f32 1.442695, %v2619_v52  ;;  %v2744_v10 = vmul.f32 1.442695, %v2620_v40  ;;  %v2746_v13 = vmul.f32 1.442695, %v2621_v62 }
 0x3da   :  { %4188 = vpow2.f32 %v2736_v28  ;;  %v2748_v1 = vmul.f32 1.442695, %v2622_v63  ;;  %v2750_v48 = vmul.f32 1.442695, %v2623_v29  ;;  %v4233_v21 = vld [vmem:[#allocation2 + $0x18] sm:$0xff]  ;;  %v9756_v40 = vld [vmem:[#allocation72_spill] sm:$0xff] }
 0x3db   :  { %4190 = vpow2.f32 %v2738_v3  ;;  %v9757_v63 = vld [vmem:[#allocation155_spill] sm:$0xff] }
 0x3dc   :  { %4192 = vpow2.f32 %v2740_v50 }
 0x3dd   :  { %4194 = vpow2.f32 %v2742_v25  ;;  %v9758_v25 = vld [vmem:[#allocation29_spill] sm:$0xff] }
 0x3de   :  { %4196 = vpow2.f32 %v2744_v10 }
 0x3df   :  { %4198 = vpow2.f32 %v2746_v13  ;;  %v9759_v13 = vld [vmem:[#allocation62_spill] sm:$0xff] }
 0x3e0   :  { %4200 = vpow2.f32 %v2748_v1 }
 0x3e1   :  { %4202 = vpow2.f32 %v2750_v48 }
 0x3e4   :  { %v4189_v43 = vpop.eup %4188 }
 0x3e5   :  { %v4191_v58 = vpop.eup %4190 }
 0x3e6   :  { %v4193_v11 = vpop.eup %4192  ;;  %v2921_v16 = vrot.slane %v4191_v58, 7 }
 0x3e7   :  { %v4195_v38 = vpop.eup %4194  ;;  %v2923_v47 = vrot.slane %v4193_v11, 6 }
 0x3e8   :  { %v4197_v60 = vpop.eup %4196  ;;  %v2922_v6 = vsel %vm2817_vm1, %v2921_v16, %v4189_v43  ;;  %v2925_v9 = vrot.slane %v4195_v38, 5 }
 0x3e9   :  { %v4199_v54 = vpop.eup %4198  ;;  %v2924_v57 = vsel %vm2820_vm2, %v2923_v47, %v2922_v6  ;;  %v2927_v12 = vrot.slane %v4197_v60, 4 }
 0x3ea   :  { %v4201_v7 = vpop.eup %4200  ;;  %v2926_v24 = vsel %vm2823_vm3, %v2925_v9, %v2924_v57  ;;  %v2929_v18 = vrot.slane %v4199_v54, 3 }
 0x3eb   :  { %v4203_v22 = vpop.eup %4202  ;;  %v2928_v30 = vsel %vm2826_vm4, %v2927_v12, %v2926_v24  ;;  %v2931_v35 = vrot.slane %v4201_v7, 2  ;;  %v4237_v12 = vld [vmem:[#allocation2 + $0x58] sm:$0xff] }
 0x3ec   :  { %v2930_v46 = vsel %vm2829_vm5, %v2929_v18, %v2928_v30  ;;  %v2933_v56 = vrot.slane %v4203_v22, 1 }
 0x3ed   :  { %v2932_v49 = vsel %vm2832_vm6, %v2931_v35, %v2930_v46  ;;  %v4239_v35 = vld [vmem:[#allocation2 + $0x68] sm:$0xff] }
 0x3ee   :  { %v2934_v14 = vsel %vm2835_vm7, %v2933_v56, %v2932_v49 }
 0x3ef   :  { %v2985_v31 = vrot.slane %v2934_v14, 4 }
 0x3f1   :  { %v2986_v19 = vadd.f32 %v2985_v31, %v2934_v14  ;;  %v4240_v14 = vld [vmem:[#allocation2 + $0x70] sm:$0xff] }
 0x3f3   :  { %v2987_v2 = vrot.slane %v2986_v19, 2 }
 0x3f5   :  { %v2988_v37 = vadd.f32 %v2987_v2, %v2986_v19  ;;  %v4241_v19 = vld [vmem:[#allocation2 + $0x78] sm:$0xff] }
 0x3f7   :  { %v2989_v5 = vrot.slane %v2988_v37, 1 }
 0x3f9   :  { %v2990_v44 = vadd.f32 %v2989_v5, %v2988_v37 }
 0x3fb   :  { %v3022_v42 = vrot.slane %v2990_v44, %v9755_v34 }
 0x3fd   :  { %4204 = vrcp.f32 %v3022_v42 }
 0x407   :  { %v4205_v17 = vpop.eup %4204 }
 0x408   :  { %v3087_v23 = vmul.f32 %v4205_v17, %v4189_v43  ;;  %v3088_v55 = vmul.f32 %v4205_v17, %v4191_v58  ;;  %v3089_v4 = vmul.f32 %v4205_v17, %v4193_v11  ;;  %v3090_v8 = vmul.f32 %v4205_v17, %v4195_v38  ;;  %v4234_v11 = vld [vmem:[#allocation2 + $0x40] sm:$0xff]  ;;  %v4235_v38 = vld [vmem:[#allocation2 + $0x48] sm:$0xff] }
 0x409   :  { %v3091_v36 = vmul.f32 %v4205_v17, %v4197_v60  ;;  %v3092_v27 = vmul.f32 %v4205_v17, %v4199_v54  ;;  %v3093_v53 = vmul.f32 %v4205_v17, %v4201_v7  ;;  %v3094_v26 = vmul.f32 %v4205_v17, %v4203_v22  ;;  %v4236_v54 = vld [vmem:[#allocation2 + $0x50] sm:$0xff]  ;;  %v4238_v22 = vld [vmem:[#allocation2 + $0x60] sm:$0xff] }
 0x40a   :  { %v3322_v39 = vrot.slane %v3087_v23, %v9755_v34  ;;  %v3326_v61 = vrot.slane %v3088_v55, %v9755_v34  ;;  %v3330_v45 = vrot.slane %v3089_v4, %v9755_v34  ;;  %v3334_v0 = vrot.slane %v3090_v8, %v9755_v34 }
 0x40b   :  { %v3338_v52 = vrot.slane %v3091_v36, %v9755_v34  ;;  %v3342_v50 = vrot.slane %v3092_v27, %v9755_v34  ;;  %v3346_v58 = vrot.slane %v3093_v53, %v9755_v34  ;;  %v3350_v9 = vrot.slane %v3094_v26, %v9755_v34 }
 0x40c   :  { %v3463_v32 = vmul.f32 %v4230_v51, %v3322_v39  ;;  %v3464_v59 = vmul.f32 %v4231_v15, %v3322_v39  ;;  %v3465_v33 = vmul.f32 %v4232_v20, %v3326_v61  ;;  %v3466_v41 = vmul.f32 %v4233_v21, %v3326_v61 }
 0x40d   :  { %v3467_v62 = vmul.f32 %v9756_v40, %v3330_v45  ;;  %v3468_v29 = vmul.f32 %v9757_v63, %v3330_v45  ;;  %v3469_v10 = vmul.f32 %v9758_v25, %v3334_v0  ;;  %v3470_v1 = vmul.f32 %v9759_v13, %v3334_v0 }
 0x40e   :  { %v3577_v28 = vadd.f32 %v3465_v33, %v3463_v32  ;;  %v3584_v3 = vadd.f32 %v3466_v41, %v3464_v59  ;;  %v3471_v16 = vmul.f32 %v4234_v11, %v3338_v52  ;;  %v3472_v47 = vmul.f32 %v4235_v38, %v3338_v52 }
 0x40f   :  { %v3473_v57 = vmul.f32 %v4236_v54, %v3342_v50  ;;  %v3474_v7 = vmul.f32 %v4237_v12, %v3342_v50  ;;  %v3475_v30 = vmul.f32 %v4238_v22, %v3346_v58  ;;  %v3476_v46 = vmul.f32 %v4239_v35, %v3346_v58 }
 0x410   :  { %v3578_v48 = vadd.f32 %v3577_v28, %v3467_v62  ;;  %v3585_v43 = vadd.f32 %v3584_v3, %v3468_v29  ;;  %v3477_v31 = vmul.f32 %v4240_v14, %v3350_v9  ;;  %v3478_v2 = vmul.f32 %v4241_v19, %v3350_v9 }
 0x412   :  { %v3579_v60 = vadd.f32 %v3578_v48, %v3469_v10  ;;  %v3586_v6 = vadd.f32 %v3585_v43, %v3470_v1 }
 0x414   :  { %v3580_v24 = vadd.f32 %v3579_v60, %v3471_v16  ;;  %v3587_v18 = vadd.f32 %v3586_v6, %v3472_v47 }
 0x416   :  { %v3581_v56 = vadd.f32 %v3580_v24, %v3473_v57  ;;  %v3588_v49 = vadd.f32 %v3587_v18, %v3474_v7 }
 0x418   :  { %v3582_v37 = vadd.f32 %v3581_v56, %v3475_v30  ;;  %v3589_v5 = vadd.f32 %v3588_v49, %v3476_v46 }
 0x41a   :  { %v3583_v44 = vadd.f32 %v3582_v37, %v3477_v31  ;;  %v3590_v34 = vadd.f32 %v3589_v5, %v3478_v2 }
 0x41c   :  { %v3735_v42 = vmul.f32 -1.442695, %v3583_v44  ;;  %v3736_v17 = vmul.f32 -1.442695, %v3590_v34 }
 0x41e   :  { %4206 = vpow2.f32 %v3735_v42 }
 0x41f   :  { %4208 = vpow2.f32 %v3736_v17 }
 0x428   :  { %v4207_v23 = vpop.eup %4206 }
 0x429   :  { %v4209_v55 = vpop.eup %4208  ;;  %v3653_v4 = vadd.f32 1.0, %v4207_v23 }
 0x42a   :  { %v3654_v8 = vadd.f32 1.0, %v4209_v55 }
 0x42b   :  { %4210 = vrcp.f32 %v3653_v4 }
 0x42c   :  { %4212 = vrcp.f32 %v3654_v8 }
 0x435   :  { %v4211_v36 = vpop.eup %4210 }
 0x436   :  { %v4213_v27 = vpop.eup %4212  ;;  %3701 = vst [vmem:[#allocation7 + $0x70] sm:$0xff] %v4211_v36 }
 0x437   :  { %3702 = vst [vmem:[#allocation7 + $0x78] sm:$0xff] %v4213_v27 }
 0x438   :  { %4297 = shalt.err (!%p4294_p6)
}
 0x439   :  { %s4298_s14 = scalar_lea.hbm %s8331_s4, 2048 }
 0x43a   :  { %p4299_p7 = scmp.ne.s32.totalorder %s8331_s4, %s4298_s14  ;;  %p4302_p8 = scmp.lt.u32.totalorder %s4298_s14, %s8331_s4 }
 0x43c   :  { %p4304_p9 = pnand %p4302_p8, %p4299_p7 }
 0x43e   :  { %4307 = shalt.err (!%p4304_p9)
}
 0x43f   :  { %3714 = dma.vmem_to_hbm [thread:$0]  %s3709_s12, 2048, %s8331_s4, [#allocation4], %s4315_s25, %s4315_s25, %s4316_s26  }
 0x440   :  { %4312 = dma.done.wait [#allocation4], 2048  }
 0x441   :  { %4313 = vsyncadd [#allocation4], 4294965248 }
 0x442   :  { %3718 = vsyncpa [#allocation3], 1 }
 0x443   :  { %3719 = vsyncpa [#allocation6], 1 }
 0x444   :  { %3720 = vsyncpa [#allocation4], 1 }

</bundles_post_ra>
